<compile_context>
chip_gen: v6e
topology: v6e:2x2x1
jax: 0.10.0
libtpu: 0.0.40
codegen_flags: <defaults>
</compile_context>

<pallas_src>
import jax
import jax.numpy as jnp
from jax import lax
from jax.experimental import pallas as pl
from jax.experimental.pallas import tpu as pltpu


# -----------------------------------------------------------------------------
# Batch-block picker: >=2 grid steps when B>=2 (both v7x TCs busy), blocks ~1MiB.
# -----------------------------------------------------------------------------
def _pick_batch_block(batch, max_blk=4):
    if batch < 2:
        return 1
    target = min(max_blk, batch // 2)
    for bb in range(target, 0, -1):
        if batch % bb == 0:
            return bb
    return 1


# -----------------------------------------------------------------------------
# Wrapper-side im2col for conv3x3(pad=1) + maxpool2x2, parities along N.
# -----------------------------------------------------------------------------
def im2col_pool_parities_concat(x_bchw, k_pad=None, out_dtype=jnp.bfloat16):
    """(B, C, H, W) -> (B, Kp, 4*N) with N = (H//2)*(W//2).

    Column block [p*N:(p+1)*N] holds parity p = 2*rr + cc, i.e. conv-output
    pixel (2i+rr, 2j+cc) for pooled-output position (i, j) (row-major).
    K index = (dy*3 + dx)*C + c; optionally zero-padded up to k_pad.
    """
    B, C, H, W = x_bchw.shape
    h2, w2 = H // 2, W // 2
    n = h2 * w2
    xp = jnp.pad(x_bchw, ((0, 0), (0, 0), (1, 1), (1, 1)))
    cols = []
    for rr in (0, 1):
        for cc in (0, 1):
            taps = []
            for dy in range(3):
                for dx in range(3):
                    t = xp[:, :, rr + dy:rr + dy + 2 * h2:2,
                              cc + dx:cc + dx + 2 * w2:2]       # (B, C, h2, w2)
                    taps.append(t.reshape(B, C, n))
            cols.append(jnp.concatenate(taps, axis=1))           # (B, 9C, N)
    p = jnp.concatenate(cols, axis=2)                            # (B, 9C, 4N)
    if k_pad is not None and k_pad > 9 * C:
        p = jnp.pad(p, ((0, 0), (0, k_pad - 9 * C), (0, 0)))
    return p.astype(out_dtype)


# -----------------------------------------------------------------------------
# Kernel A: conv1 (3x3, pad=1) + bias + ReLU + MaxPool(2x2), batch-blocked.
# -----------------------------------------------------------------------------
def _conv_relu_pool_kernel(p_ref, w_ref, b_ref, o_ref, z_ref):
    """p_ref: (Bblk, Kp, 4N) bf16   parity-concatenated im2col patches
       w_ref: (cout, Kp)     bf16
       b_ref: (cout, 1)      f32
       o_ref: (Bblk, cout, N) bf16  N = (H//2)*(W//2), lane-dense
       z_ref: (cout, 4N)     f32 VMEM scratch for the single-dot result
    """
    n = o_ref.shape[2]
    w = w_ref[...]
    b = b_ref[...]
    for bb in range(o_ref.shape[0]):          # static Bblk, small
        # One MXU dot covers all 4 pooling parities (concatenated along N);
        # the f32 result is kept in VMEM scratch (too large for the vreg file).
        z_ref[...] = jnp.dot(w, p_ref[bb], preferred_element_type=jnp.float32)
        pooled = jnp.maximum(
            jnp.maximum(z_ref[:, 0 * n:1 * n], z_ref[:, 1 * n:2 * n]),
            jnp.maximum(z_ref[:, 2 * n:3 * n], z_ref[:, 3 * n:4 * n]))
        # bias + ReLU hoisted after the parity max (max commutes with relu(x+b)).
        o_ref[bb] = jnp.maximum(pooled + b, 0.0).astype(o_ref.dtype)


def conv_relu_pool(patches, w_mat, b_col, *, bblk):
    """patches: (B, Kp, 4N) bf16 -> (B, cout, N) bf16."""
    B, kp, n4 = patches.shape
    n = n4 // 4
    cout = w_mat.shape[0]
    return pl.pallas_call(
        _conv_relu_pool_kernel,
        out_shape=jax.ShapeDtypeStruct((B, cout, n), jnp.bfloat16),
        grid_spec=pltpu.PrefetchScalarGridSpec(
            num_scalar_prefetch=0,
            grid=(B // bblk,),
            in_specs=[
                pl.BlockSpec((bblk, kp, n4), lambda i: (i, 0, 0)),
                pl.BlockSpec((cout, kp), lambda i: (0, 0)),
                pl.BlockSpec((cout, 1), lambda i: (0, 0)),
            ],
            out_specs=pl.BlockSpec((bblk, cout, n), lambda i: (i, 0, 0)),
            scratch_shapes=[pltpu.VMEM((cout, n4), jnp.float32)],
        ),
        compiler_params=pltpu.CompilerParams(
            dimension_semantics=("parallel",)),
    )(patches, w_mat, b_col)


# -----------------------------------------------------------------------------
# Kernel B: conv2 + bias + ReLU + MaxPool(2x2) + Linear(8192->128) + ReLU,
# fused so y2 / flat never leave VMEM; fc weight resident across the grid.
# -----------------------------------------------------------------------------
def _conv_pool_fc_kernel(p_ref, w2_ref, b2_ref, wfc_ref, bfc_ref, o_ref, y2_ref):
    """p_ref:  (Bblk, 9*cin, 4N) bf16   conv2 im2col patches (N = 256)
       w2_ref: (cout, 9*cin)     bf16   cout = 32
       b2_ref: (cout, 1)         f32
       wfc_ref:(cout, N, 128)    bf16   fc weight viewed as [channel, spatial, out]
       bfc_ref:(1, 128)          f32
       o_ref:  (Bblk, 1, 128)    f32
       y2_ref: (cout, N)         f32 VMEM scratch (post-pool activations)
    """
    n4 = p_ref.shape[2]
    n = n4 // 4
    cout = w2_ref.shape[0]
    w2 = w2_ref[...]
    b2 = b2_ref[...]
    bfc = bfc_ref[...]
    for bb in range(o_ref.shape[0]):          # static Bblk, small
        # Single MXU dot over the 4 parities; (32, 1024) f32 fits in registers.
        z = jnp.dot(w2, p_ref[bb], preferred_element_type=jnp.float32)
        pooled = jnp.maximum(
            jnp.maximum(z[:, 0 * n:1 * n], z[:, 1 * n:2 * n]),
            jnp.maximum(z[:, 2 * n:3 * n], z[:, 3 * n:4 * n]))
        y2_ref[...] = jnp.maximum(pooled + b2, 0.0)          # (32, 256) f32

        # FC over PyTorch's NCHW-flattened y2 WITHOUT materializing (1, 8192):
        #   out[k] = sum_c sum_n y2[c, n] * wfc[c*256 + n, k]
        # i.e. accumulate 32 channel-wise (1,256)x(256,128) MXU dots in f32.
        acc = jnp.zeros((1, bfc.shape[1]), jnp.float32)
        for c in range(cout):
            row = y2_ref[c:c + 1, :].astype(jnp.bfloat16)     # (1, 256)
            acc = acc + jnp.dot(row, wfc_ref[c],
                                preferred_element_type=jnp.float32)
        o_ref[bb] = jnp.maximum(acc + bfc, 0.0)


def conv_relu_pool_fc(patches, w2_mat, b2_col, wfc_r, bfc_row, *, bblk):
    """patches: (B, 9*cin, 4N) bf16 -> (B, 128) f32 (conv2+pool+fc fused)."""
    B, k2, n4 = patches.shape
    n = n4 // 4
    cout = w2_mat.shape[0]
    nfc = wfc_r.shape[2]
    out = pl.pallas_call(
        _conv_pool_fc_kernel,
        out_shape=jax.ShapeDtypeStruct((B, 1, nfc), jnp.float32),
        grid_spec=pltpu.PrefetchScalarGridSpec(
            num_scalar_prefetch=0,
            grid=(B // bblk,),
            in_specs=[
                pl.BlockSpec((bblk, k2, n4), lambda i: (i, 0, 0)),
                pl.BlockSpec((cout, k2), lambda i: (0, 0)),
                pl.BlockSpec((cout, 1), lambda i: (0, 0)),
                # constant index_map -> 2 MiB fc weight DMA'd once, stays in VMEM
                pl.BlockSpec((cout, n, nfc), lambda i: (0, 0, 0)),
                pl.BlockSpec((1, nfc), lambda i: (0, 0)),
            ],
            out_specs=pl.BlockSpec((bblk, 1, nfc), lambda i: (i, 0, 0)),
            scratch_shapes=[pltpu.VMEM((cout, n), jnp.float32)],
        ),
        compiler_params=pltpu.CompilerParams(
            dimension_semantics=("parallel",)),
    )(patches, w2_mat, b2_col, wfc_r, bfc_row)
    return out.reshape(B, nfc)


# -----------------------------------------------------------------------------
# Full forward (wrapper glue is im2col gather / reshapes only).
# -----------------------------------------------------------------------------
def simple_tooth_cnn_forward(x_nchw, params):
    B, _, H, W = x_nchw.shape
    bblk = _pick_batch_block(B)
    x = x_nchw.astype(jnp.bfloat16)

    # Layer 1: conv(3->16)+relu+pool.  K padded 27 -> 32 (bf16 sublane pack).
    p1 = im2col_pool_parities_concat(x, k_pad=32)                # (B, 32, 4096)
    y1 = conv_relu_pool(p1, params["w1m"], params["b1c"], bblk=bblk)  # (B,16,1024)
    y1 = y1.reshape(B, 16, H // 2, W // 2)

    # Layer 2 + FC fused: conv(16->32)+relu+pool then Linear(8192->128)+relu.
    p2 = im2col_pool_parities_concat(y1)                         # (B, 144, 1024)
    return conv_relu_pool_fc(p2, params["w2m"], params["b2c"],
                             params["wfc_r"], params["bfc"], bblk=bblk)  # (B,128)


# -----------------------------------------------------------------------------
# Pure-JAX (fp32) reference for verification.
# -----------------------------------------------------------------------------
def reference_forward(x_nchw, params):
    x = jnp.transpose(x_nchw, (0, 2, 3, 1))

    def conv(x, w, b):
        y = lax.conv_general_dilated(
            x, w, window_strides=(1, 1), padding="SAME",
            dimension_numbers=("NHWC", "HWIO", "NHWC"))
        return jnp.maximum(y + b.reshape(1, 1, 1, -1), 0.0)

    def pool(x):
        return lax.reduce_window(x, -jnp.inf, lax.max,
                                 (1, 2, 2, 1), (1, 2, 2, 1), "VALID")

    y = pool(conv(x, params["w1"], params["b1"]))
    y = pool(conv(y, params["w2"], params["b2"]))
    flat = jnp.transpose(y, (0, 3, 1, 2)).reshape(x.shape[0], -1)
    return jnp.maximum(flat @ params["wfc_f32"] + params["bfc_f32"], 0.0)


def init_params():
    keys = jax.random.split(jax.random.PRNGKey(0), 6)
    p = {}
    # Canonical fp32 parameters (HWIO conv weights), used by the reference.
    # NOTE: real PyTorch OIHW weights would need w.transpose(0, 2, 3, 1) before
    # the (cout, 9*cin) reshape below.
    p["w1"] = jax.random.normal(keys[0], (3, 3, 3, 16), jnp.float32) / jnp.sqrt(27.0)
    p["b1"] = 0.01 * jax.random.normal(keys[1], (16,), jnp.float32)
    p["w2"] = jax.random.normal(keys[2], (3, 3, 16, 32), jnp.float32) / jnp.sqrt(144.0)
    p["b2"] = 0.01 * jax.random.normal(keys[3], (32,), jnp.float32)
    p["wfc_f32"] = jax.random.normal(keys[4], (32 * 16 * 16, 128), jnp.float32) / jnp.sqrt(8192.0)
    p["bfc_f32"] = 0.01 * jax.random.normal(keys[5], (128,), jnp.float32)
    # Kernel-side layouts:
    #   (cout, 9*cin) bf16 matrices with K index = (dy*3+dx)*cin + c;
    #   conv1 K zero-padded 27 -> 32; per-channel bias columns;
    #   fc weight reshaped (32, 256, 128) bf16 = [channel, spatial, out].
    w1m = jnp.transpose(p["w1"], (3, 0, 1, 2)).reshape(16, 27)
    p["w1m"] = jnp.pad(w1m, ((0, 0), (0, 5))).astype(jnp.bfloat16)      # (16, 32)
    p["b1c"] = p["b1"].reshape(16, 1)
    p["w2m"] = jnp.transpose(p["w2"], (3, 0, 1, 2)).reshape(32, 144).astype(jnp.bfloat16)
    p["b2c"] = p["b2"].reshape(32, 1)
    p["wfc_r"] = p["wfc_f32"].reshape(32, 256, 128).astype(jnp.bfloat16)
    p["bfc"] = p["bfc_f32"].reshape(1, 128)
    return p


if __name__ == "__main__":
    params = init_params()
    # PyTorch-style NCHW input; 64x64 spatial is implied by fc1 (32*16*16).
    x = jax.random.normal(jax.random.PRNGKey(0), (2, 3, 64, 64), jnp.float32)

    forward = jax.jit(simple_tooth_cnn_forward)
    out = jax.block_until_ready(forward(x, params))
    assert out.shape == (2, 128), out.shape

    ref = jax.block_until_ready(reference_forward(x, params))
    max_err = float(jnp.max(jnp.abs(out - ref)))
    assert jnp.allclose(out, ref, atol=5e-2, rtol=5e-2), max_err

    print("KERNEL_OK")
</pallas_src>

<mosaic_0001>
module attributes {stable_mosaic.version = 11 : i64} {
  func.func @_conv_relu_pool_kernel(%arg0: i32, %arg1: memref<1x32x4096xbf16, #tpu.memory_space<vmem>>, %arg2: memref<16x32xbf16, #tpu.memory_space<vmem>>, %arg3: memref<16x1xf32, #tpu.memory_space<vmem>>, %arg4: memref<1x16x1024xbf16, #tpu.memory_space<vmem>>, %arg5: memref<16x4096xf32, #tpu.memory_space<vmem>>) attributes {dimension_semantics = [#tpu.dimension_semantics<parallel>], iteration_bounds = array<i64: 2>, scalar_prefetch = 0 : i64, scratch_operands = 1 : i64, tpu.core_type = #tpu.core_type<tc>, window_params = [{transform_indices = @transform_0, window_bounds = array<i64: 1, 32, 4096>}, {pipeline_mode = #tpu.pipeline_mode<synchronous>, transform_indices = @transform_1, window_bounds = array<i64: 16, 32>}, {pipeline_mode = #tpu.pipeline_mode<synchronous>, transform_indices = @transform_2, window_bounds = array<i64: 16, 1>}, {transform_indices = @transform_3, window_bounds = array<i64: 1, 16, 1024>}]} {
    %c0 = arith.constant 0 : index
    %c0_0 = arith.constant 0 : index
    %0 = vector.load %arg2[%c0, %c0_0] : memref<16x32xbf16, #tpu.memory_space<vmem>>, vector<16x32xbf16>
    %c0_1 = arith.constant 0 : index
    %c0_2 = arith.constant 0 : index
    %1 = vector.load %arg3[%c0_1, %c0_2] : memref<16x1xf32, #tpu.memory_space<vmem>>, vector<16x1xf32>
    %c0_3 = arith.constant 0 : index
    %c0_4 = arith.constant 0 : index
    %c0_5 = arith.constant 0 : index
    %2 = vector.load %arg1[%c0_3, %c0_4, %c0_5] : memref<1x32x4096xbf16, #tpu.memory_space<vmem>>, vector<1x32x4096xbf16>
    %3 = vector.shape_cast %2 : vector<1x32x4096xbf16> to vector<32x4096xbf16>
    %cst = arith.constant dense<0.000000e+00> : vector<16x4096xf32>
    %4 = tpu.matmul %0, %3, %cst {dimension_numbers = #tpu.dot_dimension_numbers<[1], [0], [0], [1], [0, 0, 1, 1], [], []>} : vector<16x32xbf16>, vector<32x4096xbf16>, vector<16x4096xf32> -> vector<16x4096xf32>
    %c0_6 = arith.constant 0 : index
    %c0_7 = arith.constant 0 : index
    %5 = vector.load %arg5[%c0_6, %c0_7] : memref<16x4096xf32, #tpu.memory_space<vmem>>, vector<16x4096xf32>
    tpu.vector_store %arg5[%c0_6, %c0_7], %4 {strides = array<i32>} : memref<16x4096xf32, #tpu.memory_space<vmem>>, vector<16x4096xf32>,
    %c0_8 = arith.constant 0 : index
    %c0_9 = arith.constant 0 : index
    %6 = vector.load %arg5[%c0_8, %c0_9] : memref<16x4096xf32, #tpu.memory_space<vmem>>, vector<16x1024xf32>
    %c0_10 = arith.constant 0 : index
    %c1024 = arith.constant 1024 : index
    %7 = vector.load %arg5[%c0_10, %c1024] : memref<16x4096xf32, #tpu.memory_space<vmem>>, vector<16x1024xf32>
    %8 = arith.maximumf %6, %7 : vector<16x1024xf32>
    %c0_11 = arith.constant 0 : index
    %c2048 = arith.constant 2048 : index
    %9 = vector.load %arg5[%c0_11, %c2048] : memref<16x4096xf32, #tpu.memory_space<vmem>>, vector<16x1024xf32>
    %c0_12 = arith.constant 0 : index
    %c3072 = arith.constant 3072 : index
    %10 = vector.load %arg5[%c0_12, %c3072] : memref<16x4096xf32, #tpu.memory_space<vmem>>, vector<16x1024xf32>
    %11 = arith.maximumf %9, %10 : vector<16x1024xf32>
    %12 = arith.maximumf %8, %11 : vector<16x1024xf32>
    %13 = vector.broadcast %1 : vector<16x1xf32> to vector<16x1024xf32>
    %14 = arith.addf %12, %13 : vector<16x1024xf32>
    %cst_13 = arith.constant 0.000000e+00 : f32
    %15 = vector.broadcast %cst_13 : f32 to vector<16x1024xf32>
    %16 = arith.maximumf %14, %15 : vector<16x1024xf32>
    %17 = arith.truncf %16 : vector<16x1024xf32> to vector<16x1024xbf16>
    %c0_14 = arith.constant 0 : index
    %c0_15 = arith.constant 0 : index
    %c0_16 = arith.constant 0 : index
    %18 = vector.load %arg4[%c0_14, %c0_15, %c0_16] : memref<1x16x1024xbf16, #tpu.memory_space<vmem>>, vector<1x16x1024xbf16>
    %19 = vector.shape_cast %18 : vector<1x16x1024xbf16> to vector<16x1024xbf16>
    %20 = vector.shape_cast %17 : vector<16x1024xbf16> to vector<1x16x1024xbf16>
    tpu.vector_store %arg4[%c0_14, %c0_15, %c0_16], %20 {strides = array<i32>} : memref<1x16x1024xbf16, #tpu.memory_space<vmem>>, vector<1x16x1024xbf16>,
    return
  }
  func.func @transform_0(%arg0: i32) -> (i32, i32, i32) {
    %c0_i32 = arith.constant 0 : i32
    %c0_i32_0 = arith.constant 0 : i32
    %c0_i32_1 = arith.constant 0 : i32
    return %arg0, %c0_i32, %c0_i32_0 : i32, i32, i32
  }
  func.func @transform_1(%arg0: i32) -> (i32, i32) {
    %c0_i32 = arith.constant 0 : i32
    %c0_i32_0 = arith.constant 0 : i32
    %c0_i32_1 = arith.constant 0 : i32
    return %c0_i32, %c0_i32_0 : i32, i32
  }
  func.func @transform_2(%arg0: i32) -> (i32, i32) {
    %c0_i32 = arith.constant 0 : i32
    %c0_i32_0 = arith.constant 0 : i32
    %c0_i32_1 = arith.constant 0 : i32
    return %c0_i32, %c0_i32_0 : i32, i32
  }
  func.func @transform_3(%arg0: i32) -> (i32, i32, i32) {
    %c0_i32 = arith.constant 0 : i32
    %c0_i32_0 = arith.constant 0 : i32
    %c0_i32_1 = arith.constant 0 : i32
    return %arg0, %c0_i32, %c0_i32_0 : i32, i32, i32
  }
}

module attributes {stable_mosaic.version = 11 : i64} {
  func.func @_conv_pool_fc_kernel(%arg0: i32, %arg1: memref<1x144x1024xbf16, #tpu.memory_space<vmem>>, %arg2: memref<32x144xbf16, #tpu.memory_space<vmem>>, %arg3: memref<32x1xf32, #tpu.memory_space<vmem>>, %arg4: memref<32x256x128xbf16, #tpu.memory_space<vmem>>, %arg5: memref<1x128xf32, #tpu.memory_space<vmem>>, %arg6: memref<1x1x128xf32, #tpu.memory_space<vmem>>, %arg7: memref<32x256xf32, #tpu.memory_space<vmem>>) attributes {dimension_semantics = [#tpu.dimension_semantics<parallel>], iteration_bounds = array<i64: 2>, scalar_prefetch = 0 : i64, scratch_operands = 1 : i64, tpu.core_type = #tpu.core_type<tc>, window_params = [{transform_indices = @transform_0, window_bounds = array<i64: 1, 144, 1024>}, {pipeline_mode = #tpu.pipeline_mode<synchronous>, transform_indices = @transform_1, window_bounds = array<i64: 32, 144>}, {pipeline_mode = #tpu.pipeline_mode<synchronous>, transform_indices = @transform_2, window_bounds = array<i64: 32, 1>}, {pipeline_mode = #tpu.pipeline_mode<synchronous>, transform_indices = @transform_3, window_bounds = array<i64: 32, 256, 128>}, {pipeline_mode = #tpu.pipeline_mode<synchronous>, transform_indices = @transform_4, window_bounds = array<i64: 1, 128>}, {transform_indices = @transform_5, window_bounds = array<i64: 1, 1, 128>}]} {
    %c0 = arith.constant 0 : index
    %c0_0 = arith.constant 0 : index
    %0 = vector.load %arg2[%c0, %c0_0] : memref<32x144xbf16, #tpu.memory_space<vmem>>, vector<32x144xbf16>
    %c0_1 = arith.constant 0 : index
    %c0_2 = arith.constant 0 : index
    %1 = vector.load %arg3[%c0_1, %c0_2] : memref<32x1xf32, #tpu.memory_space<vmem>>, vector<32x1xf32>
    %c0_3 = arith.constant 0 : index
    %c0_4 = arith.constant 0 : index
    %2 = vector.load %arg5[%c0_3, %c0_4] : memref<1x128xf32, #tpu.memory_space<vmem>>, vector<1x128xf32>
    %c0_5 = arith.constant 0 : index
    %c0_6 = arith.constant 0 : index
    %c0_7 = arith.constant 0 : index
    %3 = vector.load %arg1[%c0_5, %c0_6, %c0_7] : memref<1x144x1024xbf16, #tpu.memory_space<vmem>>, vector<1x144x1024xbf16>
    %4 = vector.shape_cast %3 : vector<1x144x1024xbf16> to vector<144x1024xbf16>
    %cst = arith.constant dense<0.000000e+00> : vector<32x1024xf32>
    %5 = tpu.matmul %0, %4, %cst {dimension_numbers = #tpu.dot_dimension_numbers<[1], [0], [0], [1], [0, 0, 1, 1], [], []>} : vector<32x144xbf16>, vector<144x1024xbf16>, vector<32x1024xf32> -> vector<32x1024xf32>
    %6 = vector.extract_strided_slice %5 {offsets = [0, 0], sizes = [32, 256], strides = [1, 1]} : vector<32x1024xf32> to vector<32x256xf32>
    %7 = vector.extract_strided_slice %5 {offsets = [0, 256], sizes = [32, 256], strides = [1, 1]} : vector<32x1024xf32> to vector<32x256xf32>
    %8 = arith.maximumf %6, %7 : vector<32x256xf32>
    %9 = vector.extract_strided_slice %5 {offsets = [0, 512], sizes = [32, 256], strides = [1, 1]} : vector<32x1024xf32> to vector<32x256xf32>
    %10 = vector.extract_strided_slice %5 {offsets = [0, 768], sizes = [32, 256], strides = [1, 1]} : vector<32x1024xf32> to vector<32x256xf32>
    %11 = arith.maximumf %9, %10 : vector<32x256xf32>
    %12 = arith.maximumf %8, %11 : vector<32x256xf32>
    %13 = vector.broadcast %1 : vector<32x1xf32> to vector<32x256xf32>
    %14 = arith.addf %12, %13 : vector<32x256xf32>
    %cst_8 = arith.constant 0.000000e+00 : f32
    %15 = vector.broadcast %cst_8 : f32 to vector<32x256xf32>
    %16 = arith.maximumf %14, %15 : vector<32x256xf32>
    %c0_9 = arith.constant 0 : index
    %c0_10 = arith.constant 0 : index
    %17 = vector.load %arg7[%c0_9, %c0_10] : memref<32x256xf32, #tpu.memory_space<vmem>>, vector<32x256xf32>
    tpu.vector_store %arg7[%c0_9, %c0_10], %16 {strides = array<i32>} : memref<32x256xf32, #tpu.memory_space<vmem>>, vector<32x256xf32>,
    %cst_11 = arith.constant 0.000000e+00 : f32
    %18 = vector.broadcast %cst_11 : f32 to vector<1x128xf32>
    %c0_12 = arith.constant 0 : index
    %c0_13 = arith.constant 0 : index
    %19 = vector.load %arg7[%c0_12, %c0_13] : memref<32x256xf32, #tpu.memory_space<vmem>>, vector<1x256xf32>
    %20 = arith.truncf %19 : vector<1x256xf32> to vector<1x256xbf16>
    %c0_14 = arith.constant 0 : index
    %c0_15 = arith.constant 0 : index
    %c0_16 = arith.constant 0 : index
    %21 = vector.load %arg4[%c0_14, %c0_15, %c0_16] : memref<32x256x128xbf16, #tpu.memory_space<vmem>>, vector<1x256x128xbf16>
    %22 = vector.shape_cast %21 : vector<1x256x128xbf16> to vector<256x128xbf16>
    %cst_17 = arith.constant dense<0.000000e+00> : vector<1x128xf32>
    %23 = tpu.matmul %20, %22, %cst_17 {dimension_numbers = #tpu.dot_dimension_numbers<[1], [0], [0], [1], [0, 0, 1, 1], [], []>} : vector<1x256xbf16>, vector<256x128xbf16>, vector<1x128xf32> -> vector<1x128xf32>
    %24 = arith.addf %18, %23 : vector<1x128xf32>
    %c1 = arith.constant 1 : index
    %c0_18 = arith.constant 0 : index
    %25 = vector.load %arg7[%c1, %c0_18] : memref<32x256xf32, #tpu.memory_space<vmem>>, vector<1x256xf32>
    %26 = arith.truncf %25 : vector<1x256xf32> to vector<1x256xbf16>
    %c1_19 = arith.constant 1 : index
    %c0_20 = arith.constant 0 : index
    %c0_21 = arith.constant 0 : index
    %27 = vector.load %arg4[%c1_19, %c0_20, %c0_21] : memref<32x256x128xbf16, #tpu.memory_space<vmem>>, vector<1x256x128xbf16>
    %28 = vector.shape_cast %27 : vector<1x256x128xbf16> to vector<256x128xbf16>
    %cst_22 = arith.constant dense<0.000000e+00> : vector<1x128xf32>
    %29 = tpu.matmul %26, %28, %cst_22 {dimension_numbers = #tpu.dot_dimension_numbers<[1], [0], [0], [1], [0, 0, 1, 1], [], []>} : vector<1x256xbf16>, vector<256x128xbf16>, vector<1x128xf32> -> vector<1x128xf32>
    %30 = arith.addf %24, %29 : vector<1x128xf32>
    %c2 = arith.constant 2 : index
    %c0_23 = arith.constant 0 : index
    %31 = vector.load %arg7[%c2, %c0_23] : memref<32x256xf32, #tpu.memory_space<vmem>>, vector<1x256xf32>
    %32 = arith.truncf %31 : vector<1x256xf32> to vector<1x256xbf16>
    %c2_24 = arith.constant 2 : index
    %c0_25 = arith.constant 0 : index
    %c0_26 = arith.constant 0 : index
    %33 = vector.load %arg4[%c2_24, %c0_25, %c0_26] : memref<32x256x128xbf16, #tpu.memory_space<vmem>>, vector<1x256x128xbf16>
    %34 = vector.shape_cast %33 : vector<1x256x128xbf16> to vector<256x128xbf16>
    %cst_27 = arith.constant dense<0.000000e+00> : vector<1x128xf32>
    %35 = tpu.matmul %32, %34, %cst_27 {dimension_numbers = #tpu.dot_dimension_numbers<[1], [0], [0], [1], [0, 0, 1, 1], [], []>} : vector<1x256xbf16>, vector<256x128xbf16>, vector<1x128xf32> -> vector<1x128xf32>
    %36 = arith.addf %30, %35 : vector<1x128xf32>
    %c3 = arith.constant 3 : index
    %c0_28 = arith.constant 0 : index
    %37 = vector.load %arg7[%c3, %c0_28] : memref<32x256xf32, #tpu.memory_space<vmem>>, vector<1x256xf32>
    %38 = arith.truncf %37 : vector<1x256xf32> to vector<1x256xbf16>
    %c3_29 = arith.constant 3 : index
    %c0_30 = arith.constant 0 : index
    %c0_31 = arith.constant 0 : index
    %39 = vector.load %arg4[%c3_29, %c0_30, %c0_31] : memref<32x256x128xbf16, #tpu.memory_space<vmem>>, vector<1x256x128xbf16>
    %40 = vector.shape_cast %39 : vector<1x256x128xbf16> to vector<256x128xbf16>
    %cst_32 = arith.constant dense<0.000000e+00> : vector<1x128xf32>
    %41 = tpu.matmul %38, %40, %cst_32 {dimension_numbers = #tpu.dot_dimension_numbers<[1], [0], [0], [1], [0, 0, 1, 1], [], []>} : vector<1x256xbf16>, vector<256x128xbf16>, vector<1x128xf32> -> vector<1x128xf32>
    %42 = arith.addf %36, %41 : vector<1x128xf32>
    %c4 = arith.constant 4 : index
    %c0_33 = arith.constant 0 : index
    %43 = vector.load %arg7[%c4, %c0_33] : memref<32x256xf32, #tpu.memory_space<vmem>>, vector<1x256xf32>
    %44 = arith.truncf %43 : vector<1x256xf32> to vector<1x256xbf16>
    %c4_34 = arith.constant 4 : index
    %c0_35 = arith.constant 0 : index
    %c0_36 = arith.constant 0 : index
    %45 = vector.load %arg4[%c4_34, %c0_35, %c0_36] : memref<32x256x128xbf16, #tpu.memory_space<vmem>>, vector<1x256x128xbf16>
    %46 = vector.shape_cast %45 : vector<1x256x128xbf16> to vector<256x128xbf16>
    %cst_37 = arith.constant dense<0.000000e+00> : vector<1x128xf32>
    %47 = tpu.matmul %44, %46, %cst_37 {dimension_numbers = #tpu.dot_dimension_numbers<[1], [0], [0], [1], [0, 0, 1, 1], [], []>} : vector<1x256xbf16>, vector<256x128xbf16>, vector<1x128xf32> -> vector<1x128xf32>
    %48 = arith.addf %42, %47 : vector<1x128xf32>
    %c5 = arith.constant 5 : index
    %c0_38 = arith.constant 0 : index
    %49 = vector.load %arg7[%c5, %c0_38] : memref<32x256xf32, #tpu.memory_space<vmem>>, vector<1x256xf32>
    %50 = arith.truncf %49 : vector<1x256xf32> to vector<1x256xbf16>
    %c5_39 = arith.constant 5 : index
    %c0_40 = arith.constant 0 : index
    %c0_41 = arith.constant 0 : index
    %51 = vector.load %arg4[%c5_39, %c0_40, %c0_41] : memref<32x256x128xbf16, #tpu.memory_space<vmem>>, vector<1x256x128xbf16>
    %52 = vector.shape_cast %51 : vector<1x256x128xbf16> to vector<256x128xbf16>
    %cst_42 = arith.constant dense<0.000000e+00> : vector<1x128xf32>
    %53 = tpu.matmul %50, %52, %cst_42 {dimension_numbers = #tpu.dot_dimension_numbers<[1], [0], [0], [1], [0, 0, 1, 1], [], []>} : vector<1x256xbf16>, vector<256x128xbf16>, vector<1x128xf32> -> vector<1x128xf32>
    %54 = arith.addf %48, %53 : vector<1x128xf32>
    %c6 = arith.constant 6 : index
    %c0_43 = arith.constant 0 : index
    %55 = vector.load %arg7[%c6, %c0_43] : memref<32x256xf32, #tpu.memory_space<vmem>>, vector<1x256xf32>
    %56 = arith.truncf %55 : vector<1x256xf32> to vector<1x256xbf16>
    %c6_44 = arith.constant 6 : index
    %c0_45 = arith.constant 0 : index
    %c0_46 = arith.constant 0 : index
    %57 = vector.load %arg4[%c6_44, %c0_45, %c0_46] : memref<32x256x128xbf16, #tpu.memory_space<vmem>>, vector<1x256x128xbf16>
    %58 = vector.shape_cast %57 : vector<1x256x128xbf16> to vector<256x128xbf16>
    %cst_47 = arith.constant dense<0.000000e+00> : vector<1x128xf32>
    %59 = tpu.matmul %56, %58, %cst_47 {dimension_numbers = #tpu.dot_dimension_numbers<[1], [0], [0], [1], [0, 0, 1, 1], [], []>} : vector<1x256xbf16>, vector<256x128xbf16>, vector<1x128xf32> -> vector<1x128xf32>
    %60 = arith.addf %54, %59 : vector<1x128xf32>
    %c7 = arith.constant 7 : index
    %c0_48 = arith.constant 0 : index
    %61 = vector.load %arg7[%c7, %c0_48] : memref<32x256xf32, #tpu.memory_space<vmem>>, vector<1x256xf32>
    %62 = arith.truncf %61 : vector<1x256xf32> to vector<1x256xbf16>
    %c7_49 = arith.constant 7 : index
    %c0_50 = arith.constant 0 : index
    %c0_51 = arith.constant 0 : index
    %63 = vector.load %arg4[%c7_49, %c0_50, %c0_51] : memref<32x256x128xbf16, #tpu.memory_space<vmem>>, vector<1x256x128xbf16>
    %64 = vector.shape_cast %63 : vector<1x256x128xbf16> to vector<256x128xbf16>
    %cst_52 = arith.constant dense<0.000000e+00> : vector<1x128xf32>
    %65 = tpu.matmul %62, %64, %cst_52 {dimension_numbers = #tpu.dot_dimension_numbers<[1], [0], [0], [1], [0, 0, 1, 1], [], []>} : vector<1x256xbf16>, vector<256x128xbf16>, vector<1x128xf32> -> vector<1x128xf32>
    %66 = arith.addf %60, %65 : vector<1x128xf32>
    %c8 = arith.constant 8 : index
    %c0_53 = arith.constant 0 : index
    %67 = vector.load %arg7[%c8, %c0_53] : memref<32x256xf32, #tpu.memory_space<vmem>>, vector<1x256xf32>
    %68 = arith.truncf %67 : vector<1x256xf32> to vector<1x256xbf16>
    %c8_54 = arith.constant 8 : index
    %c0_55 = arith.constant 0 : index
    %c0_56 = arith.constant 0 : index
    %69 = vector.load %arg4[%c8_54, %c0_55, %c0_56] : memref<32x256x128xbf16, #tpu.memory_space<vmem>>, vector<1x256x128xbf16>
    %70 = vector.shape_cast %69 : vector<1x256x128xbf16> to vector<256x128xbf16>
    %cst_57 = arith.constant dense<0.000000e+00> : vector<1x128xf32>
    %71 = tpu.matmul %68, %70, %cst_57 {dimension_numbers = #tpu.dot_dimension_numbers<[1], [0], [0], [1], [0, 0, 1, 1], [], []>} : vector<1x256xbf16>, vector<256x128xbf16>, vector<1x128xf32> -> vector<1x128xf32>
    %72 = arith.addf %66, %71 : vector<1x128xf32>
    %c9 = arith.constant 9 : index
    %c0_58 = arith.constant 0 : index
    %73 = vector.load %arg7[%c9, %c0_58] : memref<32x256xf32, #tpu.memory_space<vmem>>, vector<1x256xf32>
    %74 = arith.truncf %73 : vector<1x256xf32> to vector<1x256xbf16>
    %c9_59 = arith.constant 9 : index
    %c0_60 = arith.constant 0 : index
    %c0_61 = arith.constant 0 : index
    %75 = vector.load %arg4[%c9_59, %c0_60, %c0_61] : memref<32x256x128xbf16, #tpu.memory_space<vmem>>, vector<1x256x128xbf16>
    %76 = vector.shape_cast %75 : vector<1x256x128xbf16> to vector<256x128xbf16>
    %cst_62 = arith.constant dense<0.000000e+00> : vector<1x128xf32>
    %77 = tpu.matmul %74, %76, %cst_62 {dimension_numbers = #tpu.dot_dimension_numbers<[1], [0], [0], [1], [0, 0, 1, 1], [], []>} : vector<1x256xbf16>, vector<256x128xbf16>, vector<1x128xf32> -> vector<1x128xf32>
    %78 = arith.addf %72, %77 : vector<1x128xf32>
    %c10 = arith.constant 10 : index
    %c0_63 = arith.constant 0 : index
    %79 = vector.load %arg7[%c10, %c0_63] : memref<32x256xf32, #tpu.memory_space<vmem>>, vector<1x256xf32>
    %80 = arith.truncf %79 : vector<1x256xf32> to vector<1x256xbf16>
    %c10_64 = arith.constant 10 : index
    %c0_65 = arith.constant 0 : index
    %c0_66 = arith.constant 0 : index
    %81 = vector.load %arg4[%c10_64, %c0_65, %c0_66] : memref<32x256x128xbf16, #tpu.memory_space<vmem>>, vector<1x256x128xbf16>
    %82 = vector.shape_cast %81 : vector<1x256x128xbf16> to vector<256x128xbf16>
    %cst_67 = arith.constant dense<0.000000e+00> : vector<1x128xf32>
    %83 = tpu.matmul %80, %82, %cst_67 {dimension_numbers = #tpu.dot_dimension_numbers<[1], [0], [0], [1], [0, 0, 1, 1], [], []>} : vector<1x256xbf16>, vector<256x128xbf16>, vector<1x128xf32> -> vector<1x128xf32>
    %84 = arith.addf %78, %83 : vector<1x128xf32>
    %c11 = arith.constant 11 : index
    %c0_68 = arith.constant 0 : index
    %85 = vector.load %arg7[%c11, %c0_68] : memref<32x256xf32, #tpu.memory_space<vmem>>, vector<1x256xf32>
    %86 = arith.truncf %85 : vector<1x256xf32> to vector<1x256xbf16>
    %c11_69 = arith.constant 11 : index
    %c0_70 = arith.constant 0 : index
    %c0_71 = arith.constant 0 : index
    %87 = vector.load %arg4[%c11_69, %c0_70, %c0_71] : memref<32x256x128xbf16, #tpu.memory_space<vmem>>, vector<1x256x128xbf16>
    %88 = vector.shape_cast %87 : vector<1x256x128xbf16> to vector<256x128xbf16>
    %cst_72 = arith.constant dense<0.000000e+00> : vector<1x128xf32>
    %89 = tpu.matmul %86, %88, %cst_72 {dimension_numbers = #tpu.dot_dimension_numbers<[1], [0], [0], [1], [0, 0, 1, 1], [], []>} : vector<1x256xbf16>, vector<256x128xbf16>, vector<1x128xf32> -> vector<1x128xf32>
    %90 = arith.addf %84, %89 : vector<1x128xf32>
    %c12 = arith.constant 12 : index
    %c0_73 = arith.constant 0 : index
    %91 = vector.load %arg7[%c12, %c0_73] : memref<32x256xf32, #tpu.memory_space<vmem>>, vector<1x256xf32>
    %92 = arith.truncf %91 : vector<1x256xf32> to vector<1x256xbf16>
    %c12_74 = arith.constant 12 : index
    %c0_75 = arith.constant 0 : index
    %c0_76 = arith.constant 0 : index
    %93 = vector.load %arg4[%c12_74, %c0_75, %c0_76] : memref<32x256x128xbf16, #tpu.memory_space<vmem>>, vector<1x256x128xbf16>
    %94 = vector.shape_cast %93 : vector<1x256x128xbf16> to vector<256x128xbf16>
    %cst_77 = arith.constant dense<0.000000e+00> : vector<1x128xf32>
    %95 = tpu.matmul %92, %94, %cst_77 {dimension_numbers = #tpu.dot_dimension_numbers<[1], [0], [0], [1], [0, 0, 1, 1], [], []>} : vector<1x256xbf16>, vector<256x128xbf16>, vector<1x128xf32> -> vector<1x128xf32>
    %96 = arith.addf %90, %95 : vector<1x128xf32>
    %c13 = arith.constant 13 : index
    %c0_78 = arith.constant 0 : index
    %97 = vector.load %arg7[%c13, %c0_78] : memref<32x256xf32, #tpu.memory_space<vmem>>, vector<1x256xf32>
    %98 = arith.truncf %97 : vector<1x256xf32> to vector<1x256xbf16>
    %c13_79 = arith.constant 13 : index
    %c0_80 = arith.constant 0 : index
    %c0_81 = arith.constant 0 : index
    %99 = vector.load %arg4[%c13_79, %c0_80, %c0_81] : memref<32x256x128xbf16, #tpu.memory_space<vmem>>, vector<1x256x128xbf16>
    %100 = vector.shape_cast %99 : vector<1x256x128xbf16> to vector<256x128xbf16>
    %cst_82 = arith.constant dense<0.000000e+00> : vector<1x128xf32>
    %101 = tpu.matmul %98, %100, %cst_82 {dimension_numbers = #tpu.dot_dimension_numbers<[1], [0], [0], [1], [0, 0, 1, 1], [], []>} : vector<1x256xbf16>, vector<256x128xbf16>, vector<1x128xf32> -> vector<1x128xf32>
    %102 = arith.addf %96, %101 : vector<1x128xf32>
    %c14 = arith.constant 14 : index
    %c0_83 = arith.constant 0 : index
    %103 = vector.load %arg7[%c14, %c0_83] : memref<32x256xf32, #tpu.memory_space<vmem>>, vector<1x256xf32>
    %104 = arith.truncf %103 : vector<1x256xf32> to vector<1x256xbf16>
    %c14_84 = arith.constant 14 : index
    %c0_85 = arith.constant 0 : index
    %c0_86 = arith.constant 0 : index
    %105 = vector.load %arg4[%c14_84, %c0_85, %c0_86] : memref<32x256x128xbf16, #tpu.memory_space<vmem>>, vector<1x256x128xbf16>
    %106 = vector.shape_cast %105 : vector<1x256x128xbf16> to vector<256x128xbf16>
    %cst_87 = arith.constant dense<0.000000e+00> : vector<1x128xf32>
    %107 = tpu.matmul %104, %106, %cst_87 {dimension_numbers = #tpu.dot_dimension_numbers<[1], [0], [0], [1], [0, 0, 1, 1], [], []>} : vector<1x256xbf16>, vector<256x128xbf16>, vector<1x128xf32> -> vector<1x128xf32>
    %108 = arith.addf %102, %107 : vector<1x128xf32>
    %c15 = arith.constant 15 : index
    %c0_88 = arith.constant 0 : index
    %109 = vector.load %arg7[%c15, %c0_88] : memref<32x256xf32, #tpu.memory_space<vmem>>, vector<1x256xf32>
    %110 = arith.truncf %109 : vector<1x256xf32> to vector<1x256xbf16>
    %c15_89 = arith.constant 15 : index
    %c0_90 = arith.constant 0 : index
    %c0_91 = arith.constant 0 : index
    %111 = vector.load %arg4[%c15_89, %c0_90, %c0_91] : memref<32x256x128xbf16, #tpu.memory_space<vmem>>, vector<1x256x128xbf16>
    %112 = vector.shape_cast %111 : vector<1x256x128xbf16> to vector<256x128xbf16>
    %cst_92 = arith.constant dense<0.000000e+00> : vector<1x128xf32>
    %113 = tpu.matmul %110, %112, %cst_92 {dimension_numbers = #tpu.dot_dimension_numbers<[1], [0], [0], [1], [0, 0, 1, 1], [], []>} : vector<1x256xbf16>, vector<256x128xbf16>, vector<1x128xf32> -> vector<1x128xf32>
    %114 = arith.addf %108, %113 : vector<1x128xf32>
    %c16 = arith.constant 16 : index
    %c0_93 = arith.constant 0 : index
    %115 = vector.load %arg7[%c16, %c0_93] : memref<32x256xf32, #tpu.memory_space<vmem>>, vector<1x256xf32>
    %116 = arith.truncf %115 : vector<1x256xf32> to vector<1x256xbf16>
    %c16_94 = arith.constant 16 : index
    %c0_95 = arith.constant 0 : index
    %c0_96 = arith.constant 0 : index
    %117 = vector.load %arg4[%c16_94, %c0_95, %c0_96] : memref<32x256x128xbf16, #tpu.memory_space<vmem>>, vector<1x256x128xbf16>
    %118 = vector.shape_cast %117 : vector<1x256x128xbf16> to vector<256x128xbf16>
    %cst_97 = arith.constant dense<0.000000e+00> : vector<1x128xf32>
    %119 = tpu.matmul %116, %118, %cst_97 {dimension_numbers = #tpu.dot_dimension_numbers<[1], [0], [0], [1], [0, 0, 1, 1], [], []>} : vector<1x256xbf16>, vector<256x128xbf16>, vector<1x128xf32> -> vector<1x128xf32>
    %120 = arith.addf %114, %119 : vector<1x128xf32>
    %c17 = arith.constant 17 : index
    %c0_98 = arith.constant 0 : index
    %121 = vector.load %arg7[%c17, %c0_98] : memref<32x256xf32, #tpu.memory_space<vmem>>, vector<1x256xf32>
    %122 = arith.truncf %121 : vector<1x256xf32> to vector<1x256xbf16>
    %c17_99 = arith.constant 17 : index
    %c0_100 = arith.constant 0 : index
    %c0_101 = arith.constant 0 : index
    %123 = vector.load %arg4[%c17_99, %c0_100, %c0_101] : memref<32x256x128xbf16, #tpu.memory_space<vmem>>, vector<1x256x128xbf16>
    %124 = vector.shape_cast %123 : vector<1x256x128xbf16> to vector<256x128xbf16>
    %cst_102 = arith.constant dense<0.000000e+00> : vector<1x128xf32>
    %125 = tpu.matmul %122, %124, %cst_102 {dimension_numbers = #tpu.dot_dimension_numbers<[1], [0], [0], [1], [0, 0, 1, 1], [], []>} : vector<1x256xbf16>, vector<256x128xbf16>, vector<1x128xf32> -> vector<1x128xf32>
    %126 = arith.addf %120, %125 : vector<1x128xf32>
    %c18 = arith.constant 18 : index
    %c0_103 = arith.constant 0 : index
    %127 = vector.load %arg7[%c18, %c0_103] : memref<32x256xf32, #tpu.memory_space<vmem>>, vector<1x256xf32>
    %128 = arith.truncf %127 : vector<1x256xf32> to vector<1x256xbf16>
    %c18_104 = arith.constant 18 : index
    %c0_105 = arith.constant 0 : index
    %c0_106 = arith.constant 0 : index
    %129 = vector.load %arg4[%c18_104, %c0_105, %c0_106] : memref<32x256x128xbf16, #tpu.memory_space<vmem>>, vector<1x256x128xbf16>
    %130 = vector.shape_cast %129 : vector<1x256x128xbf16> to vector<256x128xbf16>
    %cst_107 = arith.constant dense<0.000000e+00> : vector<1x128xf32>
    %131 = tpu.matmul %128, %130, %cst_107 {dimension_numbers = #tpu.dot_dimension_numbers<[1], [0], [0], [1], [0, 0, 1, 1], [], []>} : vector<1x256xbf16>, vector<256x128xbf16>, vector<1x128xf32> -> vector<1x128xf32>
    %132 = arith.addf %126, %131 : vector<1x128xf32>
    %c19 = arith.constant 19 : index
    %c0_108 = arith.constant 0 : index
    %133 = vector.load %arg7[%c19, %c0_108] : memref<32x256xf32, #tpu.memory_space<vmem>>, vector<1x256xf32>
    %134 = arith.truncf %133 : vector<1x256xf32> to vector<1x256xbf16>
    %c19_109 = arith.constant 19 : index
    %c0_110 = arith.constant 0 : index
    %c0_111 = arith.constant 0 : index
    %135 = vector.load %arg4[%c19_109, %c0_110, %c0_111] : memref<32x256x128xbf16, #tpu.memory_space<vmem>>, vector<1x256x128xbf16>
    %136 = vector.shape_cast %135 : vector<1x256x128xbf16> to vector<256x128xbf16>
    %cst_112 = arith.constant dense<0.000000e+00> : vector<1x128xf32>
    %137 = tpu.matmul %134, %136, %cst_112 {dimension_numbers = #tpu.dot_dimension_numbers<[1], [0], [0], [1], [0, 0, 1, 1], [], []>} : vector<1x256xbf16>, vector<256x128xbf16>, vector<1x128xf32> -> vector<1x128xf32>
    %138 = arith.addf %132, %137 : vector<1x128xf32>
    %c20 = arith.constant 20 : index
    %c0_113 = arith.constant 0 : index
    %139 = vector.load %arg7[%c20, %c0_113] : memref<32x256xf32, #tpu.memory_space<vmem>>, vector<1x256xf32>
    %140 = arith.truncf %139 : vector<1x256xf32> to vector<1x256xbf16>
    %c20_114 = arith.constant 20 : index
    %c0_115 = arith.constant 0 : index
    %c0_116 = arith.constant 0 : index
    %141 = vector.load %arg4[%c20_114, %c0_115, %c0_116] : memref<32x256x128xbf16, #tpu.memory_space<vmem>>, vector<1x256x128xbf16>
    %142 = vector.shape_cast %141 : vector<1x256x128xbf16> to vector<256x128xbf16>
    %cst_117 = arith.constant dense<0.000000e+00> : vector<1x128xf32>
    %143 = tpu.matmul %140, %142, %cst_117 {dimension_numbers = #tpu.dot_dimension_numbers<[1], [0], [0], [1], [0, 0, 1, 1], [], []>} : vector<1x256xbf16>, vector<256x128xbf16>, vector<1x128xf32> -> vector<1x128xf32>
    %144 = arith.addf %138, %143 : vector<1x128xf32>
    %c21 = arith.constant 21 : index
    %c0_118 = arith.constant 0 : index
    %145 = vector.load %arg7[%c21, %c0_118] : memref<32x256xf32, #tpu.memory_space<vmem>>, vector<1x256xf32>
    %146 = arith.truncf %145 : vector<1x256xf32> to vector<1x256xbf16>
    %c21_119 = arith.constant 21 : index
    %c0_120 = arith.constant 0 : index
    %c0_121 = arith.constant 0 : index
    %147 = vector.load %arg4[%c21_119, %c0_120, %c0_121] : memref<32x256x128xbf16, #tpu.memory_space<vmem>>, vector<1x256x128xbf16>
    %148 = vector.shape_cast %147 : vector<1x256x128xbf16> to vector<256x128xbf16>
    %cst_122 = arith.constant dense<0.000000e+00> : vector<1x128xf32>
    %149 = tpu.matmul %146, %148, %cst_122 {dimension_numbers = #tpu.dot_dimension_numbers<[1], [0], [0], [1], [0, 0, 1, 1], [], []>} : vector<1x256xbf16>, vector<256x128xbf16>, vector<1x128xf32> -> vector<1x128xf32>
    %150 = arith.addf %144, %149 : vector<1x128xf32>
    %c22 = arith.constant 22 : index
    %c0_123 = arith.constant 0 : index
    %151 = vector.load %arg7[%c22, %c0_123] : memref<32x256xf32, #tpu.memory_space<vmem>>, vector<1x256xf32>
    %152 = arith.truncf %151 : vector<1x256xf32> to vector<1x256xbf16>
    %c22_124 = arith.constant 22 : index
    %c0_125 = arith.constant 0 : index
    %c0_126 = arith.constant 0 : index
    %153 = vector.load %arg4[%c22_124, %c0_125, %c0_126] : memref<32x256x128xbf16, #tpu.memory_space<vmem>>, vector<1x256x128xbf16>
    %154 = vector.shape_cast %153 : vector<1x256x128xbf16> to vector<256x128xbf16>
    %cst_127 = arith.constant dense<0.000000e+00> : vector<1x128xf32>
    %155 = tpu.matmul %152, %154, %cst_127 {dimension_numbers = #tpu.dot_dimension_numbers<[1], [0], [0], [1], [0, 0, 1, 1], [], []>} : vector<1x256xbf16>, vector<256x128xbf16>, vector<1x128xf32> -> vector<1x128xf32>
    %156 = arith.addf %150, %155 : vector<1x128xf32>
    %c23 = arith.constant 23 : index
    %c0_128 = arith.constant 0 : index
    %157 = vector.load %arg7[%c23, %c0_128] : memref<32x256xf32, #tpu.memory_space<vmem>>, vector<1x256xf32>
    %158 = arith.truncf %157 : vector<1x256xf32> to vector<1x256xbf16>
    %c23_129 = arith.constant 23 : index
    %c0_130 = arith.constant 0 : index
    %c0_131 = arith.constant 0 : index
    %159 = vector.load %arg4[%c23_129, %c0_130, %c0_131] : memref<32x256x128xbf16, #tpu.memory_space<vmem>>, vector<1x256x128xbf16>
    %160 = vector.shape_cast %159 : vector<1x256x128xbf16> to vector<256x128xbf16>
    %cst_132 = arith.constant dense<0.000000e+00> : vector<1x128xf32>
    %161 = tpu.matmul %158, %160, %cst_132 {dimension_numbers = #tpu.dot_dimension_numbers<[1], [0], [0], [1], [0, 0, 1, 1], [], []>} : vector<1x256xbf16>, vector<256x128xbf16>, vector<1x128xf32> -> vector<1x128xf32>
    %162 = arith.addf %156, %161 : vector<1x128xf32>
    %c24 = arith.constant 24 : index
    %c0_133 = arith.constant 0 : index
    %163 = vector.load %arg7[%c24, %c0_133] : memref<32x256xf32, #tpu.memory_space<vmem>>, vector<1x256xf32>
    %164 = arith.truncf %163 : vector<1x256xf32> to vector<1x256xbf16>
    %c24_134 = arith.constant 24 : index
    %c0_135 = arith.constant 0 : index
    %c0_136 = arith.constant 0 : index
    %165 = vector.load %arg4[%c24_134, %c0_135, %c0_136] : memref<32x256x128xbf16, #tpu.memory_space<vmem>>, vector<1x256x128xbf16>
    %166 = vector.shape_cast %165 : vector<1x256x128xbf16> to vector<256x128xbf16>
    %cst_137 = arith.constant dense<0.000000e+00> : vector<1x128xf32>
    %167 = tpu.matmul %164, %166, %cst_137 {dimension_numbers = #tpu.dot_dimension_numbers<[1], [0], [0], [1], [0, 0, 1, 1], [], []>} : vector<1x256xbf16>, vector<256x128xbf16>, vector<1x128xf32> -> vector<1x128xf32>
    %168 = arith.addf %162, %167 : vector<1x128xf32>
    %c25 = arith.constant 25 : index
    %c0_138 = arith.constant 0 : index
    %169 = vector.load %arg7[%c25, %c0_138] : memref<32x256xf32, #tpu.memory_space<vmem>>, vector<1x256xf32>
    %170 = arith.truncf %169 : vector<1x256xf32> to vector<1x256xbf16>
    %c25_139 = arith.constant 25 : index
    %c0_140 = arith.constant 0 : index
    %c0_141 = arith.constant 0 : index
    %171 = vector.load %arg4[%c25_139, %c0_140, %c0_141] : memref<32x256x128xbf16, #tpu.memory_space<vmem>>, vector<1x256x128xbf16>
    %172 = vector.shape_cast %171 : vector<1x256x128xbf16> to vector<256x128xbf16>
    %cst_142 = arith.constant dense<0.000000e+00> : vector<1x128xf32>
    %173 = tpu.matmul %170, %172, %cst_142 {dimension_numbers = #tpu.dot_dimension_numbers<[1], [0], [0], [1], [0, 0, 1, 1], [], []>} : vector<1x256xbf16>, vector<256x128xbf16>, vector<1x128xf32> -> vector<1x128xf32>
    %174 = arith.addf %168, %173 : vector<1x128xf32>
    %c26 = arith.constant 26 : index
    %c0_143 = arith.constant 0 : index
    %175 = vector.load %arg7[%c26, %c0_143] : memref<32x256xf32, #tpu.memory_space<vmem>>, vector<1x256xf32>
    %176 = arith.truncf %175 : vector<1x256xf32> to vector<1x256xbf16>
    %c26_144 = arith.constant 26 : index
    %c0_145 = arith.constant 0 : index
    %c0_146 = arith.constant 0 : index
    %177 = vector.load %arg4[%c26_144, %c0_145, %c0_146] : memref<32x256x128xbf16, #tpu.memory_space<vmem>>, vector<1x256x128xbf16>
    %178 = vector.shape_cast %177 : vector<1x256x128xbf16> to vector<256x128xbf16>
    %cst_147 = arith.constant dense<0.000000e+00> : vector<1x128xf32>
    %179 = tpu.matmul %176, %178, %cst_147 {dimension_numbers = #tpu.dot_dimension_numbers<[1], [0], [0], [1], [0, 0, 1, 1], [], []>} : vector<1x256xbf16>, vector<256x128xbf16>, vector<1x128xf32> -> vector<1x128xf32>
    %180 = arith.addf %174, %179 : vector<1x128xf32>
    %c27 = arith.constant 27 : index
    %c0_148 = arith.constant 0 : index
    %181 = vector.load %arg7[%c27, %c0_148] : memref<32x256xf32, #tpu.memory_space<vmem>>, vector<1x256xf32>
    %182 = arith.truncf %181 : vector<1x256xf32> to vector<1x256xbf16>
    %c27_149 = arith.constant 27 : index
    %c0_150 = arith.constant 0 : index
    %c0_151 = arith.constant 0 : index
    %183 = vector.load %arg4[%c27_149, %c0_150, %c0_151] : memref<32x256x128xbf16, #tpu.memory_space<vmem>>, vector<1x256x128xbf16>
    %184 = vector.shape_cast %183 : vector<1x256x128xbf16> to vector<256x128xbf16>
    %cst_152 = arith.constant dense<0.000000e+00> : vector<1x128xf32>
    %185 = tpu.matmul %182, %184, %cst_152 {dimension_numbers = #tpu.dot_dimension_numbers<[1], [0], [0], [1], [0, 0, 1, 1], [], []>} : vector<1x256xbf16>, vector<256x128xbf16>, vector<1x128xf32> -> vector<1x128xf32>
    %186 = arith.addf %180, %185 : vector<1x128xf32>
    %c28 = arith.constant 28 : index
    %c0_153 = arith.constant 0 : index
    %187 = vector.load %arg7[%c28, %c0_153] : memref<32x256xf32, #tpu.memory_space<vmem>>, vector<1x256xf32>
    %188 = arith.truncf %187 : vector<1x256xf32> to vector<1x256xbf16>
    %c28_154 = arith.constant 28 : index
    %c0_155 = arith.constant 0 : index
    %c0_156 = arith.constant 0 : index
    %189 = vector.load %arg4[%c28_154, %c0_155, %c0_156] : memref<32x256x128xbf16, #tpu.memory_space<vmem>>, vector<1x256x128xbf16>
    %190 = vector.shape_cast %189 : vector<1x256x128xbf16> to vector<256x128xbf16>
    %cst_157 = arith.constant dense<0.000000e+00> : vector<1x128xf32>
    %191 = tpu.matmul %188, %190, %cst_157 {dimension_numbers = #tpu.dot_dimension_numbers<[1], [0], [0], [1], [0, 0, 1, 1], [], []>} : vector<1x256xbf16>, vector<256x128xbf16>, vector<1x128xf32> -> vector<1x128xf32>
    %192 = arith.addf %186, %191 : vector<1x128xf32>
    %c29 = arith.constant 29 : index
    %c0_158 = arith.constant 0 : index
    %193 = vector.load %arg7[%c29, %c0_158] : memref<32x256xf32, #tpu.memory_space<vmem>>, vector<1x256xf32>
    %194 = arith.truncf %193 : vector<1x256xf32> to vector<1x256xbf16>
    %c29_159 = arith.constant 29 : index
    %c0_160 = arith.constant 0 : index
    %c0_161 = arith.constant 0 : index
    %195 = vector.load %arg4[%c29_159, %c0_160, %c0_161] : memref<32x256x128xbf16, #tpu.memory_space<vmem>>, vector<1x256x128xbf16>
    %196 = vector.shape_cast %195 : vector<1x256x128xbf16> to vector<256x128xbf16>
    %cst_162 = arith.constant dense<0.000000e+00> : vector<1x128xf32>
    %197 = tpu.matmul %194, %196, %cst_162 {dimension_numbers = #tpu.dot_dimension_numbers<[1], [0], [0], [1], [0, 0, 1, 1], [], []>} : vector<1x256xbf16>, vector<256x128xbf16>, vector<1x128xf32> -> vector<1x128xf32>
    %198 = arith.addf %192, %197 : vector<1x128xf32>
    %c30 = arith.constant 30 : index
    %c0_163 = arith.constant 0 : index
    %199 = vector.load %arg7[%c30, %c0_163] : memref<32x256xf32, #tpu.memory_space<vmem>>, vector<1x256xf32>
    %200 = arith.truncf %199 : vector<1x256xf32> to vector<1x256xbf16>
    %c30_164 = arith.constant 30 : index
    %c0_165 = arith.constant 0 : index
    %c0_166 = arith.constant 0 : index
    %201 = vector.load %arg4[%c30_164, %c0_165, %c0_166] : memref<32x256x128xbf16, #tpu.memory_space<vmem>>, vector<1x256x128xbf16>
    %202 = vector.shape_cast %201 : vector<1x256x128xbf16> to vector<256x128xbf16>
    %cst_167 = arith.constant dense<0.000000e+00> : vector<1x128xf32>
    %203 = tpu.matmul %200, %202, %cst_167 {dimension_numbers = #tpu.dot_dimension_numbers<[1], [0], [0], [1], [0, 0, 1, 1], [], []>} : vector<1x256xbf16>, vector<256x128xbf16>, vector<1x128xf32> -> vector<1x128xf32>
    %204 = arith.addf %198, %203 : vector<1x128xf32>
    %c31 = arith.constant 31 : index
    %c0_168 = arith.constant 0 : index
    %205 = vector.load %arg7[%c31, %c0_168] : memref<32x256xf32, #tpu.memory_space<vmem>>, vector<1x256xf32>
    %206 = arith.truncf %205 : vector<1x256xf32> to vector<1x256xbf16>
    %c31_169 = arith.constant 31 : index
    %c0_170 = arith.constant 0 : index
    %c0_171 = arith.constant 0 : index
    %207 = vector.load %arg4[%c31_169, %c0_170, %c0_171] : memref<32x256x128xbf16, #tpu.memory_space<vmem>>, vector<1x256x128xbf16>
    %208 = vector.shape_cast %207 : vector<1x256x128xbf16> to vector<256x128xbf16>
    %cst_172 = arith.constant dense<0.000000e+00> : vector<1x128xf32>
    %209 = tpu.matmul %206, %208, %cst_172 {dimension_numbers = #tpu.dot_dimension_numbers<[1], [0], [0], [1], [0, 0, 1, 1], [], []>} : vector<1x256xbf16>, vector<256x128xbf16>, vector<1x128xf32> -> vector<1x128xf32>
    %210 = arith.addf %204, %209 : vector<1x128xf32>
    %211 = arith.addf %210, %2 : vector<1x128xf32>
    %cst_173 = arith.constant 0.000000e+00 : f32
    %212 = vector.broadcast %cst_173 : f32 to vector<1x128xf32>
    %213 = arith.maximumf %211, %212 : vector<1x128xf32>
    %c0_174 = arith.constant 0 : index
    %c0_175 = arith.constant 0 : index
    %c0_176 = arith.constant 0 : index
    %214 = vector.load %arg6[%c0_174, %c0_175, %c0_176] : memref<1x1x128xf32, #tpu.memory_space<vmem>>, vector<1x1x128xf32>
    %215 = vector.shape_cast %214 : vector<1x1x128xf32> to vector<1x128xf32>
    %216 = vector.shape_cast %213 : vector<1x128xf32> to vector<1x1x128xf32>
    tpu.vector_store %arg6[%c0_174, %c0_175, %c0_176], %216 {strides = array<i32>} : memref<1x1x128xf32, #tpu.memory_space<vmem>>, vector<1x1x128xf32>,
    return
  }
  func.func @transform_0(%arg0: i32) -> (i32, i32, i32) {
    %c0_i32 = arith.constant 0 : i32
    %c0_i32_0 = arith.constant 0 : i32
    %c0_i32_1 = arith.constant 0 : i32
    return %arg0, %c0_i32, %c0_i32_0 : i32, i32, i32
  }
  func.func @transform_1(%arg0: i32) -> (i32, i32) {
    %c0_i32 = arith.constant 0 : i32
    %c0_i32_0 = arith.constant 0 : i32
    %c0_i32_1 = arith.constant 0 : i32
    return %c0_i32, %c0_i32_0 : i32, i32
  }
  func.func @transform_2(%arg0: i32) -> (i32, i32) {
    %c0_i32 = arith.constant 0 : i32
    %c0_i32_0 = arith.constant 0 : i32
    %c0_i32_1 = arith.constant 0 : i32
    return %c0_i32, %c0_i32_0 : i32, i32
  }
  func.func @transform_3(%arg0: i32) -> (i32, i32, i32) {
    %c0_i32 = arith.constant 0 : i32
    %c0_i32_0 = arith.constant 0 : i32
    %c0_i32_1 = arith.constant 0 : i32
    %c0_i32_2 = arith.constant 0 : i32
    return %c0_i32, %c0_i32_0, %c0_i32_1 : i32, i32, i32
  }
  func.func @transform_4(%arg0: i32) -> (i32, i32) {
    %c0_i32 = arith.constant 0 : i32
    %c0_i32_0 = arith.constant 0 : i32
    %c0_i32_1 = arith.constant 0 : i32
    return %c0_i32, %c0_i32_0 : i32, i32
  }
  func.func @transform_5(%arg0: i32) -> (i32, i32, i32) {
    %c0_i32 = arith.constant 0 : i32
    %c0_i32_0 = arith.constant 0 : i32
    %c0_i32_1 = arith.constant 0 : i32
    return %arg0, %c0_i32, %c0_i32_0 : i32, i32, i32
  }
}

</mosaic_0001>

<bundles_post_ra>
// kernel: simple_tooth_cnn_forward.2
= control target key start
LH: loop header
LB: loop body
LE: loop exit
PB: predicated region body
PF: predicated region fallthrough
CT: control target
= control target key end

     0   :  { %s1736_s12 = smov 0   ;;  %s2024_s0 = inlined_call_operand.vmem [shape: bf16[2,32,4096], index: 0, kind: input, shape index: {}]   ;;  %s2025_s1 = inlined_call_operand.vmem [shape: bf16[16,32], index: 1, kind: input, shape index: {}]   ;;  %s2026_s2 = inlined_call_operand.vmem [shape: f32[16,1], index: 2, kind: input, shape index: {}]   ;;  %s2027_s3 = inlined_call_operand.vmem [shape: bf16[2,16,1024], index: 3, kind: output, shape index: {}]  }
   0x1 LB: > { %s1586_s13 = sadd.s32 4294967295, %s1713_s12   ;;  %p1590_p0 = scmp.ge.s32.totalorder %s1713_s12, 1  ;;  %s1713_s12 = sphi %s1736_s12, %s13_s12  }
   0x2   : > { %p137_p1 = scmp.lt.s32.totalorder %s1713_s12, 3 }
   0x4   : > { %p138_p2 = pnand %p1590_p0, %p137_p1 }
   0x5   : > { %p161_p3 = scmp.lt.s32.totalorder (!%p138_p2), %s1586_s13, 1 }
   0x6   : > { %141 = sbr.rel (%p138_p2) target bundleno = 294 (0x126), region = 32 }
   0xb   : > { %v1715_v0 = vmov 0   ;;  %v174_v1 = vld [vmem:[%s2026_s2] sm:$0xff]  ;;  %s2029_s13 = smov (!%p161_p3, %s1586_s13), 1  ;;  %v175_v2 = vld [vmem:[%s2026_s2 + $0x8] sm:$0xff]  ;;  %vm565_vm0 = vcmask 261120  }
   0xc   : > { %601 = vmatprep.mubr.bf16.mxu0 %v1715_v0  ;;  %644 = vmatprep.mubr.bf16.mxu1 %v1715_v0  ;;  %s1686_s16 = sshll.u32 %s2029_s13, 9  ;;  %v1778_v27 = vld [vmem:[%s2025_s1] sm:$0xff]   ;;  %s1687_s24 = sshll.u32 %s2029_s13, 6 }
   0xd   : > { %1705 = vset.pattern.permute.xlu0 %v1715_v0  ;;  %s1759_s21 = scalar_lea.vmem %s2024_s0, %s1686_s16  ;;  %s1989_s27 = scalar_lea.vmem %s2027_s3, %s1687_s24 }
   0xe   : > { %1435 = vperm.xlu0 %1705, %v174_v1   ;;  %v208_v3 = vld [vmem:[%s1759_s21 + $0x100] sm:$0xff]  ;;  %v209_v5 = vld [vmem:[%s1759_s21 + $0x108] sm:$0xff]  ;;  %v210_v16 = vld [vmem:[%s1759_s21 + $0x110] sm:$0xff] }
   0xf   : > { %v224_v4 = vld [vmem:[%s1759_s21 + $0x180] sm:$0xff]  ;;  %v225_v7 = vld [vmem:[%s1759_s21 + $0x188] sm:$0xff]  ;;  %v226_v18 = vld [vmem:[%s1759_s21 + $0x190] sm:$0xff] }
  0x10   : > { %v1629_v6 = vcombine.high %v208_v3, %v224_v4  ;;  %v1628_v8 = vcombine.low %v208_v3, %v224_v4  ;;  %v176_v9 = vld [vmem:[%s1759_s21] sm:$0xff]  ;;  %v1631_v11 = vcombine.high %v209_v5, %v225_v7  ;;  %v1630_v12 = vcombine.low %v209_v5, %v225_v7  ;;  %v177_v14 = vld [vmem:[%s1759_s21 + $0x8] sm:$0xff]  ;;  %v211_v19 = vld [vmem:[%s1759_s21 + $0x118] sm:$0xff] }
  0x11   : > { %v192_v10 = vld [vmem:[%s1759_s21 + $0x80] sm:$0xff]  ;;  %v193_v15 = vld [vmem:[%s1759_s21 + $0x88] sm:$0xff]  ;;  %v227_v20 = vld [vmem:[%s1759_s21 + $0x198] sm:$0xff]  ;;  %v1633_v23 = vcombine.high %v210_v16, %v226_v18  ;;  %v1632_v30 = vcombine.low %v210_v16, %v226_v18 }
  0x12   : > { %1440 = vperm.xlu0 %1705, %v175_v2   ;;  %v1597_v13 = vcombine.high %v176_v9, %v192_v10  ;;  %581 = vmatprep.subr.bf16.mxu0 %v1629_v6  ;;  %v1599_v17 = vcombine.high %v177_v14, %v193_v15  ;;  %v1596_v21 = vcombine.low %v176_v9, %v192_v10  ;;  %v178_v25 = vld [vmem:[%s1759_s21 + $0x10] sm:$0xff]  ;;  %v179_v28 = vld [vmem:[%s1759_s21 + $0x18] sm:$0xff]  ;;  %v212_v34 = vld [vmem:[%s1759_s21 + $0x120] sm:$0xff] }
  0x13   : > { %624 = vmatprep.subr.bf16.mxu1 %v1631_v11  ;;  %582 = vmatpush1.bf16.msra.mxu0 %v1628_v8  ;;  %v1598_v22 = vcombine.low %v177_v14, %v193_v15  ;;  %v1635_v24 = vcombine.high %v211_v19, %v227_v20  ;;  %v194_v26 = vld [vmem:[%s1759_s21 + $0x90] sm:$0xff]  ;;  %v195_v29 = vld [vmem:[%s1759_s21 + $0x98] sm:$0xff]  ;;  %v1634_v31 = vcombine.low %v211_v19, %v227_v20  ;;  %v228_v35 = vld [vmem:[%s1759_s21 + $0x1a0] sm:$0xff] }
  0x14   : > { %625 = vmatpush1.bf16.msra.mxu1 %v1630_v12  ;;  %583 = vmatprep.subr.bf16.mxu0 %v1597_v13  ;;  %v1601_v32 = vcombine.high %v178_v25, %v194_v26  ;;  %v1603_v33 = vcombine.high %v179_v28, %v195_v29  ;;  %v213_v36 = vld [vmem:[%s1759_s21 + $0x128] sm:$0xff]  ;;  %v1600_v38 = vcombine.low %v178_v25, %v194_v26  ;;  %v180_v42 = vld [vmem:[%s1759_s21 + $0x20] sm:$0xff]  ;;  %v214_v50 = vld [vmem:[%s1759_s21 + $0x130] sm:$0xff] }
  0x15   : > { %626 = vmatprep.subr.bf16.mxu1 %v1599_v17  ;;  %v229_v37 = vld [vmem:[%s1759_s21 + $0x1a8] sm:$0xff]  ;;  %v1602_v39 = vcombine.low %v179_v28, %v195_v29  ;;  %v1637_v40 = vcombine.high %v212_v34, %v228_v35  ;;  %v196_v43 = vld [vmem:[%s1759_s21 + $0xa0] sm:$0xff]  ;;  %v1636_v46 = vcombine.low %v212_v34, %v228_v35  ;;  %v230_v51 = vld [vmem:[%s1759_s21 + $0x1b0] sm:$0xff] }
  0x16   : > { %v1639_v41 = vcombine.high %v213_v36, %v229_v37  ;;  %v181_v44 = vld [vmem:[%s1759_s21 + $0x28] sm:$0xff]  ;;  %v1638_v47 = vcombine.low %v213_v36, %v229_v37  ;;  %v1605_v48 = vcombine.high %v180_v42, %v196_v43  ;;  %v215_v52 = vld [vmem:[%s1759_s21 + $0x138] sm:$0xff]  ;;  %v1604_v54 = vcombine.low %v180_v42, %v196_v43  ;;  %v182_v58 = vld [vmem:[%s1759_s21 + $0x30] sm:$0xff] }
  0x17   : > { %584 = vmatpush1.bf16.msra.mxu0 %v1596_v21  ;;  %v197_v45 = vld [vmem:[%s1759_s21 + $0xa8] sm:$0xff]  ;;  %v231_v53 = vld [vmem:[%s1759_s21 + $0x1b8] sm:$0xff]  ;;  %v1641_v56 = vcombine.high %v214_v50, %v230_v51  ;;  %v198_v59 = vld [vmem:[%s1759_s21 + $0xb0] sm:$0xff]  ;;  %v1640_v62 = vcombine.low %v214_v50, %v230_v51 }
  0x18   : > { %627 = vmatpush1.bf16.msra.mxu1 %v1598_v22  ;;  %667 = vmatprep.subr.bf16.mxu0 %v1633_v23  ;;  %v1607_v49 = vcombine.high %v181_v44, %v197_v45  ;;  %v1606_v55 = vcombine.low %v181_v44, %v197_v45  ;;  %v1643_v57 = vcombine.high %v215_v52, %v231_v53  ;;  %v183_v60 = vld [vmem:[%s1759_s21 + $0x38] sm:$0xff]  ;;  %v216_v3 = vld [vmem:[%s1759_s21 + $0x140] sm:$0xff]  ;;  %v217_v5 = vld [vmem:[%s1759_s21 + $0x148] sm:$0xff] }
  0x19   : > { %710 = vmatprep.subr.bf16.mxu1 %v1635_v24  ;;  %v199_v61 = vld [vmem:[%s1759_s21 + $0xb8] sm:$0xff]  ;;  %v1642_v63 = vcombine.low %v215_v52, %v231_v53  ;;  %v1609_v1 = vcombine.high %v182_v58, %v198_v59  ;;  %v232_v4 = vld [vmem:[%s1759_s21 + $0x1c0] sm:$0xff]  ;;  %v233_v6 = vld [vmem:[%s1759_s21 + $0x1c8] sm:$0xff]  ;;  %v1608_v7 = vcombine.low %v182_v58, %v198_v59 }
  0x1a   : > { %1660 = vmatmul.mubr.msk.bf16.vlgmr.msra.gmra.mxu0 %vm565_vm0, %v1778_v27  ;;  %v1611_v2 = vcombine.high %v183_v60, %v199_v61  ;;  %v1610_v8 = vcombine.low %v183_v60, %v199_v61  ;;  %v1645_v9 = vcombine.high %v216_v3, %v232_v4  ;;  %v1647_v10 = vcombine.high %v217_v5, %v233_v6  ;;  %v184_v11 = vld [vmem:[%s1759_s21 + $0x40] sm:$0xff]  ;;  %v185_v13 = vld [vmem:[%s1759_s21 + $0x48] sm:$0xff]  ;;  %v218_v19 = vld [vmem:[%s1759_s21 + $0x150] sm:$0xff] }
  0x1b   : > { %1661 = vmatmul.mubr.msk.bf16.vlgmr.msra.gmra.mxu1 %vm565_vm0, %v1778_v27  ;;  %668 = vmatpush1.bf16.msra.mxu0 %v1632_v30  ;;  %v200_v12 = vld [vmem:[%s1759_s21 + $0xc0] sm:$0xff]  ;;  %v201_v14 = vld [vmem:[%s1759_s21 + $0xc8] sm:$0xff]  ;;  %v1644_v15 = vcombine.low %v216_v3, %v232_v4  ;;  %v1646_v16 = vcombine.low %v217_v5, %v233_v6  ;;  %v234_v20 = vld [vmem:[%s1759_s21 + $0x1d0] sm:$0xff] }
  0x1c   : > { %711 = vmatpush1.bf16.msra.mxu1 %v1634_v31  ;;  %669 = vmatprep.subr.bf16.mxu0 %v1601_v32  ;;  %v1613_v17 = vcombine.high %v184_v11, %v200_v12  ;;  %v1615_v18 = vcombine.high %v185_v13, %v201_v14  ;;  %v219_v21 = vld [vmem:[%s1759_s21 + $0x158] sm:$0xff]  ;;  %v1612_v23 = vcombine.low %v184_v11, %v200_v12  ;;  %v186_v28 = vld [vmem:[%s1759_s21 + $0x50] sm:$0xff]  ;;  %v220_v36 = vld [vmem:[%s1759_s21 + $0x160] sm:$0xff] }
  0x1d   : > { %712 = vmatprep.subr.bf16.mxu1 %v1603_v33  ;;  %687 = vmatprep.mubr.bf16.mxu0 %v1715_v0  ;;  %v235_v22 = vld [vmem:[%s1759_s21 + $0x1d8] sm:$0xff]  ;;  %v1614_v24 = vcombine.low %v185_v13, %v201_v14  ;;  %v1649_v25 = vcombine.high %v218_v19, %v234_v20  ;;  %v202_v29 = vld [vmem:[%s1759_s21 + $0xd0] sm:$0xff]  ;;  %v1648_v32 = vcombine.low %v218_v19, %v234_v20  ;;  %v236_v37 = vld [vmem:[%s1759_s21 + $0x1e0] sm:$0xff] }
  0x1e   : > { %730 = vmatprep.mubr.bf16.mxu1 %v1715_v0  ;;  %v1651_v26 = vcombine.high %v219_v21, %v235_v22  ;;  %v187_v30 = vld [vmem:[%s1759_s21 + $0x58] sm:$0xff]  ;;  %v1650_v33 = vcombine.low %v219_v21, %v235_v22  ;;  %v1617_v34 = vcombine.high %v186_v28, %v202_v29  ;;  %v1653_v42 = vcombine.high %v220_v36, %v236_v37  ;;  %v188_v44 = vld [vmem:[%s1759_s21 + $0x60] sm:$0xff]  ;;  %v222_v52 = vld [vmem:[%s1759_s21 + $0x170] sm:$0xff] }
  0x1f   : > { %670 = vmatpush1.bf16.msra.mxu0 %v1600_v38  ;;  %v203_v31 = vld [vmem:[%s1759_s21 + $0xd8] sm:$0xff]  ;;  %v221_v38 = vld [vmem:[%s1759_s21 + $0x168] sm:$0xff]  ;;  %v204_v45 = vld [vmem:[%s1759_s21 + $0xe0] sm:$0xff] }
  0x20   : > { %713 = vmatpush1.bf16.msra.mxu1 %v1602_v39  ;;  %753 = vmatprep.subr.bf16.mxu0 %v1637_v40  ;;  %v1619_v35 = vcombine.high %v187_v30, %v203_v31  ;;  %v237_v39 = vld [vmem:[%s1759_s21 + $0x1e8] sm:$0xff]  ;;  %v1616_v40 = vcombine.low %v186_v28, %v202_v29  ;;  %v1621_v50 = vcombine.high %v188_v44, %v204_v45  ;;  %v238_v53 = vld [vmem:[%s1759_s21 + $0x1f0] sm:$0xff] }
  0x21   : > { %796 = vmatprep.subr.bf16.mxu1 %v1639_v41  ;;  %v1618_v41 = vcombine.low %v187_v30, %v203_v31  ;;  %v1655_v43 = vcombine.high %v221_v38, %v237_v39  ;;  %v1657_v58 = vcombine.high %v222_v52, %v238_v53  ;;  %v190_v60 = vld [vmem:[%s1759_s21 + $0x70] sm:$0xff] }
  0x22   : > { %1662 = vmatmul.mubr.msk.bf16.vlgmr.msra.gmra.mxu0 %vm565_vm0, %v1778_v27  ;;  %v206_v61 = vld [vmem:[%s1759_s21 + $0xf0] sm:$0xff] }
  0x23   : > { %1663 = vmatmul.mubr.msk.bf16.vlgmr.msra.gmra.mxu1 %vm565_vm0, %v1778_v27  ;;  %754 = vmatpush1.bf16.msra.mxu0 %v1636_v46  ;;  %v189_v46 = vld [vmem:[%s1759_s21 + $0x68] sm:$0xff]  ;;  %v1625_v3 = vcombine.high %v190_v60, %v206_v61  ;;  %v1624_v5 = vcombine.low %v190_v60, %v206_v61 }
  0x24   : > { %797 = vmatpush1.bf16.msra.mxu1 %v1638_v47  ;;  %755 = vmatprep.subr.bf16.mxu0 %v1605_v48  ;;  %v205_v47 = vld [vmem:[%s1759_s21 + $0xe8] sm:$0xff]  ;;  %v1652_v48 = vcombine.low %v220_v36, %v236_v37 }
  0x25   : > { %798 = vmatprep.subr.bf16.mxu1 %v1607_v49  ;;  %773 = vmatprep.mubr.bf16.mxu0 %v1715_v0  ;;  %v1654_v49 = vcombine.low %v221_v38, %v237_v39  ;;  %v1623_v51 = vcombine.high %v189_v46, %v205_v47 }
  0x26   : > { %816 = vmatprep.mubr.bf16.mxu1 %v1715_v0 }
  0x27   : > { %756 = vmatpush1.bf16.msra.mxu0 %v1604_v54  ;;  %v223_v54 = vld [vmem:[%s1759_s21 + $0x178] sm:$0xff] }
  0x28   : > { %799 = vmatpush1.bf16.msra.mxu1 %v1606_v55  ;;  %839 = vmatprep.subr.bf16.mxu0 %v1641_v56  ;;  %v239_v55 = vld [vmem:[%s1759_s21 + $0x1f8] sm:$0xff]  ;;  %v1620_v56 = vcombine.low %v188_v44, %v204_v45 }
  0x29   : > { %882 = vmatprep.subr.bf16.mxu1 %v1643_v57  ;;  %v1622_v57 = vcombine.low %v189_v46, %v205_v47  ;;  %v1659_v59 = vcombine.high %v223_v54, %v239_v55 }
  0x2a   : > { %1664 = vmatmul.mubr.msk.bf16.vlgmr.msra.gmra.mxu0 %vm565_vm0, %v1778_v27 }
  0x2b   : > { %1665 = vmatmul.mubr.msk.bf16.vlgmr.msra.gmra.mxu1 %vm565_vm0, %v1778_v27  ;;  %840 = vmatpush1.bf16.msra.mxu0 %v1640_v62  ;;  %v191_v62 = vld [vmem:[%s1759_s21 + $0x78] sm:$0xff] }
  0x2c   : > { %883 = vmatpush1.bf16.msra.mxu1 %v1642_v63  ;;  %841 = vmatprep.subr.bf16.mxu0 %v1609_v1  ;;  %v207_v63 = vld [vmem:[%s1759_s21 + $0xf8] sm:$0xff]  ;;  %v1656_v1 = vcombine.low %v222_v52, %v238_v53 }
  0x2d   : > { %884 = vmatprep.subr.bf16.mxu1 %v1611_v2  ;;  %859 = vmatprep.mubr.bf16.mxu0 %v1715_v0  ;;  %v1658_v2 = vcombine.low %v223_v54, %v239_v55  ;;  %v1627_v4 = vcombine.high %v191_v62, %v207_v63  ;;  %v1626_v6 = vcombine.low %v191_v62, %v207_v63 }
  0x2e   : > { %902 = vmatprep.mubr.bf16.mxu1 %v1715_v0 }
  0x2f   : > { %842 = vmatpush1.bf16.msra.mxu0 %v1608_v7 }
  0x30   : > { %885 = vmatpush1.bf16.msra.mxu1 %v1610_v8  ;;  %925 = vmatprep.subr.bf16.mxu0 %v1645_v9 }
  0x31   : > { %968 = vmatprep.subr.bf16.mxu1 %v1647_v10 }
  0x32   : > { %1666 = vmatmul.mubr.msk.bf16.vlgmr.msra.gmra.mxu0 %vm565_vm0, %v1778_v27 }
  0x33   : > { %1667 = vmatmul.mubr.msk.bf16.vlgmr.msra.gmra.mxu1 %vm565_vm0, %v1778_v27  ;;  %926 = vmatpush1.bf16.msra.mxu0 %v1644_v15 }
  0x34   : > { %969 = vmatpush1.bf16.msra.mxu1 %v1646_v16  ;;  %927 = vmatprep.subr.bf16.mxu0 %v1613_v17 }
  0x35   : > { %970 = vmatprep.subr.bf16.mxu1 %v1615_v18  ;;  %945 = vmatprep.mubr.bf16.mxu0 %v1715_v0 }
  0x36   : > { %988 = vmatprep.mubr.bf16.mxu1 %v1715_v0 }
  0x37   : > { %928 = vmatpush1.bf16.msra.mxu0 %v1612_v23 }
  0x38   : > { %971 = vmatpush1.bf16.msra.mxu1 %v1614_v24  ;;  %1011 = vmatprep.subr.bf16.mxu0 %v1649_v25 }
  0x39   : > { %1054 = vmatprep.subr.bf16.mxu1 %v1651_v26 }
  0x3a   : > { %1668 = vmatmul.mubr.msk.bf16.vlgmr.msra.gmra.mxu0 %vm565_vm0, %v1778_v27 }
  0x3b   : > { %1669 = vmatmul.mubr.msk.bf16.vlgmr.msra.gmra.mxu1 %vm565_vm0, %v1778_v27  ;;  %1012 = vmatpush1.bf16.msra.mxu0 %v1648_v32 }
  0x3c   : > { %1055 = vmatpush1.bf16.msra.mxu1 %v1650_v33  ;;  %1013 = vmatprep.subr.bf16.mxu0 %v1617_v34 }
  0x3d   : > { %1056 = vmatprep.subr.bf16.mxu1 %v1619_v35  ;;  %1031 = vmatprep.mubr.bf16.mxu0 %v1715_v0 }
  0x3e   : > { %1074 = vmatprep.mubr.bf16.mxu1 %v1715_v0 }
  0x3f   : > { %1014 = vmatpush1.bf16.msra.mxu0 %v1616_v40 }
  0x40   : > { %1057 = vmatpush1.bf16.msra.mxu1 %v1618_v41  ;;  %1097 = vmatprep.subr.bf16.mxu0 %v1653_v42 }
  0x41   : > { %1140 = vmatprep.subr.bf16.mxu1 %v1655_v43 }
  0x42   : > { %1670 = vmatmul.mubr.msk.bf16.vlgmr.msra.gmra.mxu0 %vm565_vm0, %v1778_v27 }
  0x43   : > { %1671 = vmatmul.mubr.msk.bf16.vlgmr.msra.gmra.mxu1 %vm565_vm0, %v1778_v27  ;;  %1098 = vmatpush1.bf16.msra.mxu0 %v1652_v48 }
  0x44   : > { %1141 = vmatpush1.bf16.msra.mxu1 %v1654_v49  ;;  %1099 = vmatprep.subr.bf16.mxu0 %v1621_v50 }
  0x45   : > { %1142 = vmatprep.subr.bf16.mxu1 %v1623_v51  ;;  %1117 = vmatprep.mubr.bf16.mxu0 %v1715_v0 }
  0x46   : > { %1160 = vmatprep.mubr.bf16.mxu1 %v1715_v0 }
  0x47   : > { %1100 = vmatpush1.bf16.msra.mxu0 %v1620_v56 }
  0x48   : > { %1143 = vmatpush1.bf16.msra.mxu1 %v1622_v57  ;;  %1183 = vmatprep.subr.bf16.mxu0 %v1657_v58 }
  0x49   : > { %1226 = vmatprep.subr.bf16.mxu1 %v1659_v59 }
  0x4a   : > { %1672 = vmatmul.mubr.msk.bf16.vlgmr.msra.gmra.mxu0 %vm565_vm0, %v1778_v27 }
  0x4b   : > { %1673 = vmatmul.mubr.msk.bf16.vlgmr.msra.gmra.mxu1 %vm565_vm0, %v1778_v27  ;;  %1184 = vmatpush1.bf16.msra.mxu0 %v1656_v1 }
  0x4c   : > { %1227 = vmatpush1.bf16.msra.mxu1 %v1658_v2  ;;  %1185 = vmatprep.subr.bf16.mxu0 %v1625_v3 }
  0x4d   : > { %1228 = vmatprep.subr.bf16.mxu1 %v1627_v4  ;;  %1203 = vmatprep.mubr.bf16.mxu0 %v1715_v0 }
  0x4e   : > { %1246 = vmatprep.mubr.bf16.mxu1 %v1715_v0 }
  0x4f   : > { %1186 = vmatpush1.bf16.msra.mxu0 %v1624_v5 }
  0x50   : > { %1229 = vmatpush1.bf16.msra.mxu1 %v1626_v6 }
  0x52   : > { %1674 = vmatmul.mubr.msk.bf16.vlgmr.msra.gmra.mxu0 %vm565_vm0, %v1778_v27 }
  0x53   : > { %1675 = vmatmul.mubr.msk.bf16.vlgmr.msra.gmra.mxu1 %vm565_vm0, %v1778_v27 }
  0x89   : > { %v1952_v57 = vpop.permute.xlu0 %1435 }
  0xda   : > { %v1876_v7 = vpop.f32.mrf.mxu0 }
  0xdb   : > { %v1878_v8 = vpop.f32.mrf.mxu1 }
  0xdc   : > { %v1880_v9 = vpop.f32.mrf.mxu0 }
  0xdd   : > { %v1882_v10 = vpop.f32.mrf.mxu1 }
  0xde   : > { %v1884_v11 = vpop.f32.mrf.mxu0 }
  0xdf   : > { %v1886_v12 = vpop.f32.mrf.mxu1 }
  0xe0   : > { %v1888_v0 = vpop.f32.mrf.mxu0 }
  0xe1   : > { %v1890_v13 = vpop.f32.mrf.mxu1 }
  0xe2   : > { %v1892_v14 = vpop.f32.mrf.mxu0 }
  0xe3   : > { %v1894_v15 = vpop.f32.mrf.mxu1 }
  0xe4   : > { %v1896_v27 = vpop.f32.mrf.mxu0 }
  0xe5   : > { %v1898_v16 = vpop.f32.mrf.mxu1 }
  0xe6   : > { %v1900_v17 = vpop.f32.mrf.mxu0 }
  0xe7   : > { %v1902_v18 = vpop.f32.mrf.mxu1 }
  0xe8   : > { %v1904_v19 = vpop.f32.mrf.mxu0 }
  0xe9   : > { %v1906_v20 = vpop.f32.mrf.mxu1 }
  0xea   : > { %v775_v21 = vpop.f32.mrf.mxu0 }
  0xeb   : > { %v818_v22 = vpop.f32.mrf.mxu1  ;;  %v1353_v54 = vmax.f32 %v1876_v7, %v775_v21 }
  0xec   : > { %v777_v23 = vpop.f32.mrf.mxu0  ;;  %v1355_v55 = vmax.f32 %v1878_v8, %v818_v22 }
  0xed   : > { %v820_v24 = vpop.f32.mrf.mxu1  ;;  %v1354_v58 = vmax.f32 %v1880_v9, %v777_v23 }
  0xee   : > { %v1908_v25 = vpop.f32.mrf.mxu0  ;;  %v1356_v59 = vmax.f32 %v1882_v10, %v820_v24 }
  0xef   : > { %v1910_v26 = vpop.f32.mrf.mxu1  ;;  %v1361_v60 = vmax.f32 %v1884_v11, %v1908_v25 }
  0xf0   : > { %v1912_v28 = vpop.f32.mrf.mxu0  ;;  %v1363_v63 = vmax.f32 %v1886_v12, %v1910_v26 }
  0xf1   : > { %v1914_v29 = vpop.f32.mrf.mxu1  ;;  %v1362_v1 = vmax.f32 %v1888_v0, %v1912_v28 }
  0xf2   : > { %v1916_v30 = vpop.f32.mrf.mxu0  ;;  %v1364_v2 = vmax.f32 %v1890_v13, %v1914_v29 }
  0xf3   : > { %v1918_v31 = vpop.f32.mrf.mxu1  ;;  %v1357_v5 = vmax.f32 %v1892_v14, %v1916_v30 }
  0xf4   : > { %v1920_v32 = vpop.f32.mrf.mxu0  ;;  %v1359_v6 = vmax.f32 %v1894_v15, %v1918_v31 }
  0xf5   : > { %v1922_v33 = vpop.f32.mrf.mxu1  ;;  %v1358_v10 = vmax.f32 %v1896_v27, %v1920_v32 }
  0xf6   : > { %v1924_v34 = vpop.f32.mrf.mxu0  ;;  %v1360_v11 = vmax.f32 %v1898_v16, %v1922_v33  ;;  %v1978_v16 = vpop.permute.xlu0 %1440 }
  0xf7   : > { %v1926_v35 = vpop.f32.mrf.mxu1  ;;  %v1365_v21 = vmax.f32 %v1900_v17, %v1924_v34 }
  0xf8   : > { %v1928_v36 = vpop.f32.mrf.mxu0  ;;  %v1367_v24 = vmax.f32 %v1902_v18, %v1926_v35 }
  0xf9   : > { %v1930_v37 = vpop.f32.mrf.mxu1 }
  0xfa   : > { %v947_v38 = vpop.f32.mrf.mxu0 }
  0xfb   : > { %v990_v39 = vpop.f32.mrf.mxu1 }
  0xfc   : > { %v949_v40 = vpop.f32.mrf.mxu0 }
  0xfd   : > { %v992_v41 = vpop.f32.mrf.mxu1 }
  0xfe   : > { %v951_v42 = vpop.f32.mrf.mxu0 }
  0xff   : > { %v994_v43 = vpop.f32.mrf.mxu1 }
 0x100   : > { %v953_v44 = vpop.f32.mrf.mxu0 }
 0x101   : > { %v1932_v45 = vpop.f32.mrf.mxu1 }
 0x102   : > { %v1934_v46 = vpop.f32.mrf.mxu0 }
 0x103   : > { %v1936_v47 = vpop.f32.mrf.mxu1 }
 0x104   : > { %v1938_v48 = vpop.f32.mrf.mxu0 }
 0x105   : > { %v1940_v49 = vpop.f32.mrf.mxu1 }
 0x106   : > { %v1942_v50 = vpop.f32.mrf.mxu0 }
 0x107   : > { %v1944_v51 = vpop.f32.mrf.mxu1 }
 0x108   : > { %v1946_v52 = vpop.f32.mrf.mxu0 }
 0x109   : > { %v1948_v53 = vpop.f32.mrf.mxu1 }
 0x10a   : > { %v1119_v56 = vpop.f32.mrf.mxu0 }
 0x10b   : > { %v1401_v61 = vmax.f32 %v947_v38, %v1119_v56  ;;  %v1162_v62 = vpop.f32.mrf.mxu1 }
 0x10c   : > { %v1403_v3 = vmax.f32 %v990_v39, %v1162_v62  ;;  %v1121_v4 = vpop.f32.mrf.mxu0 }
 0x10d   : > { %v1417_v7 = vmax.f32 %v1353_v54, %v1401_v61  ;;  %v1402_v8 = vmax.f32 %v949_v40, %v1121_v4  ;;  %v1164_v9 = vpop.f32.mrf.mxu1 }
 0x10e   : > { %v1419_v12 = vmax.f32 %v1355_v55, %v1403_v3  ;;  %v1404_v0 = vmax.f32 %v992_v41, %v1164_v9  ;;  %v1123_v13 = vpop.f32.mrf.mxu0 }
 0x10f   : > { %v1418_v14 = vmax.f32 %v1354_v58, %v1402_v8  ;;  %v1443_v22 = vadd.f32 %v1952_v57, %v1417_v7  ;;  %v1409_v15 = vmax.f32 %v951_v42, %v1123_v13  ;;  %v1166_v23 = vpop.f32.mrf.mxu1 }
 0x110   : > { %v1420_v25 = vmax.f32 %v1356_v59, %v1404_v0  ;;  %v1445_v27 = vadd.f32 %v1952_v57, %v1419_v12  ;;  %v1411_v26 = vmax.f32 %v994_v43, %v1166_v23  ;;  %v1125_v28 = vpop.f32.mrf.mxu0 }
 0x111   : > { %v1444_v29 = vadd.f32 %v1952_v57, %v1418_v14  ;;  %v1459_v30 = vmax.f32 %v1443_v22, 0.0  ;;  %v1425_v17 = vmax.f32 %v1361_v60, %v1409_v15  ;;  %v1410_v31 = vmax.f32 %v953_v44, %v1125_v28  ;;  %v1168_v32 = vpop.f32.mrf.mxu1 }
 0x112   : > { %v1446_v33 = vadd.f32 %v1952_v57, %v1420_v25  ;;  %v1461_v34 = vmax.f32 %v1445_v27, 0.0  ;;  %v1427_v38 = vmax.f32 %v1363_v63, %v1411_v26  ;;  %v1412_v18 = vmax.f32 %v1932_v45, %v1168_v32  ;;  %v1205_v35 = vpop.f32.mrf.mxu0 }
 0x113   : > { %v1460_v39 = vmax.f32 %v1444_v29, 0.0  ;;  %v1426_v40 = vmax.f32 %v1362_v1, %v1410_v31  ;;  %v1451_v41 = vadd.f32 %v1978_v16, %v1425_v17  ;;  %v1405_v42 = vmax.f32 %v1934_v46, %v1205_v35  ;;  %v1248_v43 = vpop.f32.mrf.mxu1 }
 0x114   : > { %v1462_v44 = vmax.f32 %v1446_v33, 0.0  ;;  %v1428_v54 = vmax.f32 %v1364_v2, %v1412_v18  ;;  %v1453_v55 = vadd.f32 %v1978_v16, %v1427_v38  ;;  %v1407_v45 = vmax.f32 %v1936_v47, %v1248_v43  ;;  %v1207_v56 = vpop.f32.mrf.mxu0 }
 0x115   : > { %v1688_v58 = vpack.c.bf16 %v1460_v39, %v1459_v30  ;;  %v1452_v59 = vadd.f32 %v1978_v16, %v1426_v40  ;;  %v1467_v60 = vmax.f32 %v1451_v41, 0.0  ;;  %v1421_v46 = vmax.f32 %v1357_v5, %v1405_v42  ;;  %v1250_v61 = vpop.f32.mrf.mxu1 }
 0x116   : > { %v1689_v62 = vpack.c.bf16 %v1462_v44, %v1461_v34  ;;  %v1454_v63 = vadd.f32 %v1978_v16, %v1428_v54  ;;  %v1469_v1 = vmax.f32 %v1453_v55, 0.0  ;;  %v1423_v3 = vmax.f32 %v1359_v6, %v1407_v45  ;;  %v1209_v4 = vpop.f32.mrf.mxu0 }
 0x117   : > { %1523 = vst [vmem:[%s1989_s27] sm:$0xff] %v1688_v58  ;;  %v1468_v2 = vmax.f32 %v1452_v59, 0.0  ;;  %v1447_v7 = vadd.f32 %v1952_v57, %v1421_v46  ;;  %v1406_v47 = vmax.f32 %v1938_v48, %v1207_v56  ;;  %v1408_v8 = vmax.f32 %v1940_v49, %v1250_v61  ;;  %v1252_v9 = vpop.f32.mrf.mxu1 }
 0x118   : > { %1524 = vst [vmem:[%s1989_s27 + $0x8] sm:$0xff] %v1689_v62  ;;  %v1470_v12 = vmax.f32 %v1454_v63, 0.0  ;;  %v1449_v5 = vadd.f32 %v1952_v57, %v1423_v3  ;;  %v1413_v0 = vmax.f32 %v1942_v50, %v1209_v4  ;;  %v1415_v13 = vmax.f32 %v1944_v51, %v1252_v9  ;;  %v1211_v6 = vpop.f32.mrf.mxu0 }
 0x119   : > { %v1366_v14 = vmax.f32 %v1904_v19, %v1928_v36  ;;  %v1692_v22 = vpack.c.bf16 %v1468_v2, %v1467_v60  ;;  %v1422_v15 = vmax.f32 %v1358_v10, %v1406_v47  ;;  %v1424_v48 = vmax.f32 %v1360_v11, %v1408_v8  ;;  %v1254_v23 = vpop.f32.mrf.mxu1 }
 0x11a   : > { %v1368_v49 = vmax.f32 %v1906_v20, %v1930_v37  ;;  %v1693_v25 = vpack.c.bf16 %v1470_v12, %v1469_v1  ;;  %v1429_v27 = vmax.f32 %v1365_v21, %v1413_v0  ;;  %v1431_v26 = vmax.f32 %v1367_v24, %v1415_v13 }
 0x11b   : > { %1527 = vst [vmem:[%s1989_s27 + $0x20] sm:$0xff] %v1692_v22  ;;  %v1448_v50 = vadd.f32 %v1952_v57, %v1422_v15  ;;  %v1450_v51 = vadd.f32 %v1952_v57, %v1424_v48  ;;  %v1414_v28 = vmax.f32 %v1946_v52, %v1211_v6  ;;  %v1416_v19 = vmax.f32 %v1948_v53, %v1254_v23 }
 0x11c   : > { %1528 = vst [vmem:[%s1989_s27 + $0x28] sm:$0xff] %v1693_v25  ;;  %v1463_v36 = vmax.f32 %v1447_v7, 0.0  ;;  %v1465_v10 = vmax.f32 %v1449_v5, 0.0  ;;  %v1455_v11 = vadd.f32 %v1978_v16, %v1429_v27  ;;  %v1457_v20 = vadd.f32 %v1978_v16, %v1431_v26 }
 0x11d   : > { %v1464_v37 = vmax.f32 %v1448_v50, 0.0  ;;  %v1466_v21 = vmax.f32 %v1450_v51, 0.0  ;;  %v1430_v24 = vmax.f32 %v1366_v14, %v1414_v28  ;;  %v1432_v29 = vmax.f32 %v1368_v49, %v1416_v19 }
 0x11e   : > { %v1471_v53 = vmax.f32 %v1455_v11, 0.0  ;;  %v1473_v31 = vmax.f32 %v1457_v20, 0.0 }
 0x11f   : > { %v1690_v57 = vpack.c.bf16 %v1464_v37, %v1463_v36  ;;  %v1691_v30 = vpack.c.bf16 %v1466_v21, %v1465_v10  ;;  %v1456_v52 = vadd.f32 %v1978_v16, %v1430_v24  ;;  %v1458_v17 = vadd.f32 %v1978_v16, %v1432_v29 }
 0x121   : > { %1525 = vst [vmem:[%s1989_s27 + $0x10] sm:$0xff] %v1690_v57  ;;  %1526 = vst [vmem:[%s1989_s27 + $0x18] sm:$0xff] %v1691_v30  ;;  %v1472_v32 = vmax.f32 %v1456_v52, 0.0  ;;  %v1474_v33 = vmax.f32 %v1458_v17, 0.0 }
 0x123   : > { %v1694_v34 = vpack.c.bf16 %v1472_v32, %v1471_v53  ;;  %v1695_v38 = vpack.c.bf16 %v1474_v33, %v1473_v31 }
 0x125   : > { %1529 = vst [vmem:[%s1989_s27 + $0x30] sm:$0xff] %v1694_v34  ;;  %1530 = vst [vmem:[%s1989_s27 + $0x38] sm:$0xff] %v1695_v38 }
 0x126 PF: > { %s13_s12 = sadd.s32 1, %s1713_s12  }
 0x127   : > { %p10_p4 = scmp.ge.s32.totalorder %s13_s12, 4  }
 0x129   :  { %12 = sbr.rel (!%p10_p4) target bundleno = 1 (0x1), region = 62 }

// kernel: simple_tooth_cnn_forward.3
= control target key start
LH: loop header
LB: loop body
LE: loop exit
PB: predicated region body
PF: predicated region fallthrough
CT: control target
= control target key end

     0   :  { %10 = vsyncpa [#allocation4], 0  ;;  %s11891_s0 = inlined_call_operand.vmem [shape: bf16[2,144,1024], index: 0, kind: input, shape index: {}]   ;;  %s11892_s1 = inlined_call_operand.vmem [shape: bf16[32,144], index: 1, kind: input, shape index: {}]   ;;  %s11893_s2 = inlined_call_operand.vmem [shape: f32[32,1], index: 2, kind: input, shape index: {}]   ;;  %s11894_s3 = inlined_call_operand.vmem [shape: bf16[32,256,128], index: 3, kind: input, shape index: {}]   ;;  %s11895_s4 = inlined_call_operand.vmem [shape: f32[1,128], index: 4, kind: input, shape index: {}]   ;;  %s11896_s5 = inlined_call_operand.hbm [shape: f32[2,1,128], index: 5, kind: output, shape index: {}]  }
   0x1   :  { %12 = vsyncpa [#allocation4 + $0x1], 0  ;;  %s9911_s18 = smov 0   ;;  %s9913_s19 = smov 0  }
   0x2   :  { %s9915_s20 = smov 0   ;;  %s9917_s21 = smov 0  }
   0x3 LB: > { %s9932_s22 = sadd.s32 4294967295, %s9877_s21   ;;  %s6956_s23 = sadd.s32 4294967294, %s9877_s21   ;;  %s9877_s21 = sphi %s9917_s21, %s11902_s21   ;;  %s9873_s20 = sphi %s9915_s20, %s11901_s20   ;;  %s9869_s19 = sphi %s9913_s19, %s11900_s19   ;;  %s9865_s18 = sphi %s9911_s18, %s11899_s18  }
   0x4   : > { %s9936_s24 = sadd.s32 1, %s9877_s21   ;;  %s135_s25 = sadd.s32 1, %s9873_s20 }
   0x5   : > { %s132_s26 = ssub.s32 %s9877_s21, %s9936_s24  ;;  %p145_p0 = scmp.ne.s32.totalorder %s9873_s20, %s9869_s19 }
   0x6   : > { %p133_p1 = scmp.eq.s32.totalorder %s132_s26, 0  ;;  %p146_p2 = scmp.eq.s32.totalorder %s9932_s22, 1 }
   0x7   : > { %p151_p3 = scmp.ne.s32.totalorder %s9869_s19, %s9865_s18  ;;  %p152_p4 = scmp.eq.s32.totalorder %s6956_s23, 1 }
   0x8   : > { %s9947_s27 = scalar_select %p133_p1, %s9873_s20, %s135_s25  }
   0x9   : > { %p9949_p5 = por %p146_p2, %p145_p0  ;;  %p9953_p6 = por %p152_p4, %p151_p3 }
   0xa   : > { %p6959_p7 = scmp.ge.s32.totalorder %s9877_s21, 1  ;;  %p190_p8 = scmp.lt.s32.totalorder %s9877_s21, 3 }
   0xc   : > { %p191_p9 = pnand %p6959_p7, %p190_p8 }
   0xd   : > { %p217_p10 = scmp.lt.s32.totalorder (!%p191_p9), %s9932_s22, 1  ;;  %s215_s10 = sand.u32 (!%p191_p9), 1, %s9869_s19  }
   0xe   : > { %194 = sbr.rel (%p191_p9) target bundleno = 1014 (0x3f6), region = 40  ;;  %s8549_s13 = sshll.u32 (!%p191_p9), %s9932_s22, 4 }
   0xf   : > { %s6899_s23 = scalar_lea.hbm (!%p191_p9), %s11896_s5, %s8549_s13  ;;  %s9880_s30 = smov (!%p191_p9), [#allocation3]  }
  0x10   : > { %s9821_s6 = sshll.u32 (!%p191_p9), %s9880_s30, 4  ;;  %s9822_s6 = int_to_ptr.vmem [resolvable:$false] %s9821_s6 }
  0x13   : > { %v9963_v0 = vld [vmem:[%s11892_s1 + $0x4] ss:$8 sps:$4 sm:$0xff]   ;;  %vm682_vm0 = vcmask 130048   ;;  %s218_s7 = scalar_select %p217_p10, %s9932_s22, 1  ;;  %v9879_v2 = vmov 0   ;;  %v229_v4 = vld [vmem:[%s11893_s2 + $0x10] sm:$0xff] }
  0x14   : > { %7037 = vmatprep.mubr.msk.bf16.mxu0 %vm682_vm0, %v9963_v0  ;;  %7039 = vmatprep.mubr.msk.bf16.mxu1 %vm682_vm0, %v9963_v0  ;;  %v227_v1 = vld [vmem:[%s11893_s2] sm:$0xff]  ;;  %v228_v3 = vld [vmem:[%s11893_s2 + $0x8] sm:$0xff]  ;;  %v230_v5 = vld [vmem:[%s11893_s2 + $0x18] sm:$0xff]  ;;  %s9823_s22 = scalar_lea.vmem %s9822_s6, 32 }
  0x15   : > { %9297 = vset.pattern.permute.xlu0 %v9879_v2  ;;  %9298 = vset.pattern.permute.xlu1 %v9879_v2  ;;  %s9256_s14 = smul.u32 576, %s218_s7 }
  0x16   : > { %927 = vperm.xlu0 %9297, %v227_v1   ;;  %937 = vperm.xlu1 %9298, %v229_v4  }
  0x17   : > { %s9985_s25 = scalar_lea.vmem %s11891_s0, %s9256_s14  ;;  %s216_s14 = scalar_lea.vmem [#allocation3], %s215_s10 }
  0x18   : > { %v288_v6 = vld [vmem:[%s9985_s25 + $0x1c0] sm:$0xff]  ;;  %v289_v8 = vld [vmem:[%s9985_s25 + $0x1c8] sm:$0xff]  ;;  %s6901_s15 = sshll.u32 %s216_s14, 4  ;;  %s6902_s15 = int_to_ptr.vmem [resolvable:$true] %s6901_s15 }
  0x19   : > { %v292_v7 = vld [vmem:[%s9985_s25 + $0x1e0] sm:$0xff]  ;;  %v293_v10 = vld [vmem:[%s9985_s25 + $0x1e8] sm:$0xff]  ;;  %s9817_s26 = scalar_lea.vmem %s6902_s15, 16  ;;  %p9824_p0 = scmp.lt.s32.totalorder %s6902_s15, %s9822_s6 }
  0x1a   : > { %v7022_v9 = vcombine.high %v288_v6, %v292_v7  ;;  %v7021_v11 = vcombine.low %v288_v6, %v292_v7  ;;  %v280_v12 = vld [vmem:[%s9985_s25 + $0x180] sm:$0xff]  ;;  %932 = vperm.xlu0 %9297, %v228_v3   ;;  %942 = vperm.xlu1 %9298, %v230_v5   ;;  %v7024_v14 = vcombine.high %v289_v8, %v293_v10  ;;  %v281_v17 = vld [vmem:[%s9985_s25 + $0x188] sm:$0xff]  ;;  %p9818_p11 = scmp.ne.s32.totalorder %s6902_s15, %s9817_s26  ;;  %p9825_p1 = scmp.lt.s32.totalorder %s9823_s22, %s9817_s26 }
  0x1b   : > { %v284_v13 = vld [vmem:[%s9985_s25 + $0x1a0] sm:$0xff]  ;;  %v7023_v15 = vcombine.low %v289_v8, %v293_v10  ;;  %v285_v18 = vld [vmem:[%s9985_s25 + $0x1a8] sm:$0xff]  ;;  %v290_v10 = vld [vmem:[%s9985_s25 + $0x1d0] sm:$0xff] }
  0x1c   : > { %v7014_v16 = vcombine.high %v280_v12, %v284_v13  ;;  %v272_v19 = vld [vmem:[%s9985_s25 + $0x140] sm:$0xff]  ;;  %689 = vmatprep.subr.bf16.mxu0 %v7022_v9  ;;  %v7016_v20 = vcombine.high %v281_v17, %v285_v18  ;;  %v273_v22 = vld [vmem:[%s9985_s25 + $0x148] sm:$0xff]  ;;  %742 = vmatprep.subr.bf16.mxu1 %v7024_v14  ;;  %v7013_v24 = vcombine.low %v280_v12, %v284_v13  ;;  %v291_v14 = vld [vmem:[%s9985_s25 + $0x1d8] sm:$0xff]  ;;  %p9819_p12 = pnand %p9818_p11, %p9949_p5  ;;  %p9826_p2 = por %p9825_p1, %p9824_p0 }
  0x1d   : > { %v276_v21 = vld [vmem:[%s9985_s25 + $0x160] sm:$0xff]  ;;  %v277_v23 = vld [vmem:[%s9985_s25 + $0x168] sm:$0xff]  ;;  %690 = vmatpush1.bf16.msra.mxu0 %v7021_v11  ;;  %743 = vmatpush1.bf16.msra.mxu1 %v7023_v15  ;;  %v7015_v25 = vcombine.low %v281_v17, %v285_v18  ;;  %v294_v11 = vld [vmem:[%s9985_s25 + $0x1f0] sm:$0xff] }
  0x1e   : > { %691 = vmatprep.subr.bf16.mxu0 %v7014_v16  ;;  %v7006_v26 = vcombine.high %v272_v19, %v276_v21  ;;  %744 = vmatprep.subr.bf16.mxu1 %v7016_v20  ;;  %v7008_v27 = vcombine.high %v273_v22, %v277_v23  ;;  %v264_v28 = vld [vmem:[%s9985_s25 + $0x100] sm:$0xff]  ;;  %v265_v30 = vld [vmem:[%s9985_s25 + $0x108] sm:$0xff]  ;;  %v7005_v32 = vcombine.low %v272_v19, %v276_v21  ;;  %v295_v15 = vld [vmem:[%s9985_s25 + $0x1f8] sm:$0xff]  ;;  %p9820_p13 = pneg %p9819_p12 }
  0x1f   : > { %v268_v29 = vld [vmem:[%s9985_s25 + $0x120] sm:$0xff]  ;;  %v269_v31 = vld [vmem:[%s9985_s25 + $0x128] sm:$0xff]  ;;  %v7007_v33 = vcombine.low %v273_v22, %v277_v23  ;;  %v282_v18 = vld [vmem:[%s9985_s25 + $0x190] sm:$0xff]  ;;  %v7026_v22 = vcombine.high %v290_v10, %v294_v11 }
  0x20   : > { %v6998_v34 = vcombine.high %v264_v28, %v268_v29  ;;  %v7000_v35 = vcombine.high %v265_v30, %v269_v31  ;;  %v256_v36 = vld [vmem:[%s9985_s25 + $0xc0] sm:$0xff]  ;;  %v257_v38 = vld [vmem:[%s9985_s25 + $0xc8] sm:$0xff]  ;;  %v6997_v40 = vcombine.low %v264_v28, %v268_v29  ;;  %v6999_v41 = vcombine.low %v265_v30, %v269_v31  ;;  %v286_v19 = vld [vmem:[%s9985_s25 + $0x1b0] sm:$0xff]  ;;  %p9827_p3 = pnand %p9826_p2, %p9820_p13 }
  0x21   : > { %692 = vmatpush1.bf16.msra.mxu0 %v7013_v24  ;;  %745 = vmatpush1.bf16.msra.mxu1 %v7015_v25  ;;  %v260_v37 = vld [vmem:[%s9985_s25 + $0xe0] sm:$0xff]  ;;  %v261_v39 = vld [vmem:[%s9985_s25 + $0xe8] sm:$0xff]  ;;  %v283_v23 = vld [vmem:[%s9985_s25 + $0x198] sm:$0xff]  ;;  %v7028_v25 = vcombine.high %v291_v14, %v295_v15  ;;  %v7027_v30 = vcombine.low %v291_v14, %v295_v15  ;;  %v7018_v31 = vcombine.high %v282_v18, %v286_v19 }
  0x22   : > { %693 = vmatprep.subr.bf16.mxu0 %v7006_v26  ;;  %746 = vmatprep.subr.bf16.mxu1 %v7008_v27  ;;  %v6990_v42 = vcombine.high %v256_v36, %v260_v37  ;;  %v6992_v43 = vcombine.high %v257_v38, %v261_v39  ;;  %v248_v44 = vld [vmem:[%s9985_s25 + $0x80] sm:$0xff]  ;;  %v249_v46 = vld [vmem:[%s9985_s25 + $0x88] sm:$0xff]  ;;  %v6989_v48 = vcombine.low %v256_v36, %v260_v37  ;;  %v287_v24 = vld [vmem:[%s9985_s25 + $0x1b8] sm:$0xff] }
  0x23   : > { %v252_v45 = vld [vmem:[%s9985_s25 + $0xa0] sm:$0xff]  ;;  %v253_v47 = vld [vmem:[%s9985_s25 + $0xa8] sm:$0xff]  ;;  %v6991_v49 = vcombine.low %v257_v38, %v261_v39  ;;  %v7025_v26 = vcombine.low %v290_v10, %v294_v11  ;;  %v274_v27 = vld [vmem:[%s9985_s25 + $0x150] sm:$0xff]  ;;  %v7019_v38 = vcombine.low %v283_v23, %v287_v24 }
  0x24   : > { %v6982_v50 = vcombine.high %v248_v44, %v252_v45  ;;  %v6984_v51 = vcombine.high %v249_v46, %v253_v47  ;;  %v240_v52 = vld [vmem:[%s9985_s25 + $0x40] sm:$0xff]  ;;  %v241_v54 = vld [vmem:[%s9985_s25 + $0x48] sm:$0xff]  ;;  %v6981_v56 = vcombine.low %v248_v44, %v252_v45  ;;  %v6983_v57 = vcombine.low %v249_v46, %v253_v47  ;;  %v278_v28 = vld [vmem:[%s9985_s25 + $0x170] sm:$0xff] }
  0x25   : > { %694 = vmatpush1.bf16.msra.mxu0 %v7005_v32  ;;  %747 = vmatpush1.bf16.msra.mxu1 %v7007_v33  ;;  %v244_v53 = vld [vmem:[%s9985_s25 + $0x60] sm:$0xff]  ;;  %v245_v55 = vld [vmem:[%s9985_s25 + $0x68] sm:$0xff]  ;;  %v10041_v29 = vld [vmem:[%s11892_s1 + $0x14] ss:$8 sps:$4 sm:$0xff]   ;;  %v7010_v39 = vcombine.high %v274_v27, %v278_v28  ;;  %v7009_v44 = vcombine.low %v274_v27, %v278_v28 }
  0x26   : > { %695 = vmatprep.subr.bf16.mxu0 %v6998_v34  ;;  %748 = vmatprep.subr.bf16.mxu1 %v7000_v35  ;;  %v6974_v58 = vcombine.high %v240_v52, %v244_v53  ;;  %v6976_v59 = vcombine.high %v241_v54, %v245_v55  ;;  %v232_v60 = vld [vmem:[%s9985_s25] sm:$0xff]  ;;  %v233_v62 = vld [vmem:[%s9985_s25 + $0x8] sm:$0xff]  ;;  %v6973_v1 = vcombine.low %v240_v52, %v244_v53  ;;  %v275_v32 = vld [vmem:[%s9985_s25 + $0x158] sm:$0xff] }
  0x27   : > { %v236_v61 = vld [vmem:[%s9985_s25 + $0x20] sm:$0xff]  ;;  %v237_v63 = vld [vmem:[%s9985_s25 + $0x28] sm:$0xff]  ;;  %v6975_v4 = vcombine.low %v241_v54, %v245_v55  ;;  %v279_v33 = vld [vmem:[%s9985_s25 + $0x178] sm:$0xff]  ;;  %v7020_v34 = vcombine.high %v283_v23, %v287_v24  ;;  %v7017_v35 = vcombine.low %v282_v18, %v286_v19 }
  0x28   : > { %v296_v2 = vld [vmem:[%s9985_s25 + $0x200] sm:$0xff]  ;;  %v6966_v5 = vcombine.high %v232_v60, %v236_v61  ;;  %v297_v6 = vld [vmem:[%s9985_s25 + $0x208] sm:$0xff]  ;;  %v6968_v8 = vcombine.high %v233_v62, %v237_v63  ;;  %v6965_v9 = vcombine.low %v232_v60, %v236_v61  ;;  %v6967_v12 = vcombine.low %v233_v62, %v237_v63  ;;  %v266_v36 = vld [vmem:[%s9985_s25 + $0x110] sm:$0xff] }
  0x29   : > { %696 = vmatpush1.bf16.msra.mxu0 %v6997_v40  ;;  %749 = vmatpush1.bf16.msra.mxu1 %v6999_v41  ;;  %v300_v3 = vld [vmem:[%s9985_s25 + $0x220] sm:$0xff]  ;;  %v301_v7 = vld [vmem:[%s9985_s25 + $0x228] sm:$0xff]  ;;  %v270_v37 = vld [vmem:[%s9985_s25 + $0x130] sm:$0xff]  ;;  %v7011_v47 = vcombine.low %v275_v32, %v279_v33 }
  0x2a   : > { %697 = vmatprep.subr.bf16.mxu0 %v6990_v42  ;;  %750 = vmatprep.subr.bf16.mxu1 %v6992_v43  ;;  %v7030_v13 = vcombine.high %v296_v2, %v300_v3  ;;  %v7032_v16 = vcombine.high %v297_v6, %v301_v7  ;;  %v7029_v17 = vcombine.low %v296_v2, %v300_v3  ;;  %v10032_v21 = vld [vmem:[%s11892_s1] ss:$8 sps:$4 sm:$0xff]   ;;  %v267_v40 = vld [vmem:[%s9985_s25 + $0x118] sm:$0xff]  ;;  %v258_v45 = vld [vmem:[%s9985_s25 + $0xd0] sm:$0xff] }
  0x2b   : > { %v7031_v20 = vcombine.low %v297_v6, %v301_v7  ;;  %v271_v41 = vld [vmem:[%s9985_s25 + $0x138] sm:$0xff]  ;;  %v7012_v43 = vcombine.high %v275_v32, %v279_v33  ;;  %v262_v46 = vld [vmem:[%s9985_s25 + $0xf0] sm:$0xff]  ;;  %v7001_v52 = vcombine.low %v266_v36, %v270_v37 }
  0x2c   : > { %v10054_v42 = vld [vmem:[%s11892_s1 + $0x10] ss:$8 sps:$4 sm:$0xff]   ;;  %v7003_v55 = vcombine.low %v267_v40, %v271_v41  ;;  %v6993_v60 = vcombine.low %v258_v45, %v262_v46 }
  0x2d   : > { %698 = vmatpush1.bf16.msra.mxu0 %v6989_v48  ;;  %751 = vmatpush1.bf16.msra.mxu1 %v6991_v49  ;;  %v7002_v48 = vcombine.high %v266_v36, %v270_v37  ;;  %v259_v49 = vld [vmem:[%s9985_s25 + $0xd8] sm:$0xff]  ;;  %v250_v53 = vld [vmem:[%s9985_s25 + $0x90] sm:$0xff]  ;;  %v9315_v36 = vld [vmem:[%s11894_s3 + $0xa8] sm:$0xff]  }
  0x2e   : > { %699 = vmatprep.subr.bf16.mxu0 %v6982_v50  ;;  %752 = vmatprep.subr.bf16.mxu1 %v6984_v51  ;;  %v263_v50 = vld [vmem:[%s9985_s25 + $0xf8] sm:$0xff]  ;;  %v7004_v51 = vcombine.high %v267_v40, %v271_v41  ;;  %v254_v54 = vld [vmem:[%s9985_s25 + $0xb0] sm:$0xff]  ;;  %v9316_v37 = vld [vmem:[%s11894_s3 + $0x28] sm:$0xff]  }
  0x2f   : > { %v242_v61 = vld [vmem:[%s9985_s25 + $0x50] sm:$0xff]  ;;  %v6995_v63 = vcombine.low %v259_v49, %v263_v50  ;;  %v243_v2 = vld [vmem:[%s9985_s25 + $0x58] sm:$0xff]  ;;  %v9319_v40 = vld [vmem:[%s11894_s3 + $0xa0] sm:$0xff]  }
  0x30   : > { %v246_v62 = vld [vmem:[%s9985_s25 + $0x70] sm:$0xff]  ;;  %v247_v3 = vld [vmem:[%s9985_s25 + $0x78] sm:$0xff]  ;;  %v9320_v41 = vld [vmem:[%s11894_s3 + $0x20] sm:$0xff]  }
  0x31   : > { %700 = vmatpush1.bf16.msra.mxu0 %v6981_v56  ;;  %753 = vmatpush1.bf16.msra.mxu1 %v6983_v57  ;;  %v6994_v56 = vcombine.high %v258_v45, %v262_v46  ;;  %v251_v57 = vld [vmem:[%s9985_s25 + $0x98] sm:$0xff]  ;;  %v238_v6 = vld [vmem:[%s9985_s25 + $0x30] sm:$0xff]  ;;  %v6980_v11 = vcombine.high %v243_v2, %v247_v3  ;;  %v6979_v15 = vcombine.low %v243_v2, %v247_v3 }
  0x32   : > { %701 = vmatprep.subr.bf16.mxu0 %v6974_v58  ;;  %754 = vmatprep.subr.bf16.mxu1 %v6976_v59  ;;  %v255_v58 = vld [vmem:[%s9985_s25 + $0xb8] sm:$0xff]  ;;  %v6996_v59 = vcombine.high %v259_v49, %v263_v50  ;;  %v302_v14 = vld [vmem:[%s9985_s25 + $0x230] sm:$0xff]  ;;  %v9329_v50 = vld [vmem:[%s11894_s3 + $0xc8] sm:$0xff]  }
  0x33   : > { %v6987_v7 = vcombine.low %v251_v57, %v255_v58  ;;  %v239_v10 = vld [vmem:[%s9985_s25 + $0x38] sm:$0xff]  ;;  %v9311_v32 = vld [vmem:[%s11894_s3 + $0xb0] sm:$0xff]  }
  0x34   : > { %v303_v18 = vld [vmem:[%s9985_s25 + $0x238] sm:$0xff]  ;;  %v9312_v33 = vld [vmem:[%s11894_s3 + $0x30] sm:$0xff]  }
  0x35   : > { %702 = vmatpush1.bf16.msra.mxu0 %v6973_v1  ;;  %755 = vmatpush1.bf16.msra.mxu1 %v6975_v4  ;;  %v6986_v1 = vcombine.high %v250_v53, %v254_v54  ;;  %v6988_v4 = vcombine.high %v251_v57, %v255_v58  ;;  %v9305_v27 = vld [vmem:[%s11894_s3 + $0xf8] sm:$0xff]   ;;  %v9325_v46 = vld [vmem:[%s11894_s3 + $0xd0] sm:$0xff]   ;;  %v9336_v57 = vld [vmem:[%s11894_s3] sm:$0xff]  }
  0x36   : > { %703 = vmatprep.subr.bf16.mxu0 %v6966_v5  ;;  %756 = vmatprep.subr.bf16.mxu1 %v6968_v8  ;;  %v6985_v5 = vcombine.low %v250_v53, %v254_v54  ;;  %v6978_v8 = vcombine.high %v242_v61, %v246_v62  ;;  %v9306_v28 = vld [vmem:[%s11894_s3 + $0x78] sm:$0xff]   ;;  %v9328_v49 = vld [vmem:[%s11894_s3 + $0x10] sm:$0xff]   ;;  %v9332_v53 = vld [vmem:[%s11894_s3 + $0x8] sm:$0xff]  }
  0x37   : > { %v9324_v45 = vld [vmem:[%s11894_s3 + $0x18] sm:$0xff]   ;;  %v9333_v54 = vld [vmem:[%s11894_s3 + $0xc0] sm:$0xff]  }
  0x38   : > { %v9337_v58 = vld [vmem:[%s11894_s3 + $0x178] sm:$0xff]  }
  0x39   : > { %704 = vmatpush1.bf16.msra.mxu0 %v6965_v9  ;;  %757 = vmatpush1.bf16.msra.mxu1 %v6967_v12  ;;  %v235_v9 = vld [vmem:[%s9985_s25 + $0x18] sm:$0xff]  ;;  %v6977_v12 = vcombine.low %v242_v61, %v246_v62 }
  0x3a   : > { %719 = vmatprep.subr.bf16.mxu0 %v7030_v13  ;;  %772 = vmatprep.subr.bf16.mxu1 %v7032_v16  ;;  %v298_v13 = vld [vmem:[%s9985_s25 + $0x210] sm:$0xff]  ;;  %v6972_v19 = vcombine.high %v235_v9, %v239_v10 }
  0x3b   : > { %v7034_v23 = vcombine.high %v298_v13, %v302_v14 }
  0x3d   : > { %720 = vmatpush2.bf16.msra.mxu0 %v7029_v17  ;;  %773 = vmatpush2.bf16.msra.mxu1 %v7031_v20  ;;  %v299_v17 = vld [vmem:[%s9985_s25 + $0x218] sm:$0xff] }
  0x3e   : > { %795 = vmatprep.subr.bf16.mxu0 %v7026_v22  ;;  %848 = vmatprep.subr.bf16.mxu1 %v7028_v25  ;;  %v6971_v22 = vcombine.low %v235_v9, %v239_v10  ;;  %v7036_v24 = vcombine.high %v299_v17, %v303_v18  ;;  %v7033_v25 = vcombine.low %v298_v13, %v302_v14 }
  0x40   : > { %722 = vmatmul.mubr.bf16.vlgmr.msra.gmra.mxu0 %v10032_v21  ;;  %775 = vmatmul.mubr.bf16.vlgmr.msra.gmra.mxu1 %v10032_v21 }
  0x41   : > { %796 = vmatpush1.bf16.msra.mxu0 %v7025_v26  ;;  %849 = vmatpush1.bf16.msra.mxu1 %v7027_v30  ;;  %v7035_v26 = vcombine.low %v299_v17, %v303_v18  ;;  %v9309_v30 = vld [vmem:[%s11894_s3 + $0xf0] sm:$0xff]  }
  0x42   : > { %797 = vmatprep.subr.bf16.mxu0 %v7018_v31  ;;  %850 = vmatprep.subr.bf16.mxu1 %v7020_v34  ;;  %v9310_v31 = vld [vmem:[%s11894_s3 + $0x70] sm:$0xff]   ;;  %v9313_v34 = vld [vmem:[%s11894_s3 + $0xe8] sm:$0xff]  }
  0x43   : > { %7038 = vmatprep.mubr.msk.bf16.mxu0 %vm682_vm0, %v10041_v29  ;;  %7040 = vmatprep.mubr.msk.bf16.mxu1 %vm682_vm0, %v10041_v29 }
  0x45   : > { %798 = vmatpush1.bf16.msra.mxu0 %v7017_v35  ;;  %851 = vmatpush1.bf16.msra.mxu1 %v7019_v38  ;;  %v9314_v35 = vld [vmem:[%s11894_s3 + $0x68] sm:$0xff]   ;;  %v9317_v38 = vld [vmem:[%s11894_s3 + $0xe0] sm:$0xff]  }
  0x46   : > { %799 = vmatprep.subr.bf16.mxu0 %v7010_v39  ;;  %852 = vmatprep.subr.bf16.mxu1 %v7012_v43  ;;  %v9318_v39 = vld [vmem:[%s11894_s3 + $0x60] sm:$0xff]   ;;  %v9322_v43 = vld [vmem:[%s11894_s3 + $0x58] sm:$0xff]  }
  0x48   : > { %732 = vmatmul.mubr.bf16.gmra.mxu0 %v10054_v42  ;;  %785 = vmatmul.mubr.bf16.gmra.mxu1 %v10054_v42 }
  0x49   : > { %800 = vmatpush1.bf16.msra.mxu0 %v7009_v44  ;;  %853 = vmatpush1.bf16.msra.mxu1 %v7011_v47  ;;  %v9323_v44 = vld [vmem:[%s11894_s3 + $0x98] sm:$0xff]   ;;  %v9326_v47 = vld [vmem:[%s11894_s3 + $0x50] sm:$0xff]  }
  0x4a   : > { %801 = vmatprep.subr.bf16.mxu0 %v7002_v48  ;;  %854 = vmatprep.subr.bf16.mxu1 %v7004_v51  ;;  %v9327_v48 = vld [vmem:[%s11894_s3 + $0x90] sm:$0xff]   ;;  %v9330_v51 = vld [vmem:[%s11894_s3 + $0x48] sm:$0xff]  }
  0x4b   : > { %7041 = vmatprep.mubr.msk.bf16.mxu0 %vm682_vm0, %v9963_v0  ;;  %7043 = vmatprep.mubr.msk.bf16.mxu1 %vm682_vm0, %v9963_v0  ;;  %v234_v0 = vld [vmem:[%s9985_s25 + $0x10] sm:$0xff]  ;;  %s6889_s25 = scalar_lea.sflag [#allocation4], %s215_s10 }
  0x4c   : > { %v6970_v16 = vcombine.high %v234_v0, %v238_v6  ;;  %v6969_v20 = vcombine.low %v234_v0, %v238_v6 }
  0x4d   : > { %802 = vmatpush1.bf16.msra.mxu0 %v7001_v52  ;;  %855 = vmatpush1.bf16.msra.mxu1 %v7003_v55  ;;  %v9331_v52 = vld [vmem:[%s11894_s3 + $0x88] sm:$0xff]   ;;  %v9334_v55 = vld [vmem:[%s11894_s3 + $0x40] sm:$0xff]  }
  0x4e   : > { %803 = vmatprep.subr.bf16.mxu0 %v6994_v56  ;;  %856 = vmatprep.subr.bf16.mxu1 %v6996_v59  ;;  %v9335_v56 = vld [vmem:[%s11894_s3 + $0x80] sm:$0xff]   ;;  %v9338_v59 = vld [vmem:[%s11894_s3 + $0x1f8] sm:$0xff]  }
  0x51   : > { %804 = vmatpush1.bf16.msra.mxu0 %v6993_v60  ;;  %857 = vmatpush1.bf16.msra.mxu1 %v6995_v63 }
  0x52   : > { %805 = vmatprep.subr.bf16.mxu0 %v6986_v1  ;;  %858 = vmatprep.subr.bf16.mxu1 %v6988_v4 }
  0x55   : > { %806 = vmatpush1.bf16.msra.mxu0 %v6985_v5  ;;  %859 = vmatpush1.bf16.msra.mxu1 %v6987_v7 }
  0x56   : > { %807 = vmatprep.subr.bf16.mxu0 %v6978_v8  ;;  %860 = vmatprep.subr.bf16.mxu1 %v6980_v11 }
  0x59   : > { %808 = vmatpush1.bf16.msra.mxu0 %v6977_v12  ;;  %861 = vmatpush1.bf16.msra.mxu1 %v6979_v15 }
  0x5a   : > { %809 = vmatprep.subr.bf16.mxu0 %v6970_v16  ;;  %862 = vmatprep.subr.bf16.mxu1 %v6972_v19 }
  0x5d   : > { %810 = vmatpush1.bf16.msra.mxu0 %v6969_v20  ;;  %863 = vmatpush1.bf16.msra.mxu1 %v6971_v22 }
  0x5e   : > { %825 = vmatprep.subr.bf16.mxu0 %v7034_v23  ;;  %878 = vmatprep.subr.bf16.mxu1 %v7036_v24 }
  0x61   : > { %826 = vmatpush2.bf16.msra.mxu0 %v7033_v25  ;;  %879 = vmatpush2.bf16.msra.mxu1 %v7035_v26 }
  0x62   : > { %8552 = vmatprep.subr.bf16.mxu0 %v9305_v27  ;;  %8574 = vmatprep.subr.bf16.mxu1 %v9306_v28 }
  0x64   : > { %828 = vmatmul.mubr.bf16.vlgmr.msra.gmra.mxu0 %v10032_v21  ;;  %881 = vmatmul.mubr.bf16.vlgmr.msra.gmra.mxu1 %v10032_v21  ;;  %v9307_v21 = vld [vmem:[%s11894_s3 + $0xb8] sm:$0xff]  }
  0x65   : > { %7042 = vmatprep.mubr.msk.bf16.mxu0 %vm682_vm0, %v10041_v29  ;;  %7044 = vmatprep.mubr.msk.bf16.mxu1 %vm682_vm0, %v10041_v29  ;;  %v9308_v29 = vld [vmem:[%s11894_s3 + $0x38] sm:$0xff]  }
  0x66   : > { %8553 = vmatpush3.bf16.msra.mxu0 %v9307_v21  ;;  %8575 = vmatpush3.bf16.msra.mxu1 %v9308_v29 }
  0x67   : > { %8554 = vmatprep.subr.bf16.mxu0 %v9309_v30  ;;  %8576 = vmatprep.subr.bf16.mxu1 %v9310_v31  ;;  %v971_v31 = vlaneseq }
  0x6a   : > { %8555 = vmatpush3.bf16.msra.mxu0 %v9311_v32  ;;  %8577 = vmatpush3.bf16.msra.mxu1 %v9312_v33 }
  0x6b   : > { %8556 = vmatprep.subr.bf16.mxu0 %v9313_v34  ;;  %8578 = vmatprep.subr.bf16.mxu1 %v9314_v35 }
  0x6c   : > { %838 = vmatmul.mubr.bf16.gmra.mxu0 %v10054_v42  ;;  %891 = vmatmul.mubr.bf16.gmra.mxu1 %v10054_v42  ;;  %v9321_v42 = vld [vmem:[%s11894_s3 + $0xd8] sm:$0xff]  }
  0x6e   : > { %8557 = vmatpush3.bf16.msra.mxu0 %v9315_v36  ;;  %8579 = vmatpush3.bf16.msra.mxu1 %v9316_v37 }
  0x6f   : > { %8558 = vmatprep.subr.bf16.mxu0 %v9317_v38  ;;  %8580 = vmatprep.subr.bf16.mxu1 %v9318_v39 }
  0x72   : > { %8559 = vmatpush3.bf16.msra.mxu0 %v9319_v40  ;;  %8581 = vmatpush3.bf16.msra.mxu1 %v9320_v41 }
  0x73   : > { %8560 = vmatprep.subr.bf16.mxu0 %v9321_v42  ;;  %8582 = vmatprep.subr.bf16.mxu1 %v9322_v43 }
  0x76   : > { %8561 = vmatpush3.bf16.msra.mxu0 %v9323_v44  ;;  %8583 = vmatpush3.bf16.msra.mxu1 %v9324_v45 }
  0x77   : > { %8562 = vmatprep.subr.bf16.mxu0 %v9325_v46  ;;  %8584 = vmatprep.subr.bf16.mxu1 %v9326_v47 }
  0x7a   : > { %8563 = vmatpush3.bf16.msra.mxu0 %v9327_v48  ;;  %8585 = vmatpush3.bf16.msra.mxu1 %v9328_v49  ;;  %v972_v48 = vshrl.u32 %v971_v31, 7 }
  0x7b   : > { %8564 = vmatprep.subr.bf16.mxu0 %v9329_v50  ;;  %8586 = vmatprep.subr.bf16.mxu1 %v9330_v51 }
  0x7e   : > { %8565 = vmatpush3.bf16.msra.mxu0 %v9331_v52  ;;  %8587 = vmatpush3.bf16.msra.mxu1 %v9332_v53 }
  0x7f   : > { %8566 = vmatprep.subr.bf16.mxu0 %v9333_v54  ;;  %8588 = vmatprep.subr.bf16.mxu1 %v9334_v55 }
  0x82   : > { %8567 = vmatpush3.bf16.msra.mxu0 %v9335_v56  ;;  %8589 = vmatpush3.bf16.msra.mxu1 %v9336_v57 }
  0x83   : > { %8596 = vmatprep.subr.bf16.mxu0 %v9337_v58  ;;  %8618 = vmatprep.subr.bf16.mxu1 %v9338_v59 }
  0x91   : > { %v928_v16 = vpop.permute.xlu0 %927  ;;  %v938_v40 = vpop.permute.xlu1 %937 }
  0x95   : > { %v933_v34 = vpop.permute.xlu0 %932 }
 0x100   : > { %v723_v60 = vpop.f32.mrf.mxu0  ;;  %v776_v61 = vpop.f32.mrf.mxu1 }
 0x101   : > { %v901_v14 = vmax.f32 %v723_v60, %v776_v61 }
 0x102   : > { %v725_v62 = vpop.f32.mrf.mxu0  ;;  %v778_v63 = vpop.f32.mrf.mxu1 }
 0x103   : > { %v902_v19 = vmax.f32 %v725_v62, %v778_v63  ;;  %v943_v63 = vpop.permute.xlu1 %942 }
 0x104   : > { %v727_v1 = vpop.f32.mrf.mxu0  ;;  %v780_v2 = vpop.f32.mrf.mxu1 }
 0x105   : > { %v903_v25 = vmax.f32 %v727_v1, %v780_v2  ;;  %v10208_v1 = vsub.s32 0, %v972_v48  ;;  %v10210_v2 = vsub.s32 1, %v972_v48  ;;  %v9359_v48 = vld [vmem:[%s11894_s3 + $0x110] sm:$0xff]  }
 0x106   : > { %v729_v3 = vpop.f32.mrf.mxu0  ;;  %v782_v4 = vpop.f32.mrf.mxu1 }
 0x107   : > { %v904_v29 = vmax.f32 %v729_v3, %v782_v4 }
 0x108   : > { %v733_v5 = vpop.f32.mrf.mxu0  ;;  %v786_v0 = vpop.f32.mrf.mxu1 }
 0x109   : > { %v905_v38 = vmax.f32 %v733_v5, %v786_v0 }
 0x10a   : > { %v735_v6 = vpop.f32.mrf.mxu0  ;;  %v788_v7 = vpop.f32.mrf.mxu1 }
 0x10b   : > { %v906_v46 = vmax.f32 %v735_v6, %v788_v7 }
 0x10c   : > { %v10196_v8 = vpop.f32.mrf.mxu0  ;;  %v10198_v9 = vpop.f32.mrf.mxu1 }
 0x10d   : > { %v907_v54 = vmax.f32 %v10196_v8, %v10198_v9 }
 0x10e   : > { %v10200_v10 = vpop.f32.mrf.mxu0  ;;  %v10202_v11 = vpop.f32.mrf.mxu1 }
 0x10f   : > { %v908_v61 = vmax.f32 %v10200_v10, %v10202_v11 }
 0x124   : > { %v829_v12 = vpop.f32.mrf.mxu0  ;;  %v882_v13 = vpop.f32.mrf.mxu1 }
 0x125   : > { %v909_v15 = vmax.f32 %v829_v12, %v882_v13 }
 0x126   : > { %v831_v17 = vpop.f32.mrf.mxu0  ;;  %v884_v18 = vpop.f32.mrf.mxu1 }
 0x127   : > { %v917_v20 = vmax.f32 %v901_v14, %v909_v15  ;;  %v910_v22 = vmax.f32 %v831_v17, %v884_v18 }
 0x128   : > { %v833_v23 = vpop.f32.mrf.mxu0  ;;  %v886_v24 = vpop.f32.mrf.mxu1 }
 0x129   : > { %v945_v26 = vadd.f32 %v928_v16, %v917_v20  ;;  %v918_v27 = vmax.f32 %v902_v19, %v910_v22  ;;  %v911_v28 = vmax.f32 %v833_v23, %v886_v24  ;;  %v9339_v24 = vld [vmem:[%s11894_s3 + $0x138] sm:$0xff]  }
 0x12a   : > { %v835_v21 = vpop.f32.mrf.mxu0  ;;  %v888_v30 = vpop.f32.mrf.mxu1 }
 0x12b   : > { %v953_v32 = vmax.f32 %v945_v26, 0.0  ;;  %v946_v33 = vadd.f32 %v928_v16, %v918_v27  ;;  %v919_v35 = vmax.f32 %v903_v25, %v911_v28  ;;  %v912_v36 = vmax.f32 %v835_v21, %v888_v30  ;;  %v9340_v27 = vld [vmem:[%s11894_s3 + $0x1b8] sm:$0xff]   ;;  %v9341_v21 = vld [vmem:[%s11894_s3 + $0x170] sm:$0xff]  }
 0x12c   : > { %v839_v37 = vpop.f32.mrf.mxu0  ;;  %v892_v39 = vpop.f32.mrf.mxu1  ;;  %v9342_v30 = vld [vmem:[%s11894_s3 + $0x1f0] sm:$0xff]  }
 0x12d   : > { %961 = vst [vmem:[#allocation2] sm:$0xff] %v953_v32  ;;  %v954_v41 = vmax.f32 %v946_v33, 0.0  ;;  %v947_v42 = vadd.f32 %v933_v34, %v919_v35  ;;  %v920_v43 = vmax.f32 %v904_v29, %v912_v36  ;;  %v913_v44 = vmax.f32 %v839_v37, %v892_v39  ;;  %v9343_v32 = vld [vmem:[%s11894_s3 + $0x130] sm:$0xff]   ;;  %v9346_v35 = vld [vmem:[%s11894_s3 + $0x1e8] sm:$0xff]   ;;  %v9350_v39 = vld [vmem:[%s11894_s3 + $0x1e0] sm:$0xff]  }
 0x12e   : > { %v841_v45 = vpop.f32.mrf.mxu0  ;;  %v894_v47 = vpop.f32.mrf.mxu1  ;;  %v9344_v33 = vld [vmem:[%s11894_s3 + $0x1b0] sm:$0xff]   ;;  %v9347_v36 = vld [vmem:[%s11894_s3 + $0x128] sm:$0xff]  }
 0x12f   : > { %962 = vst [vmem:[#allocation2 + $0x8] sm:$0xff] %v954_v41  ;;  %v955_v49 = vmax.f32 %v947_v42, 0.0  ;;  %v948_v50 = vadd.f32 %v933_v34, %v920_v43  ;;  %v921_v51 = vmax.f32 %v905_v38, %v913_v44  ;;  %v914_v52 = vmax.f32 %v841_v45, %v894_v47  ;;  %v9345_v34 = vld [vmem:[%s11894_s3 + $0x168] sm:$0xff]   ;;  %v9349_v38 = vld [vmem:[%s11894_s3 + $0x160] sm:$0xff]   ;;  %v9353_v42 = vld [vmem:[%s11894_s3 + $0x158] sm:$0xff]  }
 0x130   : > { %v843_v53 = vpop.f32.mrf.mxu0  ;;  %v896_v55 = vpop.f32.mrf.mxu1  ;;  %v9348_v37 = vld [vmem:[%s11894_s3 + $0x1a8] sm:$0xff]   ;;  %v9352_v41 = vld [vmem:[%s11894_s3 + $0x1a0] sm:$0xff]   ;;  %v9354_v43 = vld [vmem:[%s11894_s3 + $0x1d8] sm:$0xff]  }
 0x131   : > { %963 = vst [vmem:[#allocation2 + $0x10] sm:$0xff] %v955_v49  ;;  %v956_v56 = vmax.f32 %v948_v50, 0.0  ;;  %v922_v57 = vmax.f32 %v906_v46, %v914_v52  ;;  %v949_v58 = vadd.f32 %v938_v40, %v921_v51  ;;  %v915_v59 = vmax.f32 %v843_v53, %v896_v55  ;;  %v9355_v44 = vld [vmem:[%s11894_s3 + $0x118] sm:$0xff]   ;;  %v9357_v46 = vld [vmem:[%s11894_s3 + $0x150] sm:$0xff]   ;;  %v9361_v50 = vld [vmem:[%s11894_s3 + $0x148] sm:$0xff]  }
 0x132   : > { %v845_v60 = vpop.f32.mrf.mxu0  ;;  %v898_v62 = vpop.f32.mrf.mxu1  ;;  %v9356_v45 = vld [vmem:[%s11894_s3 + $0x198] sm:$0xff]   ;;  %v9358_v47 = vld [vmem:[%s11894_s3 + $0x1d0] sm:$0xff]   ;;  %v9362_v51 = vld [vmem:[%s11894_s3 + $0x1c8] sm:$0xff]  }
 0x133   : > { %964 = vst [vmem:[#allocation2 + $0x18] sm:$0xff] %v956_v56  ;;  %v950_v3 = vadd.f32 %v938_v40, %v922_v57  ;;  %v957_v4 = vmax.f32 %v949_v58, 0.0  ;;  %v916_v5 = vmax.f32 %v845_v60, %v898_v62  ;;  %v923_v0 = vmax.f32 %v907_v54, %v915_v59  ;;  %v9351_v40 = vld [vmem:[%s11894_s3 + $0x120] sm:$0xff]   ;;  %v9360_v49 = vld [vmem:[%s11894_s3 + $0x190] sm:$0xff]   ;;  %v9363_v52 = vld [vmem:[%s11894_s3 + $0x108] sm:$0xff]  }
 0x134   : > { %v9364_v53 = vld [vmem:[%s11894_s3 + $0x188] sm:$0xff]   ;;  %v9365_v54 = vld [vmem:[%s11894_s3 + $0x140] sm:$0xff]   ;;  %v9369_v59 = vld [vmem:[%s11894_s3 + $0x278] sm:$0xff]  }
 0x135   : > { %v958_v6 = vmax.f32 %v950_v3, 0.0  ;;  %965 = vst [vmem:[#allocation2 + $0x20] sm:$0xff] %v957_v4  ;;  %v924_v7 = vmax.f32 %v908_v61, %v916_v5  ;;  %v951_v8 = vadd.f32 %v943_v63, %v923_v0  ;;  %v9366_v55 = vld [vmem:[%s11894_s3 + $0x1c0] sm:$0xff]   ;;  %v9370_v61 = vld [vmem:[%s11894_s3 + $0x2f8] sm:$0xff]  }
 0x136   : > { %v1016_v9 = vld [vmem:[#allocation2 + $0x1] ss:$8 sm:$0x3]  ;;  %v969_v12 = vld [vmem:[#allocation2] ss:$8 sm:$0x3] }
 0x137   : > { %966 = vst [vmem:[#allocation2 + $0x28] sm:$0xff] %v958_v6  ;;  %v952_v13 = vadd.f32 %v943_v63, %v924_v7  ;;  %v959_v10 = vmax.f32 %v951_v8, 0.0  ;;  %v1021_v11 = vrot.slane %v1016_v9, %v10208_v1  ;;  %v1025_v14 = vrot.slane %v1016_v9, %v10210_v2  ;;  %v10214_v15 = vld [vmem:[#allocation2 + $0x2] ss:$8 sm:$0x3]  ;;  %v9371_v3 = vld [vmem:[%s11894_s3 + $0x238] sm:$0xff]  }
 0x138   : > { %v974_v16 = vrot.slane %v969_v12, %v10208_v1  ;;  %v978_v17 = vrot.slane %v969_v12, %v10210_v2  ;;  %v1345_v18 = vrot.slane %v10214_v15, %v10210_v2  ;;  %v10220_v19 = vld [vmem:[#allocation2 + $0x3] ss:$8 sm:$0x3]  ;;  %v10311_v57 = vld [vmem:[#allocation2 + $0x4] ss:$8 sm:$0x3]  ;;  %v1341_v60 = vrot.slane %v10214_v15, %v10208_v1 }
 0x139   : > { %v960_v20 = vmax.f32 %v952_v13, 0.0  ;;  %967 = vst [vmem:[#allocation2 + $0x30] sm:$0xff] %v959_v10  ;;  %v1028_v22 = vpack.c.bf16 %v1021_v11, %v1021_v11  ;;  %v1029_v23 = vpack.c.bf16 %v1025_v14, %v1025_v14  ;;  %v1530_v28 = vrot.slane %v10220_v19, %v10210_v2  ;;  %v9367_v56 = vld [vmem:[%s11894_s3 + $0x100] sm:$0xff]   ;;  %v9372_v5 = vld [vmem:[%s11894_s3 + $0x2b8] sm:$0xff]   ;;  %v9373_v6 = vld [vmem:[%s11894_s3 + $0x270] sm:$0xff]  }
 0x13a   : > { %v981_v25 = vpack.c.bf16 %v974_v16, %v974_v16  ;;  %v982_v26 = vpack.c.bf16 %v978_v17, %v978_v17  ;;  %v1349_v29 = vpack.c.bf16 %v1345_v18, %v1345_v18  ;;  %v9368_v58 = vld [vmem:[%s11894_s3 + $0x180] sm:$0xff]   ;;  %v1526_v63 = vrot.slane %v10220_v19, %v10208_v1  ;;  %v9374_v8 = vld [vmem:[%s11894_s3 + $0x2f0] sm:$0xff]   ;;  %v9377_v14 = vld [vmem:[%s11894_s3 + $0x268] sm:$0xff]  }
 0x13b   : > { %968 = vst [vmem:[#allocation2 + $0x38] sm:$0xff] %v960_v20  ;;  %1191 = vmatprep.mubr.bf16.mxu0 %v1029_v23  ;;  %v1534_v31 = vpack.c.bf16 %v1530_v28, %v1530_v28  ;;  %v10324_v62 = vld [vmem:[#allocation2 + $0x5] ss:$8 sm:$0x3]  ;;  %v1715_v4 = vrot.slane %v10311_v57, %v10210_v2  ;;  %v1348_v7 = vpack.c.bf16 %v1341_v60, %v1341_v60  ;;  %v9375_v10 = vld [vmem:[%s11894_s3 + $0x230] sm:$0xff]   ;;  %v9385_v23 = vld [vmem:[%s11894_s3 + $0x258] sm:$0xff]  }
 0x13c   : > { %1327 = vmatprep.mubr.bf16.mxu1 %v982_v26  ;;  %1192 = vmatmul.mubr.bf16.vlgmr.msra.gmra.mxu0 %v1028_v22  ;;  %v1900_v0 = vrot.slane %v10324_v62, %v10210_v2  ;;  %v1533_v9 = vpack.c.bf16 %v1526_v63, %v1526_v63  ;;  %v9376_v11 = vld [vmem:[%s11894_s3 + $0x2b0] sm:$0xff]   ;;  %v9378_v15 = vld [vmem:[%s11894_s3 + $0x2e8] sm:$0xff]   ;;  %v9381_v18 = vld [vmem:[%s11894_s3 + $0x260] sm:$0xff]  }
 0x13d   : > { %1328 = vmatmul.mubr.bf16.vlgmr.msra.gmra.mxu1 %v981_v25  ;;  %8597 = vmatpush3.bf16.msra.mxu0 %v9339_v24  ;;  %v1719_v12 = vpack.c.bf16 %v1715_v4, %v1715_v4  ;;  %v9379_v16 = vld [vmem:[%s11894_s3 + $0x228] sm:$0xff]   ;;  %v9382_v19 = vld [vmem:[%s11894_s3 + $0x2e0] sm:$0xff]   ;;  %v9386_v24 = vld [vmem:[%s11894_s3 + $0x2d8] sm:$0xff]  }
 0x13e   : > { %8619 = vmatpush3.bf16.msra.mxu1 %v9340_v27  ;;  %1511 = vmatprep.mubr.bf16.mxu0 %v1349_v29  ;;  %v1904_v13 = vpack.c.bf16 %v1900_v0, %v1900_v0  ;;  %v9380_v17 = vld [vmem:[%s11894_s3 + $0x2a8] sm:$0xff]   ;;  %v9383_v20 = vld [vmem:[%s11894_s3 + $0x220] sm:$0xff]   ;;  %v9387_v25 = vld [vmem:[%s11894_s3 + $0x218] sm:$0xff]  }
 0x13f   : > { %1696 = vmatprep.mubr.bf16.mxu1 %v1534_v31  ;;  %8598 = vmatprep.subr.bf16.mxu0 %v9341_v21  ;;  %v9384_v22 = vld [vmem:[%s11894_s3 + $0x2a0] sm:$0xff]   ;;  %v9388_v26 = vld [vmem:[%s11894_s3 + $0x298] sm:$0xff]   ;;  %v9389_v27 = vld [vmem:[%s11894_s3 + $0x250] sm:$0xff]  }
 0x140   : > { %8620 = vmatprep.subr.bf16.mxu1 %v9342_v30  ;;  %v9390_v28 = vld [vmem:[%s11894_s3 + $0x2d0] sm:$0xff]   ;;  %v9393_v30 = vld [vmem:[%s11894_s3 + $0x248] sm:$0xff]   ;;  %v9413_v60 = vld [vmem:[%s11894_s3 + $0x360] sm:$0xff]  }
 0x141   : > { %8599 = vmatpush3.bf16.msra.mxu0 %v9343_v32  ;;  %v9391_v21 = vld [vmem:[%s11894_s3 + $0x210] sm:$0xff]   ;;  %v9394_v31 = vld [vmem:[%s11894_s3 + $0x2c8] sm:$0xff]   ;;  %v9416_v63 = vld [vmem:[%s11894_s3 + $0x3a0] sm:$0xff]  }
 0x142   : > { %8621 = vmatpush3.bf16.msra.mxu1 %v9344_v33  ;;  %8600 = vmatprep.subr.bf16.mxu0 %v9345_v34  ;;  %v9392_v29 = vld [vmem:[%s11894_s3 + $0x290] sm:$0xff]   ;;  %v9395_v32 = vld [vmem:[%s11894_s3 + $0x208] sm:$0xff]   ;;  %v9397_v34 = vld [vmem:[%s11894_s3 + $0x240] sm:$0xff]  }
 0x143   : > { %8622 = vmatprep.subr.bf16.mxu1 %v9346_v35  ;;  %v9396_v33 = vld [vmem:[%s11894_s3 + $0x288] sm:$0xff]   ;;  %v9398_v35 = vld [vmem:[%s11894_s3 + $0x2c0] sm:$0xff]   ;;  %v9418_v4 = vld [vmem:[%s11894_s3 + $0x3d8] sm:$0xff]  }
 0x144   : > { %v9420_v0 = vld [vmem:[%s11894_s3 + $0x398] sm:$0xff]  }
 0x145   : > { %8601 = vmatpush3.bf16.msra.mxu0 %v9347_v36  ;;  %v9399_v36 = vld [vmem:[%s11894_s3 + $0x200] sm:$0xff]  }
 0x146   : > { %8623 = vmatpush3.bf16.msra.mxu1 %v9348_v37  ;;  %8602 = vmatprep.subr.bf16.mxu0 %v9349_v38  ;;  %v10419_v37 = vld [vmem:[#allocation2 + $0x6] ss:$8 sm:$0x3] }
 0x147   : > { %8624 = vmatprep.subr.bf16.mxu1 %v9350_v39  ;;  %v9400_v38 = vld [vmem:[%s11894_s3 + $0x280] sm:$0xff]   ;;  %v9401_v39 = vld [vmem:[%s11894_s3 + $0x378] sm:$0xff]  }
 0x149   : > { %8603 = vmatpush3.bf16.msra.mxu0 %v9351_v40  ;;  %v1711_v40 = vrot.slane %v10311_v57, %v10208_v1  ;;  %v9410_v57 = vld [vmem:[%s11894_s3 + $0x3e8] sm:$0xff]  }
 0x14a   : > { %8625 = vmatpush3.bf16.msra.mxu1 %v9352_v41  ;;  %8604 = vmatprep.subr.bf16.mxu0 %v9353_v42  ;;  %v9402_v41 = vld [vmem:[%s11894_s3 + $0x3f8] sm:$0xff]   ;;  %v10432_v42 = vld [vmem:[#allocation2 + $0x7] ss:$8 sm:$0x3] }
 0x14b   : > { %8626 = vmatprep.subr.bf16.mxu1 %v9354_v43  ;;  %v1896_v43 = vrot.slane %v10324_v62, %v10208_v1  ;;  %v9415_v62 = vld [vmem:[%s11894_s3 + $0x320] sm:$0xff]  }
 0x14d   : > { %8605 = vmatpush3.bf16.msra.mxu0 %v9355_v44  ;;  %v9403_v44 = vld [vmem:[%s11894_s3 + $0x338] sm:$0xff]  }
 0x14e   : > { %8627 = vmatpush3.bf16.msra.mxu1 %v9356_v45  ;;  %8606 = vmatprep.subr.bf16.mxu0 %v9357_v46  ;;  %v2085_v45 = vrot.slane %v10419_v37, %v10210_v2  ;;  %v9404_v46 = vld [vmem:[%s11894_s3 + $0x3b8] sm:$0xff]  }
 0x14f   : > { %8628 = vmatprep.subr.bf16.mxu1 %v9358_v47  ;;  %v2270_v47 = vrot.slane %v10432_v42, %v10210_v2 }
 0x151   : > { %8607 = vmatpush3.bf16.msra.mxu0 %v9359_v48  ;;  %v9405_v48 = vld [vmem:[%s11894_s3 + $0x370] sm:$0xff]  }
 0x152   : > { %8629 = vmatpush3.bf16.msra.mxu1 %v9360_v49  ;;  %8608 = vmatprep.subr.bf16.mxu0 %v9361_v50  ;;  %v1718_v49 = vpack.c.bf16 %v1711_v40, %v1711_v40  ;;  %v9406_v50 = vld [vmem:[%s11894_s3 + $0x3f0] sm:$0xff]   ;;  %v9445_v40 = vld [vmem:[%s11894_s3 + $0x460] sm:$0xff]  }
 0x153   : > { %8630 = vmatprep.subr.bf16.mxu1 %v9362_v51  ;;  %v1903_v51 = vpack.c.bf16 %v1896_v43, %v1896_v43  ;;  %v9448_v43 = vld [vmem:[%s11894_s3 + $0x4a0] sm:$0xff]  }
 0x155   : > { %8609 = vmatpush3.bf16.msra.mxu0 %v9363_v52  ;;  %v2089_v52 = vpack.c.bf16 %v2085_v45, %v2085_v45  ;;  %v9450_v45 = vld [vmem:[%s11894_s3 + $0x4d8] sm:$0xff]  }
 0x156   : > { %8631 = vmatpush3.bf16.msra.mxu1 %v9364_v53  ;;  %8610 = vmatprep.subr.bf16.mxu0 %v9365_v54  ;;  %v2274_v53 = vpack.c.bf16 %v2270_v47, %v2270_v47  ;;  %v9407_v54 = vld [vmem:[%s11894_s3 + $0x330] sm:$0xff]   ;;  %v9452_v47 = vld [vmem:[%s11894_s3 + $0x498] sm:$0xff]  }
 0x157   : > { %8632 = vmatprep.subr.bf16.mxu1 %v9366_v55  ;;  %v9408_v55 = vld [vmem:[%s11894_s3 + $0x3b0] sm:$0xff]  }
 0x159   : > { %8611 = vmatpush3.bf16.msra.mxu0 %v9367_v56  ;;  %v9409_v56 = vld [vmem:[%s11894_s3 + $0x368] sm:$0xff]  }
 0x15a   : > { %8633 = vmatpush3.bf16.msra.mxu1 %v9368_v58  ;;  %8640 = vmatprep.subr.bf16.mxu0 %v9369_v59  ;;  %v9411_v58 = vld [vmem:[%s11894_s3 + $0x328] sm:$0xff]  }
 0x15b   : > { %8662 = vmatprep.subr.bf16.mxu1 %v9370_v61  ;;  %v9412_v59 = vld [vmem:[%s11894_s3 + $0x3a8] sm:$0xff]   ;;  %v9414_v61 = vld [vmem:[%s11894_s3 + $0x3e0] sm:$0xff]  }
 0x15c   : > { %1512 = vmatmul.mubr.bf16.vlgmr.msra.gmra.mxu0 %v1348_v7  ;;  %v9422_v7 = vld [vmem:[%s11894_s3 + $0x3d0] sm:$0xff]  }
 0x15d   : > { %1697 = vmatmul.mubr.bf16.vlgmr.msra.gmra.mxu1 %v1533_v9  ;;  %8641 = vmatpush3.bf16.msra.mxu0 %v9371_v3  ;;  %v9417_v3 = vld [vmem:[%s11894_s3 + $0x358] sm:$0xff]   ;;  %v9424_v9 = vld [vmem:[%s11894_s3 + $0x390] sm:$0xff]  }
 0x15e   : > { %1881 = vmatprep.mubr.bf16.mxu0 %v1719_v12  ;;  %8663 = vmatpush3.bf16.msra.mxu1 %v9372_v5  ;;  %v9419_v5 = vld [vmem:[%s11894_s3 + $0x318] sm:$0xff]   ;;  %v9425_v12 = vld [vmem:[%s11894_s3 + $0x348] sm:$0xff]  }
 0x15f   : > { %2066 = vmatprep.mubr.bf16.mxu1 %v1904_v13  ;;  %8642 = vmatprep.subr.bf16.mxu0 %v9373_v6  ;;  %v9421_v6 = vld [vmem:[%s11894_s3 + $0x350] sm:$0xff]   ;;  %v9426_v13 = vld [vmem:[%s11894_s3 + $0x3c8] sm:$0xff]  }
 0x160   : > { %8664 = vmatprep.subr.bf16.mxu1 %v9374_v8  ;;  %v9423_v8 = vld [vmem:[%s11894_s3 + $0x310] sm:$0xff]  }
 0x161   : > { %8643 = vmatpush3.bf16.msra.mxu0 %v9375_v10  ;;  %v9427_v10 = vld [vmem:[%s11894_s3 + $0x308] sm:$0xff]  }
 0x162   : > { %8665 = vmatpush3.bf16.msra.mxu1 %v9376_v11  ;;  %8644 = vmatprep.subr.bf16.mxu0 %v9377_v14  ;;  %v9428_v11 = vld [vmem:[%s11894_s3 + $0x388] sm:$0xff]   ;;  %v9429_v14 = vld [vmem:[%s11894_s3 + $0x340] sm:$0xff]  }
 0x163   : > { %8666 = vmatprep.subr.bf16.mxu1 %v9378_v15  ;;  %v9430_v15 = vld [vmem:[%s11894_s3 + $0x3c0] sm:$0xff]  }
 0x165   : > { %8645 = vmatpush3.bf16.msra.mxu0 %v9379_v16  ;;  %v9431_v16 = vld [vmem:[%s11894_s3 + $0x300] sm:$0xff]  }
 0x166   : > { %8667 = vmatpush3.bf16.msra.mxu1 %v9380_v17  ;;  %8646 = vmatprep.subr.bf16.mxu0 %v9381_v18  ;;  %v10527_v17 = vld [vmem:[#allocation2 + $0x10] ss:$8 sm:$0x3]  ;;  %v9432_v18 = vld [vmem:[%s11894_s3 + $0x380] sm:$0xff]  }
 0x167   : > { %8668 = vmatprep.subr.bf16.mxu1 %v9382_v19  ;;  %v9433_v19 = vld [vmem:[%s11894_s3 + $0x478] sm:$0xff]  }
 0x169   : > { %8647 = vmatpush3.bf16.msra.mxu0 %v9383_v20  ;;  %v2081_v20 = vrot.slane %v10419_v37, %v10208_v1  ;;  %v9442_v37 = vld [vmem:[%s11894_s3 + $0x4e8] sm:$0xff]  }
 0x16a   : > { %8669 = vmatpush3.bf16.msra.mxu1 %v9384_v22  ;;  %8648 = vmatprep.subr.bf16.mxu0 %v9385_v23  ;;  %v9434_v22 = vld [vmem:[%s11894_s3 + $0x4f8] sm:$0xff]  }
 0x16b   : > { %8670 = vmatprep.subr.bf16.mxu1 %v9386_v24  ;;  %v10540_v23 = vld [vmem:[#allocation2 + $0x11] ss:$8 sm:$0x3]  ;;  %v2266_v24 = vrot.slane %v10432_v42, %v10208_v1  ;;  %v9447_v42 = vld [vmem:[%s11894_s3 + $0x420] sm:$0xff]  }
 0x16d   : > { %8649 = vmatpush3.bf16.msra.mxu0 %v9387_v25  ;;  %v9435_v25 = vld [vmem:[%s11894_s3 + $0x438] sm:$0xff]  }
 0x16e   : > { %8671 = vmatpush3.bf16.msra.mxu1 %v9388_v26  ;;  %8650 = vmatprep.subr.bf16.mxu0 %v9389_v27  ;;  %v2455_v26 = vrot.slane %v10527_v17, %v10210_v2  ;;  %v9436_v27 = vld [vmem:[%s11894_s3 + $0x4b8] sm:$0xff]  }
 0x16f   : > { %8672 = vmatprep.subr.bf16.mxu1 %v9390_v28  ;;  %v2640_v28 = vrot.slane %v10540_v23, %v10210_v2 }
 0x171   : > { %8651 = vmatpush3.bf16.msra.mxu0 %v9391_v21  ;;  %v9437_v21 = vld [vmem:[%s11894_s3 + $0x470] sm:$0xff]  }
 0x172   : > { %8673 = vmatpush3.bf16.msra.mxu1 %v9392_v29  ;;  %8652 = vmatprep.subr.bf16.mxu0 %v9393_v30  ;;  %v2088_v29 = vpack.c.bf16 %v2081_v20, %v2081_v20  ;;  %v9438_v30 = vld [vmem:[%s11894_s3 + $0x4f0] sm:$0xff]   ;;  %v9477_v20 = vld [vmem:[%s11894_s3 + $0x560] sm:$0xff]  }
 0x173   : > { %8674 = vmatprep.subr.bf16.mxu1 %v9394_v31  ;;  %v2273_v31 = vpack.c.bf16 %v2266_v24, %v2266_v24  ;;  %v9480_v24 = vld [vmem:[%s11894_s3 + $0x5a0] sm:$0xff]  }
 0x175   : > { %8653 = vmatpush3.bf16.msra.mxu0 %v9395_v32  ;;  %v2459_v32 = vpack.c.bf16 %v2455_v26, %v2455_v26  ;;  %v9482_v26 = vld [vmem:[%s11894_s3 + $0x5d8] sm:$0xff]  }
 0x176   : > { %8675 = vmatpush3.bf16.msra.mxu1 %v9396_v33  ;;  %8654 = vmatprep.subr.bf16.mxu0 %v9397_v34  ;;  %v2644_v33 = vpack.c.bf16 %v2640_v28, %v2640_v28  ;;  %v9439_v34 = vld [vmem:[%s11894_s3 + $0x430] sm:$0xff]   ;;  %v9484_v28 = vld [vmem:[%s11894_s3 + $0x598] sm:$0xff]  }
 0x177   : > { %8676 = vmatprep.subr.bf16.mxu1 %v9398_v35  ;;  %v9440_v35 = vld [vmem:[%s11894_s3 + $0x4b0] sm:$0xff]  }
 0x179   : > { %8655 = vmatpush3.bf16.msra.mxu0 %v9399_v36  ;;  %v9441_v36 = vld [vmem:[%s11894_s3 + $0x468] sm:$0xff]  }
 0x17a   : > { %8677 = vmatpush3.bf16.msra.mxu1 %v9400_v38  ;;  %8684 = vmatprep.subr.bf16.mxu0 %v9401_v39  ;;  %v9443_v38 = vld [vmem:[%s11894_s3 + $0x428] sm:$0xff]  }
 0x17b   : > { %8706 = vmatprep.subr.bf16.mxu1 %v9402_v41  ;;  %v9444_v39 = vld [vmem:[%s11894_s3 + $0x4a8] sm:$0xff]   ;;  %v9446_v41 = vld [vmem:[%s11894_s3 + $0x4e0] sm:$0xff]  }
 0x17c   : > { %1882 = vmatmul.mubr.bf16.vlgmr.msra.gmra.mxu0 %v1718_v49  ;;  %v9454_v49 = vld [vmem:[%s11894_s3 + $0x4d0] sm:$0xff]  }
 0x17d   : > { %2067 = vmatmul.mubr.bf16.vlgmr.msra.gmra.mxu1 %v1903_v51  ;;  %8685 = vmatpush3.bf16.msra.mxu0 %v9403_v44  ;;  %v9449_v44 = vld [vmem:[%s11894_s3 + $0x458] sm:$0xff]   ;;  %v9456_v51 = vld [vmem:[%s11894_s3 + $0x490] sm:$0xff]  }
 0x17e   : > { %2251 = vmatprep.mubr.bf16.mxu0 %v2089_v52  ;;  %8707 = vmatpush3.bf16.msra.mxu1 %v9404_v46  ;;  %v9451_v46 = vld [vmem:[%s11894_s3 + $0x418] sm:$0xff]   ;;  %v9457_v52 = vld [vmem:[%s11894_s3 + $0x448] sm:$0xff]  }
 0x17f   : > { %2436 = vmatprep.mubr.bf16.mxu1 %v2274_v53  ;;  %8686 = vmatprep.subr.bf16.mxu0 %v9405_v48  ;;  %v9453_v48 = vld [vmem:[%s11894_s3 + $0x450] sm:$0xff]   ;;  %v9458_v53 = vld [vmem:[%s11894_s3 + $0x4c8] sm:$0xff]  }
 0x180   : > { %8708 = vmatprep.subr.bf16.mxu1 %v9406_v50  ;;  %v9455_v50 = vld [vmem:[%s11894_s3 + $0x410] sm:$0xff]  }
 0x181   : > { %8687 = vmatpush3.bf16.msra.mxu0 %v9407_v54  ;;  %v9459_v54 = vld [vmem:[%s11894_s3 + $0x408] sm:$0xff]  }
 0x182   : > { %8709 = vmatpush3.bf16.msra.mxu1 %v9408_v55  ;;  %8688 = vmatprep.subr.bf16.mxu0 %v9409_v56  ;;  %v9460_v55 = vld [vmem:[%s11894_s3 + $0x488] sm:$0xff]   ;;  %v9461_v56 = vld [vmem:[%s11894_s3 + $0x440] sm:$0xff]  }
 0x183   : > { %8710 = vmatprep.subr.bf16.mxu1 %v9410_v57  ;;  %v9462_v57 = vld [vmem:[%s11894_s3 + $0x4c0] sm:$0xff]  }
 0x185   : > { %8689 = vmatpush3.bf16.msra.mxu0 %v9411_v58  ;;  %v9463_v58 = vld [vmem:[%s11894_s3 + $0x400] sm:$0xff]  }
 0x186   : > { %8711 = vmatpush3.bf16.msra.mxu1 %v9412_v59  ;;  %8690 = vmatprep.subr.bf16.mxu0 %v9413_v60  ;;  %v10635_v59 = vld [vmem:[#allocation2 + $0x12] ss:$8 sm:$0x3]  ;;  %v10637_v60 = vld [vmem:[#allocation2 + $0x13] ss:$8 sm:$0x3] }
 0x187   : > { %8712 = vmatprep.subr.bf16.mxu1 %v9414_v61  ;;  %v9464_v61 = vld [vmem:[%s11894_s3 + $0x480] sm:$0xff]  }
 0x189   : > { %8691 = vmatpush3.bf16.msra.mxu0 %v9415_v62  ;;  %v2451_v62 = vrot.slane %v10527_v17, %v10208_v1  ;;  %v9474_v17 = vld [vmem:[%s11894_s3 + $0x5e8] sm:$0xff]  }
 0x18a   : > { %8713 = vmatpush3.bf16.msra.mxu1 %v9416_v63  ;;  %8692 = vmatprep.subr.bf16.mxu0 %v9417_v3  ;;  %v9465_v63 = vld [vmem:[%s11894_s3 + $0x578] sm:$0xff]  }
 0x18b   : > { %8714 = vmatprep.subr.bf16.mxu1 %v9418_v4  ;;  %v9466_v3 = vld [vmem:[%s11894_s3 + $0x5f8] sm:$0xff]   ;;  %v2636_v4 = vrot.slane %v10540_v23, %v10208_v1  ;;  %v9479_v23 = vld [vmem:[%s11894_s3 + $0x520] sm:$0xff]  }
 0x18d   : > { %8693 = vmatpush3.bf16.msra.mxu0 %v9419_v5  ;;  %v9467_v5 = vld [vmem:[%s11894_s3 + $0x538] sm:$0xff]  }
 0x18e   : > { %8715 = vmatpush3.bf16.msra.mxu1 %v9420_v0  ;;  %8694 = vmatprep.subr.bf16.mxu0 %v9421_v6  ;;  %v2825_v0 = vrot.slane %v10635_v59, %v10210_v2  ;;  %v9468_v6 = vld [vmem:[%s11894_s3 + $0x5b8] sm:$0xff]  }
 0x18f   : > { %8716 = vmatprep.subr.bf16.mxu1 %v9422_v7  ;;  %v3010_v7 = vrot.slane %v10637_v60, %v10210_v2 }
 0x191   : > { %8695 = vmatpush3.bf16.msra.mxu0 %v9423_v8  ;;  %v9469_v8 = vld [vmem:[%s11894_s3 + $0x570] sm:$0xff]  }
 0x192   : > { %8717 = vmatpush3.bf16.msra.mxu1 %v9424_v9  ;;  %8696 = vmatprep.subr.bf16.mxu0 %v9425_v12  ;;  %v2458_v9 = vpack.c.bf16 %v2451_v62, %v2451_v62  ;;  %v9470_v12 = vld [vmem:[%s11894_s3 + $0x5f0] sm:$0xff]   ;;  %v9509_v62 = vld [vmem:[%s11894_s3 + $0x660] sm:$0xff]  }
 0x193   : > { %8718 = vmatprep.subr.bf16.mxu1 %v9426_v13  ;;  %v2643_v13 = vpack.c.bf16 %v2636_v4, %v2636_v4  ;;  %v9512_v4 = vld [vmem:[%s11894_s3 + $0x6a0] sm:$0xff]  }
 0x195   : > { %8697 = vmatpush3.bf16.msra.mxu0 %v9427_v10  ;;  %v2829_v10 = vpack.c.bf16 %v2825_v0, %v2825_v0  ;;  %v9514_v0 = vld [vmem:[%s11894_s3 + $0x6d8] sm:$0xff]  }
 0x196   : > { %8719 = vmatpush3.bf16.msra.mxu1 %v9428_v11  ;;  %8698 = vmatprep.subr.bf16.mxu0 %v9429_v14  ;;  %v3014_v11 = vpack.c.bf16 %v3010_v7, %v3010_v7  ;;  %v9471_v14 = vld [vmem:[%s11894_s3 + $0x530] sm:$0xff]   ;;  %v9516_v7 = vld [vmem:[%s11894_s3 + $0x698] sm:$0xff]  }
 0x197   : > { %8720 = vmatprep.subr.bf16.mxu1 %v9430_v15  ;;  %v9472_v15 = vld [vmem:[%s11894_s3 + $0x5b0] sm:$0xff]  }
 0x199   : > { %8699 = vmatpush3.bf16.msra.mxu0 %v9431_v16  ;;  %v9473_v16 = vld [vmem:[%s11894_s3 + $0x568] sm:$0xff]  }
 0x19a   : > { %8721 = vmatpush3.bf16.msra.mxu1 %v9432_v18  ;;  %8728 = vmatprep.subr.bf16.mxu0 %v9433_v19  ;;  %v9475_v18 = vld [vmem:[%s11894_s3 + $0x528] sm:$0xff]  }
 0x19b   : > { %8750 = vmatprep.subr.bf16.mxu1 %v9434_v22  ;;  %v9476_v19 = vld [vmem:[%s11894_s3 + $0x5a8] sm:$0xff]   ;;  %v9478_v22 = vld [vmem:[%s11894_s3 + $0x5e0] sm:$0xff]  }
 0x19c   : > { %2252 = vmatmul.mubr.bf16.vlgmr.msra.gmra.mxu0 %v2088_v29  ;;  %v9486_v29 = vld [vmem:[%s11894_s3 + $0x5d0] sm:$0xff]  }
 0x19d   : > { %2437 = vmatmul.mubr.bf16.vlgmr.msra.gmra.mxu1 %v2273_v31  ;;  %8729 = vmatpush3.bf16.msra.mxu0 %v9435_v25  ;;  %v9481_v25 = vld [vmem:[%s11894_s3 + $0x558] sm:$0xff]   ;;  %v9488_v31 = vld [vmem:[%s11894_s3 + $0x590] sm:$0xff]  }
 0x19e   : > { %2621 = vmatprep.mubr.bf16.mxu0 %v2459_v32  ;;  %8751 = vmatpush3.bf16.msra.mxu1 %v9436_v27  ;;  %v9483_v27 = vld [vmem:[%s11894_s3 + $0x518] sm:$0xff]   ;;  %v9489_v32 = vld [vmem:[%s11894_s3 + $0x548] sm:$0xff]  }
 0x19f   : > { %2806 = vmatprep.mubr.bf16.mxu1 %v2644_v33  ;;  %8730 = vmatprep.subr.bf16.mxu0 %v9437_v21  ;;  %v9485_v21 = vld [vmem:[%s11894_s3 + $0x550] sm:$0xff]   ;;  %v9490_v33 = vld [vmem:[%s11894_s3 + $0x5c8] sm:$0xff]  }
 0x1a0   : > { %8752 = vmatprep.subr.bf16.mxu1 %v9438_v30  ;;  %v9487_v30 = vld [vmem:[%s11894_s3 + $0x510] sm:$0xff]  }
 0x1a1   : > { %8731 = vmatpush3.bf16.msra.mxu0 %v9439_v34  ;;  %v9491_v34 = vld [vmem:[%s11894_s3 + $0x508] sm:$0xff]  }
 0x1a2   : > { %8753 = vmatpush3.bf16.msra.mxu1 %v9440_v35  ;;  %8732 = vmatprep.subr.bf16.mxu0 %v9441_v36  ;;  %v9492_v35 = vld [vmem:[%s11894_s3 + $0x588] sm:$0xff]   ;;  %v9493_v36 = vld [vmem:[%s11894_s3 + $0x540] sm:$0xff]  }
 0x1a3   : > { %8754 = vmatprep.subr.bf16.mxu1 %v9442_v37  ;;  %v9494_v37 = vld [vmem:[%s11894_s3 + $0x5c0] sm:$0xff]  }
 0x1a5   : > { %8733 = vmatpush3.bf16.msra.mxu0 %v9443_v38  ;;  %v9495_v38 = vld [vmem:[%s11894_s3 + $0x500] sm:$0xff]  }
 0x1a6   : > { %8755 = vmatpush3.bf16.msra.mxu1 %v9444_v39  ;;  %8734 = vmatprep.subr.bf16.mxu0 %v9445_v40  ;;  %v10743_v39 = vld [vmem:[#allocation2 + $0x14] ss:$8 sm:$0x3]  ;;  %v10745_v40 = vld [vmem:[#allocation2 + $0x15] ss:$8 sm:$0x3] }
 0x1a7   : > { %8756 = vmatprep.subr.bf16.mxu1 %v9446_v41  ;;  %v9496_v41 = vld [vmem:[%s11894_s3 + $0x580] sm:$0xff]  }
 0x1a9   : > { %8735 = vmatpush3.bf16.msra.mxu0 %v9447_v42  ;;  %v2821_v42 = vrot.slane %v10635_v59, %v10208_v1  ;;  %v9506_v59 = vld [vmem:[%s11894_s3 + $0x6e8] sm:$0xff]  }
 0x1aa   : > { %8757 = vmatpush3.bf16.msra.mxu1 %v9448_v43  ;;  %8736 = vmatprep.subr.bf16.mxu0 %v9449_v44  ;;  %v9497_v43 = vld [vmem:[%s11894_s3 + $0x678] sm:$0xff]  }
 0x1ab   : > { %8758 = vmatprep.subr.bf16.mxu1 %v9450_v45  ;;  %v9498_v44 = vld [vmem:[%s11894_s3 + $0x6f8] sm:$0xff]   ;;  %v3006_v45 = vrot.slane %v10637_v60, %v10208_v1  ;;  %v9507_v60 = vld [vmem:[%s11894_s3 + $0x628] sm:$0xff]  }
 0x1ad   : > { %8737 = vmatpush3.bf16.msra.mxu0 %v9451_v46  ;;  %v9499_v46 = vld [vmem:[%s11894_s3 + $0x638] sm:$0xff]  }
 0x1ae   : > { %8759 = vmatpush3.bf16.msra.mxu1 %v9452_v47  ;;  %8738 = vmatprep.subr.bf16.mxu0 %v9453_v48  ;;  %v3195_v47 = vrot.slane %v10743_v39, %v10210_v2  ;;  %v9500_v48 = vld [vmem:[%s11894_s3 + $0x6b8] sm:$0xff]  }
 0x1af   : > { %8760 = vmatprep.subr.bf16.mxu1 %v9454_v49  ;;  %v3380_v49 = vrot.slane %v10745_v40, %v10210_v2 }
 0x1b1   : > { %8739 = vmatpush3.bf16.msra.mxu0 %v9455_v50  ;;  %v9501_v50 = vld [vmem:[%s11894_s3 + $0x670] sm:$0xff]  }
 0x1b2   : > { %8761 = vmatpush3.bf16.msra.mxu1 %v9456_v51  ;;  %8740 = vmatprep.subr.bf16.mxu0 %v9457_v52  ;;  %v2828_v51 = vpack.c.bf16 %v2821_v42, %v2821_v42  ;;  %v9502_v52 = vld [vmem:[%s11894_s3 + $0x6f0] sm:$0xff]   ;;  %v9538_v42 = vld [vmem:[%s11894_s3 + $0x7e8] sm:$0xff]  }
 0x1b3   : > { %8762 = vmatprep.subr.bf16.mxu1 %v9458_v53  ;;  %v3013_v53 = vpack.c.bf16 %v3006_v45, %v3006_v45  ;;  %v9539_v45 = vld [vmem:[%s11894_s3 + $0x728] sm:$0xff]  }
 0x1b5   : > { %8741 = vmatpush3.bf16.msra.mxu0 %v9459_v54  ;;  %v3199_v54 = vpack.c.bf16 %v3195_v47, %v3195_v47 }
 0x1b6   : > { %8763 = vmatpush3.bf16.msra.mxu1 %v9460_v55  ;;  %8742 = vmatprep.subr.bf16.mxu0 %v9461_v56  ;;  %v3384_v55 = vpack.c.bf16 %v3380_v49, %v3380_v49  ;;  %v9503_v56 = vld [vmem:[%s11894_s3 + $0x630] sm:$0xff]   ;;  %v9541_v49 = vld [vmem:[%s11894_s3 + $0x760] sm:$0xff]  }
 0x1b7   : > { %8764 = vmatprep.subr.bf16.mxu1 %v9462_v57  ;;  %v9504_v57 = vld [vmem:[%s11894_s3 + $0x6b0] sm:$0xff]  }
 0x1b9   : > { %8743 = vmatpush3.bf16.msra.mxu0 %v9463_v58  ;;  %v9505_v58 = vld [vmem:[%s11894_s3 + $0x668] sm:$0xff]  }
 0x1ba   : > { %8765 = vmatpush3.bf16.msra.mxu1 %v9464_v61  ;;  %8772 = vmatprep.subr.bf16.mxu0 %v9465_v63  ;;  %v9508_v61 = vld [vmem:[%s11894_s3 + $0x6a8] sm:$0xff]   ;;  %v9510_v63 = vld [vmem:[%s11894_s3 + $0x6e0] sm:$0xff]  }
 0x1bb   : > { %8794 = vmatprep.subr.bf16.mxu1 %v9466_v3  ;;  %v9511_v3 = vld [vmem:[%s11894_s3 + $0x620] sm:$0xff]  }
 0x1bc   : > { %2622 = vmatmul.mubr.bf16.vlgmr.msra.gmra.mxu0 %v2458_v9  ;;  %v9518_v9 = vld [vmem:[%s11894_s3 + $0x6d0] sm:$0xff]  }
 0x1bd   : > { %2807 = vmatmul.mubr.bf16.vlgmr.msra.gmra.mxu1 %v2643_v13  ;;  %8773 = vmatpush3.bf16.msra.mxu0 %v9467_v5  ;;  %v9513_v5 = vld [vmem:[%s11894_s3 + $0x658] sm:$0xff]   ;;  %v9520_v13 = vld [vmem:[%s11894_s3 + $0x690] sm:$0xff]  }
 0x1be   : > { %2991 = vmatprep.mubr.bf16.mxu0 %v2829_v10  ;;  %8795 = vmatpush3.bf16.msra.mxu1 %v9468_v6  ;;  %v9515_v6 = vld [vmem:[%s11894_s3 + $0x618] sm:$0xff]   ;;  %v9521_v10 = vld [vmem:[%s11894_s3 + $0x648] sm:$0xff]  }
 0x1bf   : > { %3176 = vmatprep.mubr.bf16.mxu1 %v3014_v11  ;;  %8774 = vmatprep.subr.bf16.mxu0 %v9469_v8  ;;  %v9517_v8 = vld [vmem:[%s11894_s3 + $0x650] sm:$0xff]   ;;  %v9522_v11 = vld [vmem:[%s11894_s3 + $0x6c8] sm:$0xff]  }
 0x1c0   : > { %8796 = vmatprep.subr.bf16.mxu1 %v9470_v12  ;;  %v9519_v12 = vld [vmem:[%s11894_s3 + $0x610] sm:$0xff]  }
 0x1c1   : > { %8775 = vmatpush3.bf16.msra.mxu0 %v9471_v14  ;;  %v9523_v14 = vld [vmem:[%s11894_s3 + $0x608] sm:$0xff]  }
 0x1c2   : > { %8797 = vmatpush3.bf16.msra.mxu1 %v9472_v15  ;;  %8776 = vmatprep.subr.bf16.mxu0 %v9473_v16  ;;  %v9524_v15 = vld [vmem:[%s11894_s3 + $0x688] sm:$0xff]   ;;  %v9525_v16 = vld [vmem:[%s11894_s3 + $0x640] sm:$0xff]  }
 0x1c3   : > { %8798 = vmatprep.subr.bf16.mxu1 %v9474_v17  ;;  %v9526_v17 = vld [vmem:[%s11894_s3 + $0x6c0] sm:$0xff]  }
 0x1c5   : > { %8777 = vmatpush3.bf16.msra.mxu0 %v9475_v18  ;;  %v9527_v18 = vld [vmem:[%s11894_s3 + $0x600] sm:$0xff]  }
 0x1c6   : > { %8799 = vmatpush3.bf16.msra.mxu1 %v9476_v19  ;;  %8778 = vmatprep.subr.bf16.mxu0 %v9477_v20  ;;  %v10851_v19 = vld [vmem:[#allocation2 + $0x16] ss:$8 sm:$0x3]  ;;  %v10853_v20 = vld [vmem:[#allocation2 + $0x17] ss:$8 sm:$0x3] }
 0x1c7   : > { %8800 = vmatprep.subr.bf16.mxu1 %v9478_v22  ;;  %v9528_v22 = vld [vmem:[%s11894_s3 + $0x680] sm:$0xff]  }
 0x1c9   : > { %8779 = vmatpush3.bf16.msra.mxu0 %v9479_v23  ;;  %v3191_v23 = vrot.slane %v10743_v39, %v10208_v1  ;;  %v9536_v39 = vld [vmem:[%s11894_s3 + $0x7b0] sm:$0xff]  }
 0x1ca   : > { %8801 = vmatpush3.bf16.msra.mxu1 %v9480_v24  ;;  %8780 = vmatprep.subr.bf16.mxu0 %v9481_v25  ;;  %v9529_v24 = vld [vmem:[%s11894_s3 + $0x778] sm:$0xff]  }
 0x1cb   : > { %8802 = vmatprep.subr.bf16.mxu1 %v9482_v26  ;;  %v9530_v25 = vld [vmem:[%s11894_s3 + $0x7f8] sm:$0xff]   ;;  %v3376_v26 = vrot.slane %v10745_v40, %v10208_v1  ;;  %v9537_v40 = vld [vmem:[%s11894_s3 + $0x768] sm:$0xff]  }
 0x1cd   : > { %8781 = vmatpush3.bf16.msra.mxu0 %v9483_v27  ;;  %v9531_v27 = vld [vmem:[%s11894_s3 + $0x738] sm:$0xff]  }
 0x1ce   : > { %8803 = vmatpush3.bf16.msra.mxu1 %v9484_v28  ;;  %8782 = vmatprep.subr.bf16.mxu0 %v9485_v21  ;;  %v3565_v28 = vrot.slane %v10851_v19, %v10210_v2  ;;  %v9532_v21 = vld [vmem:[%s11894_s3 + $0x7b8] sm:$0xff]  }
 0x1cf   : > { %8804 = vmatprep.subr.bf16.mxu1 %v9486_v29  ;;  %v3750_v29 = vrot.slane %v10853_v20, %v10210_v2 }
 0x1d1   : > { %8783 = vmatpush3.bf16.msra.mxu0 %v9487_v30  ;;  %v9533_v30 = vld [vmem:[%s11894_s3 + $0x770] sm:$0xff]  }
 0x1d2   : > { %8805 = vmatpush3.bf16.msra.mxu1 %v9488_v31  ;;  %8784 = vmatprep.subr.bf16.mxu0 %v9489_v32  ;;  %v3198_v31 = vpack.c.bf16 %v3191_v23, %v3191_v23  ;;  %v9534_v32 = vld [vmem:[%s11894_s3 + $0x7f0] sm:$0xff]  }
 0x1d3   : > { %8806 = vmatprep.subr.bf16.mxu1 %v9490_v33  ;;  %v3383_v33 = vpack.c.bf16 %v3376_v26, %v3376_v26 }
 0x1d5   : > { %8785 = vmatpush3.bf16.msra.mxu0 %v9491_v34 }
 0x1d6   : > { %8807 = vmatpush3.bf16.msra.mxu1 %v9492_v35  ;;  %8786 = vmatprep.subr.bf16.mxu0 %v9493_v36  ;;  %v3569_v35 = vpack.c.bf16 %v3565_v28, %v3565_v28 }
 0x1d7   : > { %8808 = vmatprep.subr.bf16.mxu1 %v9494_v37  ;;  %v3754_v37 = vpack.c.bf16 %v3750_v29, %v3750_v29  ;;  %v9567_v29 = vld [vmem:[%s11894_s3 + $0x830] sm:$0xff]  }
 0x1d9   : > { %8787 = vmatpush3.bf16.msra.mxu0 %v9495_v38  ;;  %v9535_v38 = vld [vmem:[%s11894_s3 + $0x730] sm:$0xff]  }
 0x1da   : > { %8809 = vmatpush3.bf16.msra.mxu1 %v9496_v41  ;;  %8816 = vmatprep.subr.bf16.mxu0 %v9497_v43 }
 0x1db   : > { %8838 = vmatprep.subr.bf16.mxu1 %v9498_v44 }
 0x1dc   : > { %2992 = vmatmul.mubr.bf16.vlgmr.msra.gmra.mxu0 %v2828_v51 }
 0x1dd   : > { %3177 = vmatmul.mubr.bf16.vlgmr.msra.gmra.mxu1 %v3013_v53  ;;  %8817 = vmatpush3.bf16.msra.mxu0 %v9499_v46 }
 0x1de   : > { %3361 = vmatprep.mubr.bf16.mxu0 %v3199_v54  ;;  %8839 = vmatpush3.bf16.msra.mxu1 %v9500_v48  ;;  %v9540_v48 = vld [vmem:[%s11894_s3 + $0x7a8] sm:$0xff]   ;;  %v9542_v54 = vld [vmem:[%s11894_s3 + $0x7e0] sm:$0xff]  }
 0x1df   : > { %3546 = vmatprep.mubr.bf16.mxu1 %v3384_v55  ;;  %8818 = vmatprep.subr.bf16.mxu0 %v9501_v50  ;;  %v9543_v55 = vld [vmem:[%s11894_s3 + $0x720] sm:$0xff]  }
 0x1e0   : > { %8840 = vmatprep.subr.bf16.mxu1 %v9502_v52 }
 0x1e1   : > { %8819 = vmatpush3.bf16.msra.mxu0 %v9503_v56  ;;  %v9544_v56 = vld [vmem:[%s11894_s3 + $0x7a0] sm:$0xff]  }
 0x1e2   : > { %8841 = vmatpush3.bf16.msra.mxu1 %v9504_v57  ;;  %8820 = vmatprep.subr.bf16.mxu0 %v9505_v58  ;;  %v9545_v57 = vld [vmem:[%s11894_s3 + $0x758] sm:$0xff]  }
 0x1e3   : > { %8842 = vmatprep.subr.bf16.mxu1 %v9506_v59  ;;  %v9546_v58 = vld [vmem:[%s11894_s3 + $0x7d8] sm:$0xff]  }
 0x1e4   : > { %v9547_v59 = vld [vmem:[%s11894_s3 + $0x718] sm:$0xff]  }
 0x1e5   : > { %8821 = vmatpush3.bf16.msra.mxu0 %v9507_v60  ;;  %v9548_v60 = vld [vmem:[%s11894_s3 + $0x798] sm:$0xff]  }
 0x1e6   : > { %8843 = vmatpush3.bf16.msra.mxu1 %v9508_v61  ;;  %8822 = vmatprep.subr.bf16.mxu0 %v9509_v62  ;;  %v9549_v61 = vld [vmem:[%s11894_s3 + $0x750] sm:$0xff]  }
 0x1e7   : > { %8844 = vmatprep.subr.bf16.mxu1 %v9510_v63  ;;  %v9550_v62 = vld [vmem:[%s11894_s3 + $0x7d0] sm:$0xff]  }
 0x1e8   : > { %v9551_v63 = vld [vmem:[%s11894_s3 + $0x710] sm:$0xff]  }
 0x1e9   : > { %8823 = vmatpush3.bf16.msra.mxu0 %v9511_v3  ;;  %v9552_v3 = vld [vmem:[%s11894_s3 + $0x790] sm:$0xff]  }
 0x1ea   : > { %8845 = vmatpush3.bf16.msra.mxu1 %v9512_v4  ;;  %8824 = vmatprep.subr.bf16.mxu0 %v9513_v5  ;;  %v9553_v4 = vld [vmem:[%s11894_s3 + $0x748] sm:$0xff]  }
 0x1eb   : > { %8846 = vmatprep.subr.bf16.mxu1 %v9514_v0  ;;  %v9554_v5 = vld [vmem:[%s11894_s3 + $0x7c8] sm:$0xff]  }
 0x1ec   : > { %v9555_v0 = vld [vmem:[%s11894_s3 + $0x708] sm:$0xff]  }
 0x1ed   : > { %8825 = vmatpush3.bf16.msra.mxu0 %v9515_v6  ;;  %v9556_v6 = vld [vmem:[%s11894_s3 + $0x788] sm:$0xff]  }
 0x1ee   : > { %8847 = vmatpush3.bf16.msra.mxu1 %v9516_v7  ;;  %8826 = vmatprep.subr.bf16.mxu0 %v9517_v8  ;;  %v9557_v7 = vld [vmem:[%s11894_s3 + $0x740] sm:$0xff]  }
 0x1ef   : > { %8848 = vmatprep.subr.bf16.mxu1 %v9518_v9  ;;  %v9558_v8 = vld [vmem:[%s11894_s3 + $0x7c0] sm:$0xff]  }
 0x1f0   : > { %v9559_v9 = vld [vmem:[%s11894_s3 + $0x700] sm:$0xff]  }
 0x1f1   : > { %8827 = vmatpush3.bf16.msra.mxu0 %v9519_v12  ;;  %v10961_v12 = vld [vmem:[#allocation2 + $0x20] ss:$8 sm:$0x3] }
 0x1f2   : > { %8849 = vmatpush3.bf16.msra.mxu1 %v9520_v13  ;;  %8828 = vmatprep.subr.bf16.mxu0 %v9521_v10  ;;  %v3561_v13 = vrot.slane %v10851_v19, %v10208_v1  ;;  %v9560_v10 = vld [vmem:[%s11894_s3 + $0x780] sm:$0xff]  }
 0x1f3   : > { %8850 = vmatprep.subr.bf16.mxu1 %v9522_v11  ;;  %v9561_v11 = vld [vmem:[%s11894_s3 + $0x878] sm:$0xff]  }
 0x1f5   : > { %8829 = vmatpush3.bf16.msra.mxu0 %v9523_v14  ;;  %v10971_v14 = vld [vmem:[#allocation2 + $0x21] ss:$8 sm:$0x3] }
 0x1f6   : > { %8851 = vmatpush3.bf16.msra.mxu1 %v9524_v15  ;;  %8830 = vmatprep.subr.bf16.mxu0 %v9525_v16  ;;  %v3746_v15 = vrot.slane %v10853_v20, %v10208_v1  ;;  %v9562_v16 = vld [vmem:[%s11894_s3 + $0x8f8] sm:$0xff]   ;;  %v4120_v19 = vrot.slane %v10971_v14, %v10210_v2 }
 0x1f7   : > { %8852 = vmatprep.subr.bf16.mxu1 %v9526_v17  ;;  %v3935_v17 = vrot.slane %v10961_v12, %v10210_v2  ;;  %v9564_v20 = vld [vmem:[%s11894_s3 + $0x8b8] sm:$0xff]  }
 0x1f8   : > { %v3753_v23 = vpack.c.bf16 %v3746_v15, %v3746_v15  ;;  %v9597_v15 = vld [vmem:[%s11894_s3 + $0x970] sm:$0xff]  }
 0x1f9   : > { %8831 = vmatpush3.bf16.msra.mxu0 %v9527_v18  ;;  %v9563_v18 = vld [vmem:[%s11894_s3 + $0x838] sm:$0xff]   ;;  %v3939_v26 = vpack.c.bf16 %v3935_v17, %v3935_v17 }
 0x1fa   : > { %8853 = vmatpush3.bf16.msra.mxu1 %v9528_v22  ;;  %8860 = vmatprep.subr.bf16.mxu0 %v9529_v24  ;;  %v3568_v22 = vpack.c.bf16 %v3561_v13, %v3561_v13  ;;  %v9565_v24 = vld [vmem:[%s11894_s3 + $0x870] sm:$0xff]  }
 0x1fb   : > { %8882 = vmatprep.subr.bf16.mxu1 %v9530_v25 }
 0x1fc   : > { %3362 = vmatmul.mubr.bf16.vlgmr.msra.gmra.mxu0 %v3198_v31  ;;  %v8568_v34 = vpop.f32.mrf.mxu0  ;;  %v9568_v31 = vld [vmem:[%s11894_s3 + $0x8b0] sm:$0xff]  }
 0x1fd   : > { %3547 = vmatmul.mubr.bf16.vlgmr.msra.gmra.mxu1 %v3383_v33  ;;  %v8590_v36 = vpop.f32.mrf.mxu1  ;;  %8861 = vmatpush3.bf16.msra.mxu0 %v9531_v27  ;;  %v9566_v27 = vld [vmem:[%s11894_s3 + $0x8f0] sm:$0xff]  }
 0x1fe   : > { %3731 = vmatprep.mubr.bf16.mxu0 %v3569_v35  ;;  %8883 = vmatpush3.bf16.msra.mxu1 %v9532_v21  ;;  %v8569_v41 = vpop.f32.mrf.mxu0  ;;  %v4124_v21 = vpack.c.bf16 %v4120_v19, %v4120_v19  ;;  %v9570_v35 = vld [vmem:[%s11894_s3 + $0x8e8] sm:$0xff]  }
 0x1ff   : > { %3916 = vmatprep.mubr.bf16.mxu1 %v3754_v37  ;;  %v8570_v43 = vadd.f32 %v8569_v41, %v8568_v34  ;;  %v8591_v44 = vpop.f32.mrf.mxu1  ;;  %8862 = vmatprep.subr.bf16.mxu0 %v9533_v30 }
 0x200   : > { %v8592_v46 = vadd.f32 %v8591_v44, %v8590_v36  ;;  %8884 = vmatprep.subr.bf16.mxu1 %v9534_v32  ;;  %v8571_v47 = vpop.f32.mrf.mxu0  ;;  %v9569_v32 = vld [vmem:[%s11894_s3 + $0x868] sm:$0xff]  }
 0x201   : > { %v8593_v50 = vpop.f32.mrf.mxu1  ;;  %8863 = vmatpush3.bf16.msra.mxu0 %v9535_v38  ;;  %v9575_v47 = vld [vmem:[%s11894_s3 + $0x820] sm:$0xff]  }
 0x202   : > { %v10905_v51 = vadd.f32 %v8592_v46, %v8570_v43  ;;  %8885 = vmatpush3.bf16.msra.mxu1 %v9536_v39  ;;  %v8572_v52 = vpop.f32.mrf.mxu0  ;;  %8864 = vmatprep.subr.bf16.mxu0 %v9537_v40  ;;  %v9571_v40 = vld [vmem:[%s11894_s3 + $0x828] sm:$0xff]   ;;  %v9573_v43 = vld [vmem:[%s11894_s3 + $0x860] sm:$0xff]   ;;  %v9578_v50 = vld [vmem:[%s11894_s3 + $0x8d8] sm:$0xff]  }
 0x203   : > { %v8594_v53 = vpop.f32.mrf.mxu1  ;;  %8886 = vmatprep.subr.bf16.mxu1 %v9538_v42  ;;  %v9572_v42 = vld [vmem:[%s11894_s3 + $0x8a8] sm:$0xff]   ;;  %v9574_v46 = vld [vmem:[%s11894_s3 + $0x8e0] sm:$0xff]   ;;  %v9580_v52 = vld [vmem:[%s11894_s3 + $0x898] sm:$0xff]  }
 0x204   : > { %v9581_v53 = vld [vmem:[%s11894_s3 + $0x850] sm:$0xff]  }
 0x205   : > { %8865 = vmatpush3.bf16.msra.mxu0 %v9539_v45 }
 0x206   : > { %8887 = vmatpush3.bf16.msra.mxu1 %v9540_v48  ;;  %8866 = vmatprep.subr.bf16.mxu0 %v9541_v49  ;;  %v9576_v48 = vld [vmem:[%s11894_s3 + $0x8a0] sm:$0xff]   ;;  %v9577_v49 = vld [vmem:[%s11894_s3 + $0x858] sm:$0xff]  }
 0x207   : > { %8888 = vmatprep.subr.bf16.mxu1 %v9542_v54  ;;  %v9582_v54 = vld [vmem:[%s11894_s3 + $0x8d0] sm:$0xff]  }
 0x209   : > { %8867 = vmatpush3.bf16.msra.mxu0 %v9543_v55  ;;  %v9583_v55 = vld [vmem:[%s11894_s3 + $0x810] sm:$0xff]  }
 0x20a   : > { %8889 = vmatpush3.bf16.msra.mxu1 %v9544_v56  ;;  %8868 = vmatprep.subr.bf16.mxu0 %v9545_v57  ;;  %v9584_v56 = vld [vmem:[%s11894_s3 + $0x890] sm:$0xff]   ;;  %v9585_v57 = vld [vmem:[%s11894_s3 + $0x848] sm:$0xff]  }
 0x20b   : > { %8890 = vmatprep.subr.bf16.mxu1 %v9546_v58  ;;  %v9586_v58 = vld [vmem:[%s11894_s3 + $0x8c8] sm:$0xff]  }
 0x20d   : > { %8869 = vmatpush3.bf16.msra.mxu0 %v9547_v59  ;;  %v9587_v59 = vld [vmem:[%s11894_s3 + $0x808] sm:$0xff]  }
 0x20e   : > { %8891 = vmatpush3.bf16.msra.mxu1 %v9548_v60  ;;  %8870 = vmatprep.subr.bf16.mxu0 %v9549_v61  ;;  %v9588_v60 = vld [vmem:[%s11894_s3 + $0x888] sm:$0xff]   ;;  %v9589_v61 = vld [vmem:[%s11894_s3 + $0x840] sm:$0xff]  }
 0x20f   : > { %8892 = vmatprep.subr.bf16.mxu1 %v9550_v62  ;;  %v9590_v62 = vld [vmem:[%s11894_s3 + $0x8c0] sm:$0xff]  }
 0x211   : > { %8871 = vmatpush3.bf16.msra.mxu0 %v9551_v63  ;;  %v9591_v63 = vld [vmem:[%s11894_s3 + $0x800] sm:$0xff]  }
 0x212   : > { %8893 = vmatpush3.bf16.msra.mxu1 %v9552_v3  ;;  %8872 = vmatprep.subr.bf16.mxu0 %v9553_v4  ;;  %v11072_v3 = vld [vmem:[#allocation2 + $0x22] ss:$8 sm:$0x3]  ;;  %v3931_v4 = vrot.slane %v10961_v12, %v10208_v1  ;;  %v9595_v12 = vld [vmem:[%s11894_s3 + $0x938] sm:$0xff]  }
 0x213   : > { %8894 = vmatprep.subr.bf16.mxu1 %v9554_v5  ;;  %v9592_v5 = vld [vmem:[%s11894_s3 + $0x880] sm:$0xff]  }
 0x215   : > { %8873 = vmatpush3.bf16.msra.mxu0 %v9555_v0  ;;  %v9593_v0 = vld [vmem:[%s11894_s3 + $0x978] sm:$0xff]  }
 0x216   : > { %8895 = vmatpush3.bf16.msra.mxu1 %v9556_v6  ;;  %8874 = vmatprep.subr.bf16.mxu0 %v9557_v7  ;;  %v11082_v6 = vld [vmem:[#allocation2 + $0x23] ss:$8 sm:$0x3]  ;;  %v4116_v7 = vrot.slane %v10971_v14, %v10208_v1 }
 0x217   : > { %8896 = vmatprep.subr.bf16.mxu1 %v9558_v8  ;;  %v9594_v8 = vld [vmem:[%s11894_s3 + $0x9f8] sm:$0xff]   ;;  %v4490_v13 = vrot.slane %v11082_v6, %v10210_v2 }
 0x218   : > { %v4123_v14 = vpack.c.bf16 %v4116_v7, %v4116_v7  ;;  %v9629_v7 = vld [vmem:[%s11894_s3 + $0xa70] sm:$0xff]  }
 0x219   : > { %8875 = vmatpush3.bf16.msra.mxu0 %v9559_v9  ;;  %v4305_v9 = vrot.slane %v11072_v3, %v10210_v2 }
 0x21a   : > { %8897 = vmatpush3.bf16.msra.mxu1 %v9560_v10  ;;  %8904 = vmatprep.subr.bf16.mxu0 %v9561_v11  ;;  %v3938_v10 = vpack.c.bf16 %v3931_v4, %v3931_v4  ;;  %v9596_v11 = vld [vmem:[%s11894_s3 + $0x9b8] sm:$0xff]  }
 0x21b   : > { %8926 = vmatprep.subr.bf16.mxu1 %v9562_v16  ;;  %v4309_v17 = vpack.c.bf16 %v4305_v9, %v4305_v9 }
 0x21c   : > { %v8612_v25 = vpop.f32.mrf.mxu0  ;;  %3732 = vmatmul.mubr.bf16.vlgmr.msra.gmra.mxu0 %v3568_v22  ;;  %v4494_v22 = vpack.c.bf16 %v4490_v13, %v4490_v13 }
 0x21d   : > { %v8634_v28 = vpop.f32.mrf.mxu1  ;;  %3917 = vmatmul.mubr.bf16.vlgmr.msra.gmra.mxu1 %v3753_v23  ;;  %8905 = vmatpush3.bf16.msra.mxu0 %v9563_v18  ;;  %v9598_v18 = vld [vmem:[%s11894_s3 + $0x9f0] sm:$0xff]  }
 0x21e   : > { %4101 = vmatprep.mubr.bf16.mxu0 %v3939_v26  ;;  %8927 = vmatpush3.bf16.msra.mxu1 %v9564_v20  ;;  %v8613_v30 = vpop.f32.mrf.mxu0  ;;  %v9599_v20 = vld [vmem:[%s11894_s3 + $0x930] sm:$0xff]  }
 0x21f   : > { %4286 = vmatprep.mubr.bf16.mxu1 %v4124_v21  ;;  %v8614_v33 = vadd.f32 %v8613_v30, %v8612_v25  ;;  %v8635_v34 = vpop.f32.mrf.mxu1  ;;  %8906 = vmatprep.subr.bf16.mxu0 %v9565_v24  ;;  %v9600_v24 = vld [vmem:[%s11894_s3 + $0x9b0] sm:$0xff]   ;;  %v9601_v25 = vld [vmem:[%s11894_s3 + $0x968] sm:$0xff]  }
 0x220   : > { %v8636_v36 = vadd.f32 %v8635_v34, %v8634_v28  ;;  %v8615_v37 = vpop.f32.mrf.mxu0  ;;  %8928 = vmatprep.subr.bf16.mxu1 %v9566_v27  ;;  %v9602_v28 = vld [vmem:[%s11894_s3 + $0x9e8] sm:$0xff]  }
 0x221   : > { %v1519_v38 = vadd.f32 %v8614_v33, %v10905_v51  ;;  %v8637_v39 = vpop.f32.mrf.mxu1  ;;  %8907 = vmatpush3.bf16.msra.mxu0 %v9567_v29  ;;  %v9579_v51 = vld [vmem:[%s11894_s3 + $0x818] sm:$0xff]   ;;  %v9604_v34 = vld [vmem:[%s11894_s3 + $0x9a8] sm:$0xff]  }
 0x222   : > { %8929 = vmatpush3.bf16.msra.mxu1 %v9568_v31  ;;  %v8616_v41 = vpop.f32.mrf.mxu0  ;;  %8908 = vmatprep.subr.bf16.mxu0 %v9569_v32  ;;  %v9603_v32 = vld [vmem:[%s11894_s3 + $0x928] sm:$0xff]   ;;  %v9607_v39 = vld [vmem:[%s11894_s3 + $0x920] sm:$0xff]  }
 0x223   : > { %v11016_v44 = vadd.f32 %v8636_v36, %v1519_v38  ;;  %v8638_v45 = vpop.f32.mrf.mxu1  ;;  %8930 = vmatprep.subr.bf16.mxu1 %v9570_v35  ;;  %v9605_v35 = vld [vmem:[%s11894_s3 + $0x960] sm:$0xff]   ;;  %v9609_v41 = vld [vmem:[%s11894_s3 + $0x958] sm:$0xff]  }
 0x224   : > { %v9606_v38 = vld [vmem:[%s11894_s3 + $0x9e0] sm:$0xff]   ;;  %v9613_v45 = vld [vmem:[%s11894_s3 + $0x950] sm:$0xff]  }
 0x225   : > { %8909 = vmatpush3.bf16.msra.mxu0 %v9571_v40  ;;  %v9608_v40 = vld [vmem:[%s11894_s3 + $0x9a0] sm:$0xff]  }
 0x226   : > { %8931 = vmatpush3.bf16.msra.mxu1 %v9572_v42  ;;  %8910 = vmatprep.subr.bf16.mxu0 %v9573_v43  ;;  %v9610_v42 = vld [vmem:[%s11894_s3 + $0x9d8] sm:$0xff]  }
 0x227   : > { %8932 = vmatprep.subr.bf16.mxu1 %v9574_v46  ;;  %v9611_v43 = vld [vmem:[%s11894_s3 + $0x918] sm:$0xff]   ;;  %v9614_v46 = vld [vmem:[%s11894_s3 + $0x9d0] sm:$0xff]  }
 0x229   : > { %8911 = vmatpush3.bf16.msra.mxu0 %v9575_v47  ;;  %v9615_v47 = vld [vmem:[%s11894_s3 + $0x910] sm:$0xff]  }
 0x22a   : > { %8933 = vmatpush3.bf16.msra.mxu1 %v9576_v48  ;;  %8912 = vmatprep.subr.bf16.mxu0 %v9577_v49  ;;  %v9616_v48 = vld [vmem:[%s11894_s3 + $0x990] sm:$0xff]   ;;  %v9617_v49 = vld [vmem:[%s11894_s3 + $0x948] sm:$0xff]  }
 0x22b   : > { %8934 = vmatprep.subr.bf16.mxu1 %v9578_v50  ;;  %v9618_v50 = vld [vmem:[%s11894_s3 + $0x9c8] sm:$0xff]  }
 0x22d   : > { %8913 = vmatpush3.bf16.msra.mxu0 %v9579_v51  ;;  %v9619_v51 = vld [vmem:[%s11894_s3 + $0x908] sm:$0xff]  }
 0x22e   : > { %8935 = vmatpush3.bf16.msra.mxu1 %v9580_v52  ;;  %8914 = vmatprep.subr.bf16.mxu0 %v9581_v53  ;;  %v9620_v52 = vld [vmem:[%s11894_s3 + $0x988] sm:$0xff]   ;;  %v9621_v53 = vld [vmem:[%s11894_s3 + $0x940] sm:$0xff]  }
 0x22f   : > { %8936 = vmatprep.subr.bf16.mxu1 %v9582_v54  ;;  %v9622_v54 = vld [vmem:[%s11894_s3 + $0x9c0] sm:$0xff]  }
 0x231   : > { %8915 = vmatpush3.bf16.msra.mxu0 %v9583_v55  ;;  %v9623_v55 = vld [vmem:[%s11894_s3 + $0x900] sm:$0xff]  }
 0x232   : > { %8937 = vmatpush3.bf16.msra.mxu1 %v9584_v56  ;;  %8916 = vmatprep.subr.bf16.mxu0 %v9585_v57  ;;  %v11183_v56 = vld [vmem:[#allocation2 + $0x24] ss:$8 sm:$0x3]  ;;  %v4301_v57 = vrot.slane %v11072_v3, %v10208_v1  ;;  %v9627_v3 = vld [vmem:[%s11894_s3 + $0xa38] sm:$0xff]  }
 0x233   : > { %8938 = vmatprep.subr.bf16.mxu1 %v9586_v58  ;;  %v9624_v58 = vld [vmem:[%s11894_s3 + $0x980] sm:$0xff]  }
 0x235   : > { %8917 = vmatpush3.bf16.msra.mxu0 %v9587_v59  ;;  %v9625_v59 = vld [vmem:[%s11894_s3 + $0xa78] sm:$0xff]  }
 0x236   : > { %8939 = vmatpush3.bf16.msra.mxu1 %v9588_v60  ;;  %8918 = vmatprep.subr.bf16.mxu0 %v9589_v61  ;;  %v11193_v60 = vld [vmem:[#allocation2 + $0x25] ss:$8 sm:$0x3]  ;;  %v4486_v61 = vrot.slane %v11082_v6, %v10208_v1 }
 0x237   : > { %8940 = vmatprep.subr.bf16.mxu1 %v9590_v62  ;;  %v9626_v62 = vld [vmem:[%s11894_s3 + $0xaf8] sm:$0xff]   ;;  %v4860_v4 = vrot.slane %v11193_v60, %v10210_v2 }
 0x238   : > { %v4493_v6 = vpack.c.bf16 %v4486_v61, %v4486_v61  ;;  %v9661_v61 = vld [vmem:[%s11894_s3 + $0xb70] sm:$0xff]  }
 0x239   : > { %8919 = vmatpush3.bf16.msra.mxu0 %v9591_v63  ;;  %v4675_v63 = vrot.slane %v11183_v56, %v10210_v2 }
 0x23a   : > { %8941 = vmatpush3.bf16.msra.mxu1 %v9592_v5  ;;  %8948 = vmatprep.subr.bf16.mxu0 %v9593_v0  ;;  %v4308_v5 = vpack.c.bf16 %v4301_v57, %v4301_v57  ;;  %v9628_v0 = vld [vmem:[%s11894_s3 + $0xab8] sm:$0xff]  }
 0x23b   : > { %8970 = vmatprep.subr.bf16.mxu1 %v9594_v8  ;;  %v4679_v9 = vpack.c.bf16 %v4675_v63, %v4675_v63 }
 0x23c   : > { %v8656_v16 = vpop.f32.mrf.mxu0  ;;  %4102 = vmatmul.mubr.bf16.vlgmr.msra.gmra.mxu0 %v3938_v10  ;;  %v4864_v10 = vpack.c.bf16 %v4860_v4, %v4860_v4 }
 0x23d   : > { %v8678_v19 = vpop.f32.mrf.mxu1  ;;  %4287 = vmatmul.mubr.bf16.vlgmr.msra.gmra.mxu1 %v4123_v14  ;;  %8949 = vmatpush3.bf16.msra.mxu0 %v9595_v12  ;;  %v9630_v12 = vld [vmem:[%s11894_s3 + $0xaf0] sm:$0xff]  }
 0x23e   : > { %4471 = vmatprep.mubr.bf16.mxu0 %v4309_v17  ;;  %8971 = vmatpush3.bf16.msra.mxu1 %v9596_v11  ;;  %v8657_v23 = vpop.f32.mrf.mxu0  ;;  %v9631_v11 = vld [vmem:[%s11894_s3 + $0xa30] sm:$0xff]  }
 0x23f   : > { %4656 = vmatprep.mubr.bf16.mxu1 %v4494_v22  ;;  %v8658_v26 = vadd.f32 %v8657_v23, %v8656_v16  ;;  %v8679_v27 = vpop.f32.mrf.mxu1  ;;  %8950 = vmatprep.subr.bf16.mxu0 %v9597_v15  ;;  %v9632_v15 = vld [vmem:[%s11894_s3 + $0xab0] sm:$0xff]   ;;  %v9633_v16 = vld [vmem:[%s11894_s3 + $0xa68] sm:$0xff]  }
 0x240   : > { %v8680_v21 = vadd.f32 %v8679_v27, %v8678_v19  ;;  %v8659_v29 = vpop.f32.mrf.mxu0  ;;  %8972 = vmatprep.subr.bf16.mxu1 %v9598_v18  ;;  %v9634_v19 = vld [vmem:[%s11894_s3 + $0xae8] sm:$0xff]  }
 0x241   : > { %v1889_v30 = vadd.f32 %v8658_v26, %v11016_v44  ;;  %v8681_v31 = vpop.f32.mrf.mxu1  ;;  %8951 = vmatpush3.bf16.msra.mxu0 %v9599_v20  ;;  %v9612_v44 = vld [vmem:[%s11894_s3 + $0x998] sm:$0xff]   ;;  %v9636_v27 = vld [vmem:[%s11894_s3 + $0xaa8] sm:$0xff]  }
 0x242   : > { %8973 = vmatpush3.bf16.msra.mxu1 %v9600_v24  ;;  %v8660_v33 = vpop.f32.mrf.mxu0  ;;  %8952 = vmatprep.subr.bf16.mxu0 %v9601_v25  ;;  %v9635_v25 = vld [vmem:[%s11894_s3 + $0xa28] sm:$0xff]   ;;  %v9639_v31 = vld [vmem:[%s11894_s3 + $0xa20] sm:$0xff]  }
 0x243   : > { %v11127_v36 = vadd.f32 %v8680_v21, %v1889_v30  ;;  %v8682_v37 = vpop.f32.mrf.mxu1  ;;  %8974 = vmatprep.subr.bf16.mxu1 %v9602_v28  ;;  %v9637_v28 = vld [vmem:[%s11894_s3 + $0xa60] sm:$0xff]   ;;  %v9641_v33 = vld [vmem:[%s11894_s3 + $0xa58] sm:$0xff]  }
 0x244   : > { %v9638_v30 = vld [vmem:[%s11894_s3 + $0xae0] sm:$0xff]   ;;  %v9645_v37 = vld [vmem:[%s11894_s3 + $0xa50] sm:$0xff]  }
 0x245   : > { %8953 = vmatpush3.bf16.msra.mxu0 %v9603_v32  ;;  %v9640_v32 = vld [vmem:[%s11894_s3 + $0xaa0] sm:$0xff]  }
 0x246   : > { %8975 = vmatpush3.bf16.msra.mxu1 %v9604_v34  ;;  %8954 = vmatprep.subr.bf16.mxu0 %v9605_v35  ;;  %v9642_v34 = vld [vmem:[%s11894_s3 + $0xad8] sm:$0xff]  }
 0x247   : > { %8976 = vmatprep.subr.bf16.mxu1 %v9606_v38  ;;  %v9643_v35 = vld [vmem:[%s11894_s3 + $0xa18] sm:$0xff]   ;;  %v9646_v38 = vld [vmem:[%s11894_s3 + $0xad0] sm:$0xff]  }
 0x249   : > { %8955 = vmatpush3.bf16.msra.mxu0 %v9607_v39  ;;  %v9647_v39 = vld [vmem:[%s11894_s3 + $0xa10] sm:$0xff]  }
 0x24a   : > { %8977 = vmatpush3.bf16.msra.mxu1 %v9608_v40  ;;  %8956 = vmatprep.subr.bf16.mxu0 %v9609_v41  ;;  %v9648_v40 = vld [vmem:[%s11894_s3 + $0xa90] sm:$0xff]   ;;  %v9649_v41 = vld [vmem:[%s11894_s3 + $0xa48] sm:$0xff]  }
 0x24b   : > { %8978 = vmatprep.subr.bf16.mxu1 %v9610_v42  ;;  %v9650_v42 = vld [vmem:[%s11894_s3 + $0xac8] sm:$0xff]  }
 0x24d   : > { %8957 = vmatpush3.bf16.msra.mxu0 %v9611_v43  ;;  %v9651_v43 = vld [vmem:[%s11894_s3 + $0xa08] sm:$0xff]  }
 0x24e   : > { %8979 = vmatpush3.bf16.msra.mxu1 %v9612_v44  ;;  %8958 = vmatprep.subr.bf16.mxu0 %v9613_v45  ;;  %v9652_v44 = vld [vmem:[%s11894_s3 + $0xa88] sm:$0xff]   ;;  %v9653_v45 = vld [vmem:[%s11894_s3 + $0xa40] sm:$0xff]  }
 0x24f   : > { %8980 = vmatprep.subr.bf16.mxu1 %v9614_v46  ;;  %v9654_v46 = vld [vmem:[%s11894_s3 + $0xac0] sm:$0xff]  }
 0x251   : > { %8959 = vmatpush3.bf16.msra.mxu0 %v9615_v47  ;;  %v9655_v47 = vld [vmem:[%s11894_s3 + $0xa00] sm:$0xff]  }
 0x252   : > { %8981 = vmatpush3.bf16.msra.mxu1 %v9616_v48  ;;  %8960 = vmatprep.subr.bf16.mxu0 %v9617_v49  ;;  %v11294_v48 = vld [vmem:[#allocation2 + $0x26] ss:$8 sm:$0x3]  ;;  %v4671_v49 = vrot.slane %v11183_v56, %v10208_v1  ;;  %v9659_v56 = vld [vmem:[%s11894_s3 + $0xb38] sm:$0xff]  }
 0x253   : > { %8982 = vmatprep.subr.bf16.mxu1 %v9618_v50  ;;  %v9656_v50 = vld [vmem:[%s11894_s3 + $0xa80] sm:$0xff]  }
 0x255   : > { %8961 = vmatpush3.bf16.msra.mxu0 %v9619_v51  ;;  %v9657_v51 = vld [vmem:[%s11894_s3 + $0xb78] sm:$0xff]  }
 0x256   : > { %8983 = vmatpush3.bf16.msra.mxu1 %v9620_v52  ;;  %8962 = vmatprep.subr.bf16.mxu0 %v9621_v53  ;;  %v11304_v52 = vld [vmem:[#allocation2 + $0x27] ss:$8 sm:$0x3]  ;;  %v4856_v53 = vrot.slane %v11193_v60, %v10208_v1 }
 0x257   : > { %8984 = vmatprep.subr.bf16.mxu1 %v9622_v54  ;;  %v9658_v54 = vld [vmem:[%s11894_s3 + $0xbf8] sm:$0xff]   ;;  %v5230_v57 = vrot.slane %v11304_v52, %v10210_v2 }
 0x258   : > { %v4863_v60 = vpack.c.bf16 %v4856_v53, %v4856_v53  ;;  %v9693_v53 = vld [vmem:[%s11894_s3 + $0xc70] sm:$0xff]  }
 0x259   : > { %8963 = vmatpush3.bf16.msra.mxu0 %v9623_v55  ;;  %v5045_v55 = vrot.slane %v11294_v48, %v10210_v2 }
 0x25a   : > { %8985 = vmatpush3.bf16.msra.mxu1 %v9624_v58  ;;  %8992 = vmatprep.subr.bf16.mxu0 %v9625_v59  ;;  %v4678_v58 = vpack.c.bf16 %v4671_v49, %v4671_v49  ;;  %v9660_v59 = vld [vmem:[%s11894_s3 + $0xbb8] sm:$0xff]  }
 0x25b   : > { %9014 = vmatprep.subr.bf16.mxu1 %v9626_v62  ;;  %v5049_v63 = vpack.c.bf16 %v5045_v55, %v5045_v55 }
 0x25c   : > { %v8700_v8 = vpop.f32.mrf.mxu0  ;;  %4472 = vmatmul.mubr.bf16.vlgmr.msra.gmra.mxu0 %v4308_v5  ;;  %v5234_v5 = vpack.c.bf16 %v5230_v57, %v5230_v57 }
 0x25d   : > { %v8722_v13 = vpop.f32.mrf.mxu1  ;;  %4657 = vmatmul.mubr.bf16.vlgmr.msra.gmra.mxu1 %v4493_v6  ;;  %8993 = vmatpush3.bf16.msra.mxu0 %v9627_v3  ;;  %v9662_v3 = vld [vmem:[%s11894_s3 + $0xbf0] sm:$0xff]  }
 0x25e   : > { %4841 = vmatprep.mubr.bf16.mxu0 %v4679_v9  ;;  %9015 = vmatpush3.bf16.msra.mxu1 %v9628_v0  ;;  %v8701_v14 = vpop.f32.mrf.mxu0  ;;  %v9663_v0 = vld [vmem:[%s11894_s3 + $0xb30] sm:$0xff]  }
 0x25f   : > { %5026 = vmatprep.mubr.bf16.mxu1 %v4864_v10  ;;  %v8702_v17 = vadd.f32 %v8701_v14, %v8700_v8  ;;  %v8723_v18 = vpop.f32.mrf.mxu1  ;;  %8994 = vmatprep.subr.bf16.mxu0 %v9629_v7  ;;  %v9664_v7 = vld [vmem:[%s11894_s3 + $0xbb0] sm:$0xff]   ;;  %v9665_v8 = vld [vmem:[%s11894_s3 + $0xb68] sm:$0xff]  }
 0x260   : > { %v8724_v22 = vadd.f32 %v8723_v18, %v8722_v13  ;;  %v8703_v20 = vpop.f32.mrf.mxu0  ;;  %9016 = vmatprep.subr.bf16.mxu1 %v9630_v12  ;;  %v9666_v13 = vld [vmem:[%s11894_s3 + $0xbe8] sm:$0xff]  }
 0x261   : > { %v2259_v23 = vadd.f32 %v8702_v17, %v11127_v36  ;;  %v8725_v24 = vpop.f32.mrf.mxu1  ;;  %8995 = vmatpush3.bf16.msra.mxu0 %v9631_v11  ;;  %v9644_v36 = vld [vmem:[%s11894_s3 + $0xa98] sm:$0xff]   ;;  %v9668_v18 = vld [vmem:[%s11894_s3 + $0xba8] sm:$0xff]  }
 0x262   : > { %9017 = vmatpush3.bf16.msra.mxu1 %v9632_v15  ;;  %v8704_v26 = vpop.f32.mrf.mxu0  ;;  %8996 = vmatprep.subr.bf16.mxu0 %v9633_v16  ;;  %v9667_v16 = vld [vmem:[%s11894_s3 + $0xb28] sm:$0xff]   ;;  %v9671_v24 = vld [vmem:[%s11894_s3 + $0xb20] sm:$0xff]  }
 0x263   : > { %v11238_v21 = vadd.f32 %v8724_v22, %v2259_v23  ;;  %v8726_v29 = vpop.f32.mrf.mxu1  ;;  %9018 = vmatprep.subr.bf16.mxu1 %v9634_v19  ;;  %v9669_v19 = vld [vmem:[%s11894_s3 + $0xb60] sm:$0xff]   ;;  %v9673_v26 = vld [vmem:[%s11894_s3 + $0xb58] sm:$0xff]  }
 0x264   : > { %v9670_v23 = vld [vmem:[%s11894_s3 + $0xbe0] sm:$0xff]   ;;  %v9677_v29 = vld [vmem:[%s11894_s3 + $0xb50] sm:$0xff]  }
 0x265   : > { %8997 = vmatpush3.bf16.msra.mxu0 %v9635_v25  ;;  %v9672_v25 = vld [vmem:[%s11894_s3 + $0xba0] sm:$0xff]  }
 0x266   : > { %9019 = vmatpush3.bf16.msra.mxu1 %v9636_v27  ;;  %8998 = vmatprep.subr.bf16.mxu0 %v9637_v28  ;;  %v9674_v27 = vld [vmem:[%s11894_s3 + $0xbd8] sm:$0xff]  }
 0x267   : > { %9020 = vmatprep.subr.bf16.mxu1 %v9638_v30  ;;  %v9675_v28 = vld [vmem:[%s11894_s3 + $0xb18] sm:$0xff]   ;;  %v9678_v30 = vld [vmem:[%s11894_s3 + $0xbd0] sm:$0xff]  }
 0x269   : > { %8999 = vmatpush3.bf16.msra.mxu0 %v9639_v31  ;;  %v9679_v31 = vld [vmem:[%s11894_s3 + $0xb10] sm:$0xff]  }
 0x26a   : > { %9021 = vmatpush3.bf16.msra.mxu1 %v9640_v32  ;;  %9000 = vmatprep.subr.bf16.mxu0 %v9641_v33  ;;  %v9680_v32 = vld [vmem:[%s11894_s3 + $0xb90] sm:$0xff]   ;;  %v9681_v33 = vld [vmem:[%s11894_s3 + $0xb48] sm:$0xff]  }
 0x26b   : > { %9022 = vmatprep.subr.bf16.mxu1 %v9642_v34  ;;  %v9682_v34 = vld [vmem:[%s11894_s3 + $0xbc8] sm:$0xff]  }
 0x26d   : > { %9001 = vmatpush3.bf16.msra.mxu0 %v9643_v35  ;;  %v9683_v35 = vld [vmem:[%s11894_s3 + $0xb08] sm:$0xff]  }
 0x26e   : > { %9023 = vmatpush3.bf16.msra.mxu1 %v9644_v36  ;;  %9002 = vmatprep.subr.bf16.mxu0 %v9645_v37  ;;  %v9684_v36 = vld [vmem:[%s11894_s3 + $0xb88] sm:$0xff]   ;;  %v9685_v37 = vld [vmem:[%s11894_s3 + $0xb40] sm:$0xff]  }
 0x26f   : > { %9024 = vmatprep.subr.bf16.mxu1 %v9646_v38  ;;  %v9686_v38 = vld [vmem:[%s11894_s3 + $0xbc0] sm:$0xff]  }
 0x271   : > { %9003 = vmatpush3.bf16.msra.mxu0 %v9647_v39  ;;  %v9687_v39 = vld [vmem:[%s11894_s3 + $0xb00] sm:$0xff]  }
 0x272   : > { %9025 = vmatpush3.bf16.msra.mxu1 %v9648_v40  ;;  %9004 = vmatprep.subr.bf16.mxu0 %v9649_v41  ;;  %v11405_v40 = vld [vmem:[#allocation2 + $0x30] ss:$8 sm:$0x3]  ;;  %v5041_v41 = vrot.slane %v11294_v48, %v10208_v1 }
 0x273   : > { %9026 = vmatprep.subr.bf16.mxu1 %v9650_v42  ;;  %v9688_v42 = vld [vmem:[%s11894_s3 + $0xb80] sm:$0xff]   ;;  %v9691_v48 = vld [vmem:[%s11894_s3 + $0xc38] sm:$0xff]  }
 0x275   : > { %9005 = vmatpush3.bf16.msra.mxu0 %v9651_v43  ;;  %v9689_v43 = vld [vmem:[%s11894_s3 + $0xc78] sm:$0xff]  }
 0x276   : > { %9027 = vmatpush3.bf16.msra.mxu1 %v9652_v44  ;;  %9006 = vmatprep.subr.bf16.mxu0 %v9653_v45  ;;  %v11415_v44 = vld [vmem:[#allocation2 + $0x31] ss:$8 sm:$0x3]  ;;  %v5226_v45 = vrot.slane %v11304_v52, %v10208_v1 }
 0x277   : > { %9028 = vmatprep.subr.bf16.mxu1 %v9654_v46  ;;  %v9690_v46 = vld [vmem:[%s11894_s3 + $0xcf8] sm:$0xff]   ;;  %v5600_v49 = vrot.slane %v11415_v44, %v10210_v2 }
 0x278   : > { %v5233_v52 = vpack.c.bf16 %v5226_v45, %v5226_v45  ;;  %v9725_v45 = vld [vmem:[%s11894_s3 + $0xd70] sm:$0xff]  }
 0x279   : > { %9007 = vmatpush3.bf16.msra.mxu0 %v9655_v47  ;;  %v5415_v47 = vrot.slane %v11405_v40, %v10210_v2 }
 0x27a   : > { %9029 = vmatpush3.bf16.msra.mxu1 %v9656_v50  ;;  %9036 = vmatprep.subr.bf16.mxu0 %v9657_v51  ;;  %v5048_v50 = vpack.c.bf16 %v5041_v41, %v5041_v41  ;;  %v9692_v51 = vld [vmem:[%s11894_s3 + $0xcb8] sm:$0xff]  }
 0x27b   : > { %9058 = vmatprep.subr.bf16.mxu1 %v9658_v54  ;;  %v5419_v55 = vpack.c.bf16 %v5415_v47, %v5415_v47 }
 0x27c   : > { %v8744_v62 = vpop.f32.mrf.mxu0  ;;  %4842 = vmatmul.mubr.bf16.vlgmr.msra.gmra.mxu0 %v4678_v58  ;;  %v5604_v58 = vpack.c.bf16 %v5600_v49, %v5600_v49 }
 0x27d   : > { %v8766_v4 = vpop.f32.mrf.mxu1  ;;  %5027 = vmatmul.mubr.bf16.vlgmr.msra.gmra.mxu1 %v4863_v60  ;;  %9037 = vmatpush3.bf16.msra.mxu0 %v9659_v56  ;;  %v9694_v56 = vld [vmem:[%s11894_s3 + $0xcf0] sm:$0xff]  }
 0x27e   : > { %5211 = vmatprep.mubr.bf16.mxu0 %v5049_v63  ;;  %9059 = vmatpush3.bf16.msra.mxu1 %v9660_v59  ;;  %v8745_v6 = vpop.f32.mrf.mxu0  ;;  %v9695_v59 = vld [vmem:[%s11894_s3 + $0xc30] sm:$0xff]  }
 0x27f   : > { %5396 = vmatprep.mubr.bf16.mxu1 %v5234_v5  ;;  %v8746_v9 = vadd.f32 %v8745_v6, %v8744_v62  ;;  %v8767_v12 = vpop.f32.mrf.mxu1  ;;  %9038 = vmatprep.subr.bf16.mxu0 %v9661_v61  ;;  %v9696_v61 = vld [vmem:[%s11894_s3 + $0xcb0] sm:$0xff]   ;;  %v9697_v62 = vld [vmem:[%s11894_s3 + $0xc68] sm:$0xff]  }
 0x280   : > { %v8768_v10 = vadd.f32 %v8767_v12, %v8766_v4  ;;  %v8747_v11 = vpop.f32.mrf.mxu0  ;;  %9060 = vmatprep.subr.bf16.mxu1 %v9662_v3  ;;  %v9698_v4 = vld [vmem:[%s11894_s3 + $0xce8] sm:$0xff]  }
 0x281   : > { %v2629_v14 = vadd.f32 %v8746_v9, %v11238_v21  ;;  %v8769_v15 = vpop.f32.mrf.mxu1  ;;  %9039 = vmatpush3.bf16.msra.mxu0 %v9663_v0  ;;  %v9676_v21 = vld [vmem:[%s11894_s3 + $0xb98] sm:$0xff]   ;;  %v9700_v12 = vld [vmem:[%s11894_s3 + $0xca8] sm:$0xff]  }
 0x282   : > { %9061 = vmatpush3.bf16.msra.mxu1 %v9664_v7  ;;  %v8748_v17 = vpop.f32.mrf.mxu0  ;;  %9040 = vmatprep.subr.bf16.mxu0 %v9665_v8  ;;  %v9699_v8 = vld [vmem:[%s11894_s3 + $0xc28] sm:$0xff]   ;;  %v9703_v15 = vld [vmem:[%s11894_s3 + $0xc20] sm:$0xff]  }
 0x283   : > { %v11349_v22 = vadd.f32 %v8768_v10, %v2629_v14  ;;  %v8770_v20 = vpop.f32.mrf.mxu1  ;;  %9062 = vmatprep.subr.bf16.mxu1 %v9666_v13  ;;  %v9701_v13 = vld [vmem:[%s11894_s3 + $0xc60] sm:$0xff]   ;;  %v9705_v17 = vld [vmem:[%s11894_s3 + $0xc58] sm:$0xff]  }
 0x284   : > { %v9702_v14 = vld [vmem:[%s11894_s3 + $0xce0] sm:$0xff]   ;;  %v9709_v20 = vld [vmem:[%s11894_s3 + $0xc50] sm:$0xff]  }
 0x285   : > { %9041 = vmatpush3.bf16.msra.mxu0 %v9667_v16  ;;  %v9704_v16 = vld [vmem:[%s11894_s3 + $0xca0] sm:$0xff]  }
 0x286   : > { %9063 = vmatpush3.bf16.msra.mxu1 %v9668_v18  ;;  %9042 = vmatprep.subr.bf16.mxu0 %v9669_v19  ;;  %v9706_v18 = vld [vmem:[%s11894_s3 + $0xcd8] sm:$0xff]  }
 0x287   : > { %9064 = vmatprep.subr.bf16.mxu1 %v9670_v23  ;;  %v9707_v19 = vld [vmem:[%s11894_s3 + $0xc18] sm:$0xff]   ;;  %v9710_v23 = vld [vmem:[%s11894_s3 + $0xcd0] sm:$0xff]  }
 0x289   : > { %9043 = vmatpush3.bf16.msra.mxu0 %v9671_v24  ;;  %v9711_v24 = vld [vmem:[%s11894_s3 + $0xc10] sm:$0xff]  }
 0x28a   : > { %9065 = vmatpush3.bf16.msra.mxu1 %v9672_v25  ;;  %9044 = vmatprep.subr.bf16.mxu0 %v9673_v26  ;;  %v9712_v25 = vld [vmem:[%s11894_s3 + $0xc90] sm:$0xff]   ;;  %v9713_v26 = vld [vmem:[%s11894_s3 + $0xc48] sm:$0xff]  }
 0x28b   : > { %9066 = vmatprep.subr.bf16.mxu1 %v9674_v27  ;;  %v9714_v27 = vld [vmem:[%s11894_s3 + $0xcc8] sm:$0xff]  }
 0x28d   : > { %9045 = vmatpush3.bf16.msra.mxu0 %v9675_v28  ;;  %v9715_v28 = vld [vmem:[%s11894_s3 + $0xc08] sm:$0xff]  }
 0x28e   : > { %9067 = vmatpush3.bf16.msra.mxu1 %v9676_v21  ;;  %9046 = vmatprep.subr.bf16.mxu0 %v9677_v29  ;;  %v9716_v21 = vld [vmem:[%s11894_s3 + $0xc88] sm:$0xff]   ;;  %v9717_v29 = vld [vmem:[%s11894_s3 + $0xc40] sm:$0xff]  }
 0x28f   : > { %9068 = vmatprep.subr.bf16.mxu1 %v9678_v30  ;;  %v9718_v30 = vld [vmem:[%s11894_s3 + $0xcc0] sm:$0xff]  }
 0x291   : > { %9047 = vmatpush3.bf16.msra.mxu0 %v9679_v31  ;;  %v9719_v31 = vld [vmem:[%s11894_s3 + $0xc00] sm:$0xff]  }
 0x292   : > { %9069 = vmatpush3.bf16.msra.mxu1 %v9680_v32  ;;  %9048 = vmatprep.subr.bf16.mxu0 %v9681_v33  ;;  %v11516_v32 = vld [vmem:[#allocation2 + $0x32] ss:$8 sm:$0x3]  ;;  %v5411_v33 = vrot.slane %v11405_v40, %v10208_v1 }
 0x293   : > { %9070 = vmatprep.subr.bf16.mxu1 %v9682_v34  ;;  %v9720_v34 = vld [vmem:[%s11894_s3 + $0xc80] sm:$0xff]   ;;  %v9723_v40 = vld [vmem:[%s11894_s3 + $0xd38] sm:$0xff]  }
 0x295   : > { %9049 = vmatpush3.bf16.msra.mxu0 %v9683_v35  ;;  %v9721_v35 = vld [vmem:[%s11894_s3 + $0xd78] sm:$0xff]  }
 0x296   : > { %9071 = vmatpush3.bf16.msra.mxu1 %v9684_v36  ;;  %9050 = vmatprep.subr.bf16.mxu0 %v9685_v37  ;;  %v11526_v36 = vld [vmem:[#allocation2 + $0x33] ss:$8 sm:$0x3]  ;;  %v5596_v37 = vrot.slane %v11415_v44, %v10208_v1 }
 0x297   : > { %9072 = vmatprep.subr.bf16.mxu1 %v9686_v38  ;;  %v9722_v38 = vld [vmem:[%s11894_s3 + $0xdf8] sm:$0xff]   ;;  %v5970_v41 = vrot.slane %v11526_v36, %v10210_v2 }
 0x298   : > { %v5603_v44 = vpack.c.bf16 %v5596_v37, %v5596_v37  ;;  %v9757_v37 = vld [vmem:[%s11894_s3 + $0xe70] sm:$0xff]  }
 0x299   : > { %9051 = vmatpush3.bf16.msra.mxu0 %v9687_v39  ;;  %v5785_v39 = vrot.slane %v11516_v32, %v10210_v2 }
 0x29a   : > { %9073 = vmatpush3.bf16.msra.mxu1 %v9688_v42  ;;  %9080 = vmatprep.subr.bf16.mxu0 %v9689_v43  ;;  %v5418_v42 = vpack.c.bf16 %v5411_v33, %v5411_v33  ;;  %v9724_v43 = vld [vmem:[%s11894_s3 + $0xdb8] sm:$0xff]  }
 0x29b   : > { %9102 = vmatprep.subr.bf16.mxu1 %v9690_v46  ;;  %v5789_v47 = vpack.c.bf16 %v5785_v39, %v5785_v39 }
 0x29c   : > { %v8788_v54 = vpop.f32.mrf.mxu0  ;;  %5212 = vmatmul.mubr.bf16.vlgmr.msra.gmra.mxu0 %v5048_v50  ;;  %v5974_v50 = vpack.c.bf16 %v5970_v41, %v5970_v41 }
 0x29d   : > { %v8810_v57 = vpop.f32.mrf.mxu1  ;;  %5397 = vmatmul.mubr.bf16.vlgmr.msra.gmra.mxu1 %v5233_v52  ;;  %9081 = vmatpush3.bf16.msra.mxu0 %v9691_v48  ;;  %v9726_v48 = vld [vmem:[%s11894_s3 + $0xdf0] sm:$0xff]  }
 0x29e   : > { %5581 = vmatprep.mubr.bf16.mxu0 %v5419_v55  ;;  %9103 = vmatpush3.bf16.msra.mxu1 %v9692_v51  ;;  %v8789_v60 = vpop.f32.mrf.mxu0  ;;  %v9727_v51 = vld [vmem:[%s11894_s3 + $0xd30] sm:$0xff]  }
 0x29f   : > { %5766 = vmatprep.mubr.bf16.mxu1 %v5604_v58  ;;  %v8790_v63 = vadd.f32 %v8789_v60, %v8788_v54  ;;  %v8811_v3 = vpop.f32.mrf.mxu1  ;;  %9082 = vmatprep.subr.bf16.mxu0 %v9693_v53  ;;  %v9728_v53 = vld [vmem:[%s11894_s3 + $0xdb0] sm:$0xff]   ;;  %v9729_v54 = vld [vmem:[%s11894_s3 + $0xd68] sm:$0xff]  }
 0x2a0   : > { %v8812_v5 = vadd.f32 %v8811_v3, %v8810_v57  ;;  %v8791_v0 = vpop.f32.mrf.mxu0  ;;  %9104 = vmatprep.subr.bf16.mxu1 %v9694_v56  ;;  %v9730_v57 = vld [vmem:[%s11894_s3 + $0xde8] sm:$0xff]  }
 0x2a1   : > { %v2999_v6 = vadd.f32 %v8790_v63, %v11349_v22  ;;  %v8813_v7 = vpop.f32.mrf.mxu1  ;;  %9083 = vmatpush3.bf16.msra.mxu0 %v9695_v59  ;;  %v9708_v22 = vld [vmem:[%s11894_s3 + $0xc98] sm:$0xff]   ;;  %v9732_v3 = vld [vmem:[%s11894_s3 + $0xda8] sm:$0xff]  }
 0x2a2   : > { %9105 = vmatpush3.bf16.msra.mxu1 %v9696_v61  ;;  %v8792_v9 = vpop.f32.mrf.mxu0  ;;  %9084 = vmatprep.subr.bf16.mxu0 %v9697_v62  ;;  %v9731_v62 = vld [vmem:[%s11894_s3 + $0xd28] sm:$0xff]   ;;  %v9735_v7 = vld [vmem:[%s11894_s3 + $0xd20] sm:$0xff]  }
 0x2a3   : > { %v11460_v10 = vadd.f32 %v8812_v5, %v2999_v6  ;;  %v8814_v11 = vpop.f32.mrf.mxu1  ;;  %9106 = vmatprep.subr.bf16.mxu1 %v9698_v4  ;;  %v9733_v4 = vld [vmem:[%s11894_s3 + $0xd60] sm:$0xff]   ;;  %v9737_v9 = vld [vmem:[%s11894_s3 + $0xd58] sm:$0xff]  }
 0x2a4   : > { %v9734_v6 = vld [vmem:[%s11894_s3 + $0xde0] sm:$0xff]   ;;  %v9741_v11 = vld [vmem:[%s11894_s3 + $0xd50] sm:$0xff]  }
 0x2a5   : > { %9085 = vmatpush3.bf16.msra.mxu0 %v9699_v8  ;;  %v9736_v8 = vld [vmem:[%s11894_s3 + $0xda0] sm:$0xff]  }
 0x2a6   : > { %9107 = vmatpush3.bf16.msra.mxu1 %v9700_v12  ;;  %9086 = vmatprep.subr.bf16.mxu0 %v9701_v13  ;;  %v9738_v12 = vld [vmem:[%s11894_s3 + $0xdd8] sm:$0xff]  }
 0x2a7   : > { %9108 = vmatprep.subr.bf16.mxu1 %v9702_v14  ;;  %v9739_v13 = vld [vmem:[%s11894_s3 + $0xd18] sm:$0xff]   ;;  %v9742_v14 = vld [vmem:[%s11894_s3 + $0xdd0] sm:$0xff]  }
 0x2a9   : > { %9087 = vmatpush3.bf16.msra.mxu0 %v9703_v15  ;;  %v9743_v15 = vld [vmem:[%s11894_s3 + $0xd10] sm:$0xff]  }
 0x2aa   : > { %9109 = vmatpush3.bf16.msra.mxu1 %v9704_v16  ;;  %9088 = vmatprep.subr.bf16.mxu0 %v9705_v17  ;;  %v9744_v16 = vld [vmem:[%s11894_s3 + $0xd90] sm:$0xff]   ;;  %v9745_v17 = vld [vmem:[%s11894_s3 + $0xd48] sm:$0xff]  }
 0x2ab   : > { %9110 = vmatprep.subr.bf16.mxu1 %v9706_v18  ;;  %v9746_v18 = vld [vmem:[%s11894_s3 + $0xdc8] sm:$0xff]  }
 0x2ad   : > { %9089 = vmatpush3.bf16.msra.mxu0 %v9707_v19  ;;  %v9747_v19 = vld [vmem:[%s11894_s3 + $0xd08] sm:$0xff]  }
 0x2ae   : > { %9111 = vmatpush3.bf16.msra.mxu1 %v9708_v22  ;;  %9090 = vmatprep.subr.bf16.mxu0 %v9709_v20  ;;  %v9748_v22 = vld [vmem:[%s11894_s3 + $0xd88] sm:$0xff]   ;;  %v9749_v20 = vld [vmem:[%s11894_s3 + $0xd40] sm:$0xff]  }
 0x2af   : > { %9112 = vmatprep.subr.bf16.mxu1 %v9710_v23  ;;  %v9750_v23 = vld [vmem:[%s11894_s3 + $0xdc0] sm:$0xff]  }
 0x2b1   : > { %9091 = vmatpush3.bf16.msra.mxu0 %v9711_v24  ;;  %v9751_v24 = vld [vmem:[%s11894_s3 + $0xd00] sm:$0xff]  }
 0x2b2   : > { %9113 = vmatpush3.bf16.msra.mxu1 %v9712_v25  ;;  %9092 = vmatprep.subr.bf16.mxu0 %v9713_v26  ;;  %v11627_v25 = vld [vmem:[#allocation2 + $0x34] ss:$8 sm:$0x3]  ;;  %v5781_v26 = vrot.slane %v11516_v32, %v10208_v1 }
 0x2b3   : > { %9114 = vmatprep.subr.bf16.mxu1 %v9714_v27  ;;  %v9752_v27 = vld [vmem:[%s11894_s3 + $0xd80] sm:$0xff]   ;;  %v9755_v32 = vld [vmem:[%s11894_s3 + $0xe38] sm:$0xff]  }
 0x2b5   : > { %9093 = vmatpush3.bf16.msra.mxu0 %v9715_v28  ;;  %v9753_v28 = vld [vmem:[%s11894_s3 + $0xe78] sm:$0xff]  }
 0x2b6   : > { %9115 = vmatpush3.bf16.msra.mxu1 %v9716_v21  ;;  %9094 = vmatprep.subr.bf16.mxu0 %v9717_v29  ;;  %v11637_v21 = vld [vmem:[#allocation2 + $0x35] ss:$8 sm:$0x3]  ;;  %v5966_v29 = vrot.slane %v11526_v36, %v10208_v1 }
 0x2b7   : > { %9116 = vmatprep.subr.bf16.mxu1 %v9718_v30  ;;  %v9754_v30 = vld [vmem:[%s11894_s3 + $0xef8] sm:$0xff]   ;;  %v6340_v33 = vrot.slane %v11637_v21, %v10210_v2 }
 0x2b8   : > { %v5973_v36 = vpack.c.bf16 %v5966_v29, %v5966_v29  ;;  %v9789_v29 = vld [vmem:[%s11894_s3 + $0xf70] sm:$0xff]  }
 0x2b9   : > { %9095 = vmatpush3.bf16.msra.mxu0 %v9719_v31  ;;  %v6155_v31 = vrot.slane %v11627_v25, %v10210_v2 }
 0x2ba   : > { %9117 = vmatpush3.bf16.msra.mxu1 %v9720_v34  ;;  %9124 = vmatprep.subr.bf16.mxu0 %v9721_v35  ;;  %v5788_v34 = vpack.c.bf16 %v5781_v26, %v5781_v26  ;;  %v9756_v35 = vld [vmem:[%s11894_s3 + $0xeb8] sm:$0xff]  }
 0x2bb   : > { %9146 = vmatprep.subr.bf16.mxu1 %v9722_v38  ;;  %v6159_v39 = vpack.c.bf16 %v6155_v31, %v6155_v31 }
 0x2bc   : > { %v8832_v46 = vpop.f32.mrf.mxu0  ;;  %5582 = vmatmul.mubr.bf16.vlgmr.msra.gmra.mxu0 %v5418_v42  ;;  %v6344_v42 = vpack.c.bf16 %v6340_v33, %v6340_v33 }
 0x2bd   : > { %v8854_v49 = vpop.f32.mrf.mxu1  ;;  %5767 = vmatmul.mubr.bf16.vlgmr.msra.gmra.mxu1 %v5603_v44  ;;  %9125 = vmatpush3.bf16.msra.mxu0 %v9723_v40  ;;  %v9758_v40 = vld [vmem:[%s11894_s3 + $0xef0] sm:$0xff]  }
 0x2be   : > { %5951 = vmatprep.mubr.bf16.mxu0 %v5789_v47  ;;  %9147 = vmatpush3.bf16.msra.mxu1 %v9724_v43  ;;  %v8833_v52 = vpop.f32.mrf.mxu0  ;;  %v9759_v43 = vld [vmem:[%s11894_s3 + $0xe30] sm:$0xff]  }
 0x2bf   : > { %6136 = vmatprep.mubr.bf16.mxu1 %v5974_v50  ;;  %v8834_v55 = vadd.f32 %v8833_v52, %v8832_v46  ;;  %v8855_v56 = vpop.f32.mrf.mxu1  ;;  %9126 = vmatprep.subr.bf16.mxu0 %v9725_v45  ;;  %v9760_v45 = vld [vmem:[%s11894_s3 + $0xeb0] sm:$0xff]   ;;  %v9761_v46 = vld [vmem:[%s11894_s3 + $0xe68] sm:$0xff]  }
 0x2c0   : > { %v8856_v58 = vadd.f32 %v8855_v56, %v8854_v49  ;;  %v8835_v59 = vpop.f32.mrf.mxu0  ;;  %9148 = vmatprep.subr.bf16.mxu1 %v9726_v48  ;;  %v9762_v49 = vld [vmem:[%s11894_s3 + $0xee8] sm:$0xff]  }
 0x2c1   : > { %v3369_v60 = vadd.f32 %v8834_v55, %v11460_v10  ;;  %v8857_v61 = vpop.f32.mrf.mxu1  ;;  %9127 = vmatpush3.bf16.msra.mxu0 %v9727_v51  ;;  %v9740_v10 = vld [vmem:[%s11894_s3 + $0xd98] sm:$0xff]   ;;  %v9764_v56 = vld [vmem:[%s11894_s3 + $0xea8] sm:$0xff]  }
 0x2c2   : > { %9149 = vmatpush3.bf16.msra.mxu1 %v9728_v53  ;;  %v8836_v63 = vpop.f32.mrf.mxu0  ;;  %9128 = vmatprep.subr.bf16.mxu0 %v9729_v54  ;;  %v9763_v54 = vld [vmem:[%s11894_s3 + $0xe28] sm:$0xff]   ;;  %v9767_v61 = vld [vmem:[%s11894_s3 + $0xe20] sm:$0xff]  }
 0x2c3   : > { %v11571_v5 = vadd.f32 %v8856_v58, %v3369_v60  ;;  %v8858_v0 = vpop.f32.mrf.mxu1  ;;  %9150 = vmatprep.subr.bf16.mxu1 %v9730_v57  ;;  %v9765_v57 = vld [vmem:[%s11894_s3 + $0xe60] sm:$0xff]   ;;  %v9769_v63 = vld [vmem:[%s11894_s3 + $0xe58] sm:$0xff]  }
 0x2c4   : > { %v9766_v60 = vld [vmem:[%s11894_s3 + $0xee0] sm:$0xff]   ;;  %v9773_v0 = vld [vmem:[%s11894_s3 + $0xe50] sm:$0xff]  }
 0x2c5   : > { %9129 = vmatpush3.bf16.msra.mxu0 %v9731_v62  ;;  %v9768_v62 = vld [vmem:[%s11894_s3 + $0xea0] sm:$0xff]  }
 0x2c6   : > { %9151 = vmatpush3.bf16.msra.mxu1 %v9732_v3  ;;  %9130 = vmatprep.subr.bf16.mxu0 %v9733_v4  ;;  %v9770_v3 = vld [vmem:[%s11894_s3 + $0xed8] sm:$0xff]  }
 0x2c7   : > { %9152 = vmatprep.subr.bf16.mxu1 %v9734_v6  ;;  %v9771_v4 = vld [vmem:[%s11894_s3 + $0xe18] sm:$0xff]   ;;  %v9774_v6 = vld [vmem:[%s11894_s3 + $0xed0] sm:$0xff]  }
 0x2c9   : > { %9131 = vmatpush3.bf16.msra.mxu0 %v9735_v7  ;;  %v9775_v7 = vld [vmem:[%s11894_s3 + $0xe10] sm:$0xff]  }
 0x2ca   : > { %9153 = vmatpush3.bf16.msra.mxu1 %v9736_v8  ;;  %9132 = vmatprep.subr.bf16.mxu0 %v9737_v9  ;;  %v9776_v8 = vld [vmem:[%s11894_s3 + $0xe90] sm:$0xff]   ;;  %v9777_v9 = vld [vmem:[%s11894_s3 + $0xe48] sm:$0xff]  }
 0x2cb   : > { %9154 = vmatprep.subr.bf16.mxu1 %v9738_v12  ;;  %v9778_v12 = vld [vmem:[%s11894_s3 + $0xec8] sm:$0xff]  }
 0x2cd   : > { %9133 = vmatpush3.bf16.msra.mxu0 %v9739_v13  ;;  %v9779_v13 = vld [vmem:[%s11894_s3 + $0xe08] sm:$0xff]  }
 0x2ce   : > { %9155 = vmatpush3.bf16.msra.mxu1 %v9740_v10  ;;  %9134 = vmatprep.subr.bf16.mxu0 %v9741_v11  ;;  %v9780_v10 = vld [vmem:[%s11894_s3 + $0xe88] sm:$0xff]   ;;  %v9781_v11 = vld [vmem:[%s11894_s3 + $0xe40] sm:$0xff]  }
 0x2cf   : > { %9156 = vmatprep.subr.bf16.mxu1 %v9742_v14  ;;  %v9782_v14 = vld [vmem:[%s11894_s3 + $0xec0] sm:$0xff]  }
 0x2d1   : > { %9135 = vmatpush3.bf16.msra.mxu0 %v9743_v15  ;;  %v9783_v15 = vld [vmem:[%s11894_s3 + $0xe00] sm:$0xff]  }
 0x2d2   : > { %9157 = vmatpush3.bf16.msra.mxu1 %v9744_v16  ;;  %9136 = vmatprep.subr.bf16.mxu0 %v9745_v17  ;;  %v11738_v16 = vld [vmem:[#allocation2 + $0x36] ss:$8 sm:$0x3]  ;;  %v6151_v17 = vrot.slane %v11627_v25, %v10208_v1 }
 0x2d3   : > { %9158 = vmatprep.subr.bf16.mxu1 %v9746_v18  ;;  %v9784_v18 = vld [vmem:[%s11894_s3 + $0xe80] sm:$0xff]   ;;  %v9787_v25 = vld [vmem:[%s11894_s3 + $0xf38] sm:$0xff]  }
 0x2d5   : > { %9137 = vmatpush3.bf16.msra.mxu0 %v9747_v19  ;;  %v9785_v19 = vld [vmem:[%s11894_s3 + $0xf78] sm:$0xff]  }
 0x2d6   : > { %9159 = vmatpush3.bf16.msra.mxu1 %v9748_v22  ;;  %9138 = vmatprep.subr.bf16.mxu0 %v9749_v20  ;;  %v11748_v22 = vld [vmem:[#allocation2 + $0x37] ss:$8 sm:$0x3]  ;;  %v6336_v20 = vrot.slane %v11637_v21, %v10208_v1 }
 0x2d7   : > { %9160 = vmatprep.subr.bf16.mxu1 %v9750_v23  ;;  %v9786_v23 = vld [vmem:[%s11894_s3 + $0xff8] sm:$0xff]   ;;  %v6710_v26 = vrot.slane %v11748_v22, %v10210_v2 }
 0x2d8   : > { %v6343_v21 = vpack.c.bf16 %v6336_v20, %v6336_v20 }
 0x2d9   : > { %9139 = vmatpush3.bf16.msra.mxu0 %v9751_v24  ;;  %v6525_v24 = vrot.slane %v11738_v16, %v10210_v2  ;;  %v9790_v2 = vld [vmem:[%s11894_s3 + $0xff0] sm:$0xff]   ;;  %v6714_v33 = vpack.c.bf16 %v6710_v26, %v6710_v26 }
 0x2da   : > { %9161 = vmatpush3.bf16.msra.mxu1 %v9752_v27  ;;  %9168 = vmatprep.subr.bf16.mxu0 %v9753_v28  ;;  %v6158_v27 = vpack.c.bf16 %v6151_v17, %v6151_v17  ;;  %v9788_v28 = vld [vmem:[%s11894_s3 + $0xfb8] sm:$0xff]  }
 0x2db   : > { %9190 = vmatprep.subr.bf16.mxu1 %v9754_v30  ;;  %v6529_v31 = vpack.c.bf16 %v6525_v24, %v6525_v24 }
 0x2dc   : > { %v8876_v38 = vpop.f32.mrf.mxu0  ;;  %5952 = vmatmul.mubr.bf16.vlgmr.msra.gmra.mxu0 %v5788_v34  ;;  %v9791_v34 = vld [vmem:[%s11894_s3 + $0xf30] sm:$0xff]  }
 0x2dd   : > { %v8898_v41 = vpop.f32.mrf.mxu1  ;;  %6137 = vmatmul.mubr.bf16.vlgmr.msra.gmra.mxu1 %v5973_v36  ;;  %9169 = vmatpush3.bf16.msra.mxu0 %v9755_v32  ;;  %v9792_v36 = vld [vmem:[%s11894_s3 + $0xfb0] sm:$0xff]  }
 0x2de   : > { %6321 = vmatprep.mubr.bf16.mxu0 %v6159_v39  ;;  %9191 = vmatpush3.bf16.msra.mxu1 %v9756_v35  ;;  %v8877_v44 = vpop.f32.mrf.mxu0 }
 0x2df   : > { %6506 = vmatprep.mubr.bf16.mxu1 %v6344_v42  ;;  %v8878_v47 = vadd.f32 %v8877_v44, %v8876_v38  ;;  %v8899_v48 = vpop.f32.mrf.mxu1  ;;  %9170 = vmatprep.subr.bf16.mxu0 %v9757_v37  ;;  %v9793_v37 = vld [vmem:[%s11894_s3 + $0xf68] sm:$0xff]  }
 0x2e0   : > { %v8900_v50 = vadd.f32 %v8899_v48, %v8898_v41  ;;  %v8879_v51 = vpop.f32.mrf.mxu0  ;;  %9192 = vmatprep.subr.bf16.mxu1 %v9758_v40  ;;  %v9794_v40 = vld [vmem:[%s11894_s3 + $0xfe8] sm:$0xff]   ;;  %v9797_v48 = vld [vmem:[%s11894_s3 + $0xf60] sm:$0xff]  }
 0x2e1   : > { %v3739_v52 = vadd.f32 %v8878_v47, %v11571_v5  ;;  %v8901_v53 = vpop.f32.mrf.mxu1  ;;  %9171 = vmatpush3.bf16.msra.mxu0 %v9759_v43  ;;  %v9772_v5 = vld [vmem:[%s11894_s3 + $0xe98] sm:$0xff]   ;;  %v9796_v47 = vld [vmem:[%s11894_s3 + $0xfa8] sm:$0xff]   ;;  %v9798_v51 = vld [vmem:[%s11894_s3 + $0xfe0] sm:$0xff]  }
 0x2e2   : > { %9193 = vmatpush3.bf16.msra.mxu1 %v9760_v45  ;;  %v8880_v55 = vpop.f32.mrf.mxu0  ;;  %9172 = vmatprep.subr.bf16.mxu0 %v9761_v46  ;;  %v9795_v45 = vld [vmem:[%s11894_s3 + $0xf28] sm:$0xff]   ;;  %v9800_v53 = vld [vmem:[%s11894_s3 + $0xfa0] sm:$0xff]  }
 0x2e3   : > { %v11682_v58 = vadd.f32 %v8900_v50, %v3739_v52  ;;  %v8902_v59 = vpop.f32.mrf.mxu1  ;;  %9194 = vmatprep.subr.bf16.mxu1 %v9762_v49  ;;  %v9799_v52 = vld [vmem:[%s11894_s3 + $0xf20] sm:$0xff]   ;;  %v9802_v55 = vld [vmem:[%s11894_s3 + $0xfd8] sm:$0xff]  }
 0x2e4   : > { %v9806_v59 = vld [vmem:[%s11894_s3 + $0xfd0] sm:$0xff]  }
 0x2e5   : > { %9173 = vmatpush3.bf16.msra.mxu0 %v9763_v54  ;;  %v9801_v54 = vld [vmem:[%s11894_s3 + $0xf58] sm:$0xff]  }
 0x2e6   : > { %9195 = vmatpush3.bf16.msra.mxu1 %v9764_v56  ;;  %9174 = vmatprep.subr.bf16.mxu0 %v9765_v57  ;;  %v9803_v56 = vld [vmem:[%s11894_s3 + $0xf18] sm:$0xff]  }
 0x2e7   : > { %9196 = vmatprep.subr.bf16.mxu1 %v9766_v60  ;;  %v9804_v57 = vld [vmem:[%s11894_s3 + $0xf98] sm:$0xff]   ;;  %v9807_v60 = vld [vmem:[%s11894_s3 + $0xf10] sm:$0xff]  }
 0x2e9   : > { %9175 = vmatpush3.bf16.msra.mxu0 %v9767_v61  ;;  %v9808_v61 = vld [vmem:[%s11894_s3 + $0xf90] sm:$0xff]  }
 0x2ea   : > { %9197 = vmatpush3.bf16.msra.mxu1 %v9768_v62  ;;  %9176 = vmatprep.subr.bf16.mxu0 %v9769_v63  ;;  %v9809_v62 = vld [vmem:[%s11894_s3 + $0xf48] sm:$0xff]  }
 0x2eb   : > { %9198 = vmatprep.subr.bf16.mxu1 %v9770_v3  ;;  %v9810_v63 = vld [vmem:[%s11894_s3 + $0xfc8] sm:$0xff]  }
 0x2ec   : > { %v9811_v3 = vld [vmem:[%s11894_s3 + $0xf08] sm:$0xff]  }
 0x2ed   : > { %9177 = vmatpush3.bf16.msra.mxu0 %v9771_v4  ;;  %v9812_v4 = vld [vmem:[%s11894_s3 + $0xf88] sm:$0xff]  }
 0x2ee   : > { %9199 = vmatpush3.bf16.msra.mxu1 %v9772_v5  ;;  %9178 = vmatprep.subr.bf16.mxu0 %v9773_v0  ;;  %v9813_v5 = vld [vmem:[%s11894_s3 + $0xf40] sm:$0xff]  }
 0x2ef   : > { %9200 = vmatprep.subr.bf16.mxu1 %v9774_v6  ;;  %v9814_v0 = vld [vmem:[%s11894_s3 + $0xfc0] sm:$0xff]  }
 0x2f0   : > { %v9815_v6 = vld [vmem:[%s11894_s3 + $0xf00] sm:$0xff]  }
 0x2f1   : > { %9179 = vmatpush3.bf16.msra.mxu0 %v9775_v7  ;;  %v6521_v7 = vrot.slane %v11738_v16, %v10208_v1 }
 0x2f2   : > { %9201 = vmatpush3.bf16.msra.mxu1 %v9776_v8  ;;  %9180 = vmatprep.subr.bf16.mxu0 %v9777_v9  ;;  %v9816_v8 = vld [vmem:[%s11894_s3 + $0xf80] sm:$0xff]   ;;  %v6706_v9 = vrot.slane %v11748_v22, %v10208_v1 }
 0x2f3   : > { %9202 = vmatprep.subr.bf16.mxu1 %v9778_v12  ;;  %v6528_v12 = vpack.c.bf16 %v6521_v7, %v6521_v7 }
 0x2f5   : > { %9181 = vmatpush3.bf16.msra.mxu0 %v9779_v13  ;;  %v6713_v13 = vpack.c.bf16 %v6706_v9, %v6706_v9 }
 0x2f6   : > { %9203 = vmatpush3.bf16.msra.mxu1 %v9780_v10  ;;  %9182 = vmatprep.subr.bf16.mxu0 %v9781_v11 }
 0x2f7   : > { %9204 = vmatprep.subr.bf16.mxu1 %v9782_v14 }
 0x2f9   : > { %9183 = vmatpush3.bf16.msra.mxu0 %v9783_v15 }
 0x2fa   : > { %9205 = vmatpush3.bf16.msra.mxu1 %v9784_v18  ;;  %9212 = vmatprep.subr.bf16.mxu0 %v9785_v19 }
 0x2fb   : > { %9234 = vmatprep.subr.bf16.mxu1 %v9786_v23 }
 0x2fc   : > { %v8920_v30 = vpop.f32.mrf.mxu0  ;;  %6322 = vmatmul.mubr.bf16.vlgmr.msra.gmra.mxu0 %v6158_v27 }
 0x2fd   : > { %v8942_v32 = vpop.f32.mrf.mxu1  ;;  %6507 = vmatmul.mubr.bf16.vlgmr.msra.gmra.mxu1 %v6343_v21  ;;  %9213 = vmatpush3.bf16.msra.mxu0 %v9787_v25 }
 0x2fe   : > { %6691 = vmatprep.mubr.bf16.mxu0 %v6529_v31  ;;  %9235 = vmatpush3.bf16.msra.mxu1 %v9788_v28  ;;  %v8921_v35 = vpop.f32.mrf.mxu0 }
 0x2ff   : > { %6876 = vmatprep.mubr.bf16.mxu1 %v6714_v33  ;;  %v8922_v38 = vadd.f32 %v8921_v35, %v8920_v30  ;;  %v8943_v39 = vpop.f32.mrf.mxu1  ;;  %9214 = vmatprep.subr.bf16.mxu0 %v9789_v29 }
 0x300   : > { %v8944_v41 = vadd.f32 %v8943_v39, %v8942_v32  ;;  %v8923_v42 = vpop.f32.mrf.mxu0  ;;  %9236 = vmatprep.subr.bf16.mxu1 %v9790_v2 }
 0x301   : > { %v4109_v43 = vadd.f32 %v8922_v38, %v11682_v58  ;;  %v8945_v44 = vpop.f32.mrf.mxu1  ;;  %9215 = vmatpush3.bf16.msra.mxu0 %v9791_v34  ;;  %v9805_v58 = vld [vmem:[%s11894_s3 + $0xf50] sm:$0xff]  }
 0x302   : > { %9237 = vmatpush3.bf16.msra.mxu1 %v9792_v36  ;;  %v8924_v46 = vpop.f32.mrf.mxu0  ;;  %9216 = vmatprep.subr.bf16.mxu0 %v9793_v37 }
 0x303   : > { %v4294_v49 = vadd.f32 %v8944_v41, %v4109_v43  ;;  %v8946_v50 = vpop.f32.mrf.mxu1  ;;  %9238 = vmatprep.subr.bf16.mxu1 %v9794_v40 }
 0x305   : > { %9217 = vmatpush3.bf16.msra.mxu0 %v9795_v45 }
 0x306   : > { %9239 = vmatpush3.bf16.msra.mxu1 %v9796_v47  ;;  %9218 = vmatprep.subr.bf16.mxu0 %v9797_v48 }
 0x307   : > { %9240 = vmatprep.subr.bf16.mxu1 %v9798_v51 }
 0x309   : > { %9219 = vmatpush3.bf16.msra.mxu0 %v9799_v52 }
 0x30a   : > { %9241 = vmatpush3.bf16.msra.mxu1 %v9800_v53  ;;  %9220 = vmatprep.subr.bf16.mxu0 %v9801_v54 }
 0x30b   : > { %9242 = vmatprep.subr.bf16.mxu1 %v9802_v55 }
 0x30d   : > { %9221 = vmatpush3.bf16.msra.mxu0 %v9803_v56 }
 0x30e   : > { %9243 = vmatpush3.bf16.msra.mxu1 %v9804_v57  ;;  %9222 = vmatprep.subr.bf16.mxu0 %v9805_v58 }
 0x30f   : > { %9244 = vmatprep.subr.bf16.mxu1 %v9806_v59 }
 0x311   : > { %9223 = vmatpush3.bf16.msra.mxu0 %v9807_v60 }
 0x312   : > { %9245 = vmatpush3.bf16.msra.mxu1 %v9808_v61  ;;  %9224 = vmatprep.subr.bf16.mxu0 %v9809_v62 }
 0x313   : > { %9246 = vmatprep.subr.bf16.mxu1 %v9810_v63 }
 0x315   : > { %9225 = vmatpush3.bf16.msra.mxu0 %v9811_v3 }
 0x316   : > { %9247 = vmatpush3.bf16.msra.mxu1 %v9812_v4  ;;  %9226 = vmatprep.subr.bf16.mxu0 %v9813_v5 }
 0x317   : > { %9248 = vmatprep.subr.bf16.mxu1 %v9814_v0 }
 0x319   : > { %9227 = vmatpush3.bf16.msra.mxu0 %v9815_v6 }
 0x31a   : > { %9249 = vmatpush3.bf16.msra.mxu1 %v9816_v8 }
 0x31c   : > { %v8964_v10 = vpop.f32.mrf.mxu0  ;;  %6692 = vmatmul.mubr.bf16.vlgmr.msra.gmra.mxu0 %v6528_v12 }
 0x31d   : > { %v8986_v11 = vpop.f32.mrf.mxu1  ;;  %6877 = vmatmul.mubr.bf16.vlgmr.msra.gmra.mxu1 %v6713_v13 }
 0x31e   : > { %v8965_v14 = vpop.f32.mrf.mxu0 }
 0x31f   : > { %v8966_v15 = vadd.f32 %v8965_v14, %v8964_v10  ;;  %v8987_v16 = vpop.f32.mrf.mxu1 }
 0x320   : > { %v8988_v17 = vadd.f32 %v8987_v16, %v8986_v11  ;;  %v8967_v18 = vpop.f32.mrf.mxu0 }
 0x321   : > { %v4479_v19 = vadd.f32 %v8966_v15, %v4294_v49  ;;  %v8989_v20 = vpop.f32.mrf.mxu1 }
 0x322   : > { %v8968_v23 = vpop.f32.mrf.mxu0 }
 0x323   : > { %v4664_v24 = vadd.f32 %v8988_v17, %v4479_v19  ;;  %v8990_v25 = vpop.f32.mrf.mxu1 }
 0x33c   : > { %v9008_v1 = vpop.f32.mrf.mxu0 }
 0x33d   : > { %v9030_v22 = vpop.f32.mrf.mxu1 }
 0x33e   : > { %v9009_v26 = vpop.f32.mrf.mxu0 }
 0x33f   : > { %v9010_v27 = vadd.f32 %v9009_v26, %v9008_v1  ;;  %v9031_v28 = vpop.f32.mrf.mxu1 }
 0x340   : > { %v9032_v21 = vadd.f32 %v9031_v28, %v9030_v22  ;;  %v9011_v29 = vpop.f32.mrf.mxu0 }
 0x341   : > { %v4849_v30 = vadd.f32 %v9010_v27, %v4664_v24  ;;  %v9033_v31 = vpop.f32.mrf.mxu1 }
 0x342   : > { %v9012_v2 = vpop.f32.mrf.mxu0 }
 0x343   : > { %v5034_v32 = vadd.f32 %v9032_v21, %v4849_v30  ;;  %v9034_v33 = vpop.f32.mrf.mxu1  ;;  %v231_v21 = vld [vmem:[%s11895_s4] sm:$0x1] }
 0x35c   : > { %v9052_v34 = vpop.f32.mrf.mxu0 }
 0x35d   : > { %v9074_v35 = vpop.f32.mrf.mxu1 }
 0x35e   : > { %v9053_v36 = vpop.f32.mrf.mxu0 }
 0x35f   : > { %v9054_v37 = vadd.f32 %v9053_v36, %v9052_v34  ;;  %v9075_v38 = vpop.f32.mrf.mxu1 }
 0x360   : > { %v9076_v39 = vadd.f32 %v9075_v38, %v9074_v35  ;;  %v9055_v40 = vpop.f32.mrf.mxu0 }
 0x361   : > { %v5219_v41 = vadd.f32 %v9054_v37, %v5034_v32  ;;  %v9077_v42 = vpop.f32.mrf.mxu1 }
 0x362   : > { %v9056_v43 = vpop.f32.mrf.mxu0 }
 0x363   : > { %v5404_v44 = vadd.f32 %v9076_v39, %v5219_v41  ;;  %v9078_v45 = vpop.f32.mrf.mxu1 }
 0x37c   : > { %v9096_v46 = vpop.f32.mrf.mxu0 }
 0x37d   : > { %v9118_v47 = vpop.f32.mrf.mxu1 }
 0x37e   : > { %v9097_v48 = vpop.f32.mrf.mxu0 }
 0x37f   : > { %v9098_v49 = vadd.f32 %v9097_v48, %v9096_v46  ;;  %v9119_v50 = vpop.f32.mrf.mxu1 }
 0x380   : > { %v9120_v51 = vadd.f32 %v9119_v50, %v9118_v47  ;;  %v9099_v52 = vpop.f32.mrf.mxu0 }
 0x381   : > { %v5589_v53 = vadd.f32 %v9098_v49, %v5404_v44  ;;  %v9121_v54 = vpop.f32.mrf.mxu1 }
 0x382   : > { %v9100_v55 = vpop.f32.mrf.mxu0 }
 0x383   : > { %v5774_v56 = vadd.f32 %v9120_v51, %v5589_v53  ;;  %v9122_v57 = vpop.f32.mrf.mxu1 }
 0x39c   : > { %v9140_v58 = vpop.f32.mrf.mxu0 }
 0x39d   : > { %v9162_v59 = vpop.f32.mrf.mxu1 }
 0x39e   : > { %v9141_v60 = vpop.f32.mrf.mxu0 }
 0x39f   : > { %v9163_v61 = vpop.f32.mrf.mxu1  ;;  %v9142_v10 = vadd.f32 %v9141_v60, %v9140_v58 }
 0x3a0   : > { %v9143_v62 = vpop.f32.mrf.mxu0  ;;  %v9164_v14 = vadd.f32 %v9163_v61, %v9162_v59 }
 0x3a1   : > { %v9165_v63 = vpop.f32.mrf.mxu1  ;;  %v5959_v11 = vadd.f32 %v9142_v10, %v5774_v56 }
 0x3a2   : > { %v9144_v3 = vpop.f32.mrf.mxu0 }
 0x3a3   : > { %v9166_v4 = vpop.f32.mrf.mxu1  ;;  %v6144_v16 = vadd.f32 %v9164_v14, %v5959_v11 }
 0x3bc   : > { %v9184_v5 = vpop.f32.mrf.mxu0 }
 0x3bd   : > { %v9206_v0 = vpop.f32.mrf.mxu1 }
 0x3be   : > { %v9185_v6 = vpop.f32.mrf.mxu0 }
 0x3bf   : > { %v9207_v7 = vpop.f32.mrf.mxu1  ;;  %v9186_v15 = vadd.f32 %v9185_v6, %v9184_v5 }
 0x3c0   : > { %v9187_v8 = vpop.f32.mrf.mxu0  ;;  %v9208_v19 = vadd.f32 %v9207_v7, %v9206_v0 }
 0x3c1   : > { %v9209_v9 = vpop.f32.mrf.mxu1  ;;  %v6329_v17 = vadd.f32 %v9186_v15, %v6144_v16 }
 0x3c2   : > { %v9188_v12 = vpop.f32.mrf.mxu0 }
 0x3c3   : > { %v9210_v13 = vpop.f32.mrf.mxu1  ;;  %v6514_v24 = vadd.f32 %v9208_v19, %v6329_v17 }
 0x3dc   : > { %v9228_v18 = vpop.f32.mrf.mxu0 }
 0x3dd   : > { %v9250_v20 = vpop.f32.mrf.mxu1 }
 0x3de   : > { %v9229_v23 = vpop.f32.mrf.mxu0 }
 0x3df   : > { %v9230_v25 = vadd.f32 %v9229_v23, %v9228_v18  ;;  %v9251_v1 = vpop.f32.mrf.mxu1 }
 0x3e0   : > { %v9231_v22 = vpop.f32.mrf.mxu0  ;;  %v9252_v27 = vadd.f32 %v9251_v1, %v9250_v20 }
 0x3e1   : > { %v6699_v26 = vadd.f32 %v9230_v25, %v6514_v24  ;;  %v9253_v28 = vpop.f32.mrf.mxu1 }
 0x3e2   : > { %v9232_v29 = vpop.f32.mrf.mxu0 }
 0x3e3   : > { %v6884_v30 = vadd.f32 %v9252_v27, %v6699_v26  ;;  %v9254_v31 = vpop.f32.mrf.mxu1 }
 0x3e5   : > { %v6885_v2 = vadd.f32 %v6884_v30, %v231_v21 }
 0x3e7   : > { %v6886_v32 = vmax.f32 %v6885_v2, 0.0 }
 0x3e9   : > { %6887 = vst [vmem:[%s216_s14] sm:$0x1] %v6886_v32 }
 0x3ea   : > { %9830 = shalt.err (!%p9827_p3)
}
 0x3eb   : > { %s9831_s7 = scalar_lea.hbm %s6899_s23, 16  ;;  %s9835_s10 = scalar_lea.hbm %s11896_s5, 32 }
 0x3ec   : > { %p9832_p4 = scmp.ne.s32.totalorder %s6899_s23, %s9831_s7  ;;  %p9836_p9 = scmp.lt.s32.totalorder %s6899_s23, %s11896_s5 }
 0x3ed   : > { %p9837_p10 = scmp.lt.s32.totalorder %s9835_s10, %s9831_s7 }
 0x3ee   : > { %p9833_p7 = pnand %p9832_p4, %p9949_p5 }
 0x3ef   : > { %p9838_p11 = por %p9837_p10, %p9836_p9 }
 0x3f0   : > { %p9834_p8 = pneg %p9833_p7 }
 0x3f2   : > { %p9839_p12 = pnand %p9838_p11, %p9834_p8 }
 0x3f4   : > { %9842 = shalt.err (!%p9839_p12)
}
 0x3f5   : > { %9257 = dma.vmem_to_hbm [thread:$0]  (%p9949_p5), %s6902_s15, 16, %s6899_s23, %s6889_s25  }
 0x3f6 PF: > { %p9263_p13 = scmp.ge.s32.totalorder %s9877_s21, 2  ;;  %s6913_s13 = sand.u32 1, %s9865_s18  }
 0x3f7   : > { %s6914_s14 = scalar_lea.sflag [#allocation4], %s6913_s13 }
 0x3f8   : > { %p9260_p0 = pnand %p9263_p13, %p9953_p6 }
 0x3fa   : > { %p9261_p1 = pneg %p9260_p0 }
 0x3fc   : > { %9860 = dma.done.wait (%p9261_p1), %s6914_s14, 16  }
 0x3fd   : > { %9862 = vsyncadd (%p9261_p1), %s6914_s14, 4294967280  ;;  %p15_p2 = scmp.ge.s32.totalorder %s9936_s24, 4   ;;  %s11899_s18 = smov %s9869_s19 }
 0x3fe   : > { %s11900_s19 = smov %s9873_s20  ;;  %s11901_s20 = smov %s9947_s27 }
 0x3ff   : > { %s11902_s21 = smov %s9936_s24  ;;  %17 = sbr.rel (!%p15_p2) target bundleno = 3 (0x3), region = 137 }
 0x404   :  { %6918 = vsyncpa [#allocation4], 1 }
 0x405   :  { %6920 = vsyncpa [#allocation4 + $0x1], 1 }

</bundles_post_ra>
